<compile_context>
chip_gen: v7x
topology: tpu7x:2x2x1
jax: 0.10.0
libtpu: 0.0.40
codegen_flags: <defaults>
</compile_context>

<pallas_src>
import jax
import jax.numpy as jnp
from jax.experimental import pallas as pl
from jax.experimental.pallas import tpu as pltpu

Z_DIM = 1
IN_DIM = 28 * 28      # 784 (flattened image)
ENC_H1 = 256
ENC_H2 = 1024
HID = 28 * 28         # 784 (decoder hidden / output width)


# ---------------------------------------------------------------------------
# Kernels
# ---------------------------------------------------------------------------
def _encoder_kernel(x_ref, w_fc_ref, b_fc_ref, w_fc2_ref, b_fc2_ref,
                    w_mu_ref, b_mu_ref, w_lv_ref, b_lv_ref,
                    mean_ref, logvar_ref):
    # fc (784 -> 256) + relu, MXU, f32 accumulation
    h1 = jnp.dot(x_ref[...], w_fc_ref[...], preferred_element_type=jnp.float32)
    h1 = jnp.maximum(h1 + b_fc_ref[...], 0.0)
    # fc2 (256 -> 1024) + relu
    h2 = jnp.dot(h1, w_fc2_ref[...], preferred_element_type=jnp.float32)
    h2 = jnp.maximum(h2 + b_fc2_ref[...], 0.0)
    # mean / logvar heads (N=1): VPU multiply + lane reduction instead of an
    # N=1 MXU contraction.  Weights are stored as (1, 1024) rows.
    mean_ref[...] = (jnp.sum(h2 * w_mu_ref[...], axis=-1, keepdims=True)
                     + b_mu_ref[...])
    logvar_ref[...] = (jnp.sum(h2 * w_lv_ref[...], axis=-1, keepdims=True)
                       + b_lv_ref[...])


def _decoder_kernel(mean_ref, logvar_ref, eps_ref,
                    w1_ref, b1_ref, w2_ref, b2_ref, o_ref):
    # reparameterize (matches torch: z = mean + eps * exp(logvar))
    z = mean_ref[...] + eps_ref[...] * jnp.exp(logvar_ref[...])        # (TB, 1)
    # fc1 (K=1): VPU broadcast outer product, keeps the MXU free for fc2
    h = jnp.maximum(z * w1_ref[...] + b1_ref[...], 0.0)                # (TB, 784)
    # fc2 (784 -> 784): bf16 inputs, f32 accumulation on the MXU
    o = jnp.dot(h.astype(jnp.bfloat16), w2_ref[...],
                preferred_element_type=jnp.float32) + b2_ref[...]
    # sigmoid: exp and approximate reciprocal both live on the EUP slot
    o_ref[...] = pl.reciprocal(1.0 + jnp.exp(-o), approx=True)


# ---------------------------------------------------------------------------
# Wrappers
# ---------------------------------------------------------------------------
def _round_up(n, m):
    return ((n + m - 1) // m) * m


def _pick_tile_b(batch):
    """Generation-aware M-tile: 256 fills a v6e/v7x MXU, 128 is enough on v5e."""
    try:
        kind = jax.devices()[0].device_kind.lower()
    except Exception:
        kind = ""
    cap = 128 if "v5" in kind else 256
    return min(cap, _round_up(batch, 8))


def _encoder_forward(x2d, p, tile_b):
    b_pad = x2d.shape[0]
    grid = (b_pad // tile_b,)
    cost = pl.CostEstimate(
        flops=2 * b_pad * (IN_DIM * ENC_H1 + ENC_H1 * ENC_H2 + 2 * ENC_H2),
        transcendentals=0,
        bytes_accessed=4 * (b_pad * IN_DIM + IN_DIM * ENC_H1 + ENC_H1
                            + ENC_H1 * ENC_H2 + ENC_H2 + 2 * (ENC_H2 + 1)
                            + 2 * b_pad),
    )
    mean, logvar = pl.pallas_call(
        _encoder_kernel,
        out_shape=(jax.ShapeDtypeStruct((b_pad, 1), jnp.float32),
                   jax.ShapeDtypeStruct((b_pad, 1), jnp.float32)),
        grid=grid,
        in_specs=[
            pl.BlockSpec((tile_b, IN_DIM), lambda i: (i, 0)),   # x tile
            pl.BlockSpec((IN_DIM, ENC_H1), lambda i: (0, 0)),   # w_fc  (resident)
            pl.BlockSpec((1, ENC_H1), lambda i: (0, 0)),        # b_fc
            pl.BlockSpec((ENC_H1, ENC_H2), lambda i: (0, 0)),   # w_fc2 (resident)
            pl.BlockSpec((1, ENC_H2), lambda i: (0, 0)),        # b_fc2
            pl.BlockSpec((1, ENC_H2), lambda i: (0, 0)),        # w_mu row
            pl.BlockSpec((1, 1), lambda i: (0, 0)),             # b_mu
            pl.BlockSpec((1, ENC_H2), lambda i: (0, 0)),        # w_lv row
            pl.BlockSpec((1, 1), lambda i: (0, 0)),             # b_lv
        ],
        out_specs=(pl.BlockSpec((tile_b, 1), lambda i: (i, 0)),
                   pl.BlockSpec((tile_b, 1), lambda i: (i, 0))),
        compiler_params=pltpu.CompilerParams(
            dimension_semantics=("parallel",)),
        cost_estimate=cost,
    )(x2d, p["enc_w_fc"], p["enc_b_fc"], p["enc_w_fc2"], p["enc_b_fc2"],
      p["enc_w_mu"], p["enc_b_mu"], p["enc_w_lv"], p["enc_b_lv"])
    return mean, logvar


def _decoder_forward(mean, logvar, eps, p, tile_b):
    b_pad = mean.shape[0]
    grid = (b_pad // tile_b,)
    cost = pl.CostEstimate(
        flops=2 * b_pad * HID * (HID + 2),
        transcendentals=b_pad * (HID + 1),
        bytes_accessed=4 * (3 * b_pad + 3 * HID + b_pad * HID) + 2 * HID * HID,
    )
    out2d = pl.pallas_call(
        _decoder_kernel,
        out_shape=jax.ShapeDtypeStruct((b_pad, HID), jnp.float32),
        grid=grid,
        in_specs=[
            pl.BlockSpec((tile_b, 1), lambda i: (i, 0)),        # mean tile
            pl.BlockSpec((tile_b, 1), lambda i: (i, 0)),        # logvar tile
            pl.BlockSpec((tile_b, 1), lambda i: (i, 0)),        # eps tile
            pl.BlockSpec((Z_DIM, HID), lambda i: (0, 0)),       # w1 (resident)
            pl.BlockSpec((1, HID), lambda i: (0, 0)),           # b1
            pl.BlockSpec((HID, HID), lambda i: (0, 0)),         # w2 bf16 (resident)
            pl.BlockSpec((1, HID), lambda i: (0, 0)),           # b2
        ],
        out_specs=pl.BlockSpec((tile_b, HID), lambda i: (i, 0)),
        compiler_params=pltpu.CompilerParams(
            dimension_semantics=("parallel",)),
        cost_estimate=cost,
    )(mean, logvar, eps, p["dec_w1"], p["dec_b1"], p["dec_w2"], p["dec_b2"])
    return out2d


def vae_forward(x, params, eps):
    """x: (B, 1, 28, 28) f32, eps: (B, 1) f32 -> (out (B,1,28,28), mean, logvar)."""
    B = x.shape[0]
    x2d = x.reshape(B, IN_DIM).astype(jnp.float32)
    eps = eps.astype(jnp.float32)

    tile_b = _pick_tile_b(B)
    b_pad = _round_up(B, tile_b)
    if b_pad != B:
        x2d = jnp.pad(x2d, ((0, b_pad - B), (0, 0)))
        eps = jnp.pad(eps, ((0, b_pad - B), (0, 0)))

    mean, logvar = _encoder_forward(x2d, params, tile_b)
    out2d = _decoder_forward(mean, logvar, eps, params, tile_b)

    out = out2d[:B].reshape(B, 1, 28, 28)
    return out, mean[:B], logvar[:B]


# ---------------------------------------------------------------------------
# Init (mimics nn.Linear's U(-1/sqrt(fan_in), 1/sqrt(fan_in)))
# ---------------------------------------------------------------------------
def init_params(key):
    ks = jax.random.split(key, 12)

    def lin(kw, kb, fan_in, fan_out):
        bound = 1.0 / (fan_in ** 0.5)
        w = jax.random.uniform(kw, (fan_in, fan_out), jnp.float32, -bound, bound)
        b = jax.random.uniform(kb, (1, fan_out), jnp.float32, -bound, bound)
        return w, b

    enc_w_fc, enc_b_fc = lin(ks[0], ks[1], IN_DIM, ENC_H1)
    enc_w_fc2, enc_b_fc2 = lin(ks[2], ks[3], ENC_H1, ENC_H2)
    w_mu, b_mu = lin(ks[4], ks[5], ENC_H2, 1)
    w_lv, b_lv = lin(ks[6], ks[7], ENC_H2, 1)
    dec_w1, dec_b1 = lin(ks[8], ks[9], Z_DIM, HID)
    dec_w2, dec_b2 = lin(ks[10], ks[11], HID, HID)

    return dict(
        enc_w_fc=enc_w_fc, enc_b_fc=enc_b_fc,
        enc_w_fc2=enc_w_fc2, enc_b_fc2=enc_b_fc2,
        enc_w_mu=w_mu.T, enc_b_mu=b_mu,          # (1,1024) row / (1,1)
        enc_w_lv=w_lv.T, enc_b_lv=b_lv,
        dec_w1=dec_w1, dec_b1=dec_b1,            # (1,784) / (1,784)
        dec_w2=dec_w2.astype(jnp.bfloat16),      # bf16 weight, f32 accumulate
        dec_b2=dec_b2,
    )


# ---------------------------------------------------------------------------
# Smoke test
# ---------------------------------------------------------------------------
if __name__ == "__main__":
    key = jax.random.PRNGKey(0)
    kx, kp, ke = jax.random.split(key, 3)

    B = 8
    x = jax.random.normal(kx, (B, 1, 28, 28), jnp.float32)   # image input, NCHW
    params = init_params(kp)
    eps = jax.random.normal(ke, (B, Z_DIM), jnp.float32)      # torch.randn_like(logvar)

    fwd = jax.jit(vae_forward)
    out, mean, logvar = fwd(x, params, eps)
    jax.block_until_ready(out)

    # Pure-JAX reference with matching dtypes (bf16 decoder fc2 weight, f32 accum).
    xf = x.reshape(B, IN_DIM)
    h1 = jnp.maximum(xf @ params["enc_w_fc"] + params["enc_b_fc"], 0.0)
    h2 = jnp.maximum(h1 @ params["enc_w_fc2"] + params["enc_b_fc2"], 0.0)
    mean_r = jnp.sum(h2 * params["enc_w_mu"], axis=-1, keepdims=True) + params["enc_b_mu"]
    lv_r = jnp.sum(h2 * params["enc_w_lv"], axis=-1, keepdims=True) + params["enc_b_lv"]
    z_r = mean_r + eps * jnp.exp(lv_r)
    h_r = jnp.maximum(z_r * params["dec_w1"] + params["dec_b1"], 0.0)
    o_r = jnp.dot(h_r.astype(jnp.bfloat16), params["dec_w2"],
                  preferred_element_type=jnp.float32) + params["dec_b2"]
    ref = jax.nn.sigmoid(o_r).reshape(B, 1, 28, 28)

    assert out.shape == (B, 1, 28, 28)
    assert jnp.allclose(out, ref, atol=2e-2, rtol=0.0), float(jnp.max(jnp.abs(out - ref)))
    assert jnp.allclose(mean, mean_r, atol=2e-2, rtol=0.0)
    assert jnp.allclose(logvar, lv_r, atol=2e-2, rtol=0.0)

    print("KERNEL_OK")
</pallas_src>

<mosaic_0001>
module attributes {stable_mosaic.version = 11 : i64} {
  func.func @_encoder_kernel(%arg0: i32, %arg1: memref<8x784xf32, #tpu.memory_space<vmem>>, %arg2: memref<784x256xf32, #tpu.memory_space<vmem>>, %arg3: memref<1x256xf32, #tpu.memory_space<vmem>>, %arg4: memref<256x1024xf32, #tpu.memory_space<vmem>>, %arg5: memref<1x1024xf32, #tpu.memory_space<vmem>>, %arg6: memref<1x1024xf32, #tpu.memory_space<vmem>>, %arg7: memref<1x1xf32, #tpu.memory_space<vmem>>, %arg8: memref<1x1024xf32, #tpu.memory_space<vmem>>, %arg9: memref<1x1xf32, #tpu.memory_space<vmem>>, %arg10: memref<8x1xf32, #tpu.memory_space<vmem>>, %arg11: memref<8x1xf32, #tpu.memory_space<vmem>>) attributes {dimension_semantics = [#tpu.dimension_semantics<parallel>], iteration_bounds = array<i64: 1>, scalar_prefetch = 0 : i64, scratch_operands = 0 : i64, tpu.core_type = #tpu.core_type<tc>, window_params = [{transform_indices = @transform_0, window_bounds = array<i64: 8, 784>}, {pipeline_mode = #tpu.pipeline_mode<synchronous>, transform_indices = @transform_1, window_bounds = array<i64: 784, 256>}, {pipeline_mode = #tpu.pipeline_mode<synchronous>, transform_indices = @transform_2, window_bounds = array<i64: 1, 256>}, {pipeline_mode = #tpu.pipeline_mode<synchronous>, transform_indices = @transform_3, window_bounds = array<i64: 256, 1024>}, {pipeline_mode = #tpu.pipeline_mode<synchronous>, transform_indices = @transform_4, window_bounds = array<i64: 1, 1024>}, {pipeline_mode = #tpu.pipeline_mode<synchronous>, transform_indices = @transform_5, window_bounds = array<i64: 1, 1024>}, {pipeline_mode = #tpu.pipeline_mode<synchronous>, transform_indices = @transform_6, window_bounds = array<i64: 1, 1>}, {pipeline_mode = #tpu.pipeline_mode<synchronous>, transform_indices = @transform_7, window_bounds = array<i64: 1, 1024>}, {pipeline_mode = #tpu.pipeline_mode<synchronous>, transform_indices = @transform_8, window_bounds = array<i64: 1, 1>}, {transform_indices = @transform_9, window_bounds = array<i64: 8, 1>}, {transform_indices = @transform_10, window_bounds = array<i64: 8, 1>}]} {
    %c0 = arith.constant 0 : index
    %c0_0 = arith.constant 0 : index
    %0 = vector.load %arg1[%c0, %c0_0] : memref<8x784xf32, #tpu.memory_space<vmem>>, vector<8x784xf32>
    %c0_1 = arith.constant 0 : index
    %c0_2 = arith.constant 0 : index
    %1 = vector.load %arg2[%c0_1, %c0_2] : memref<784x256xf32, #tpu.memory_space<vmem>>, vector<784x256xf32>
    %cst = arith.constant dense<0.000000e+00> : vector<8x256xf32>
    %2 = tpu.matmul %0, %1, %cst {dimension_numbers = #tpu.dot_dimension_numbers<[1], [0], [0], [1], [0, 0, 1, 1], [], []>} : vector<8x784xf32>, vector<784x256xf32>, vector<8x256xf32> -> vector<8x256xf32>
    %c0_3 = arith.constant 0 : index
    %c0_4 = arith.constant 0 : index
    %3 = vector.load %arg3[%c0_3, %c0_4] : memref<1x256xf32, #tpu.memory_space<vmem>>, vector<1x256xf32>
    %4 = vector.broadcast %3 : vector<1x256xf32> to vector<8x256xf32>
    %5 = arith.addf %2, %4 : vector<8x256xf32>
    %cst_5 = arith.constant 0.000000e+00 : f32
    %6 = vector.broadcast %cst_5 : f32 to vector<8x256xf32>
    %7 = arith.maximumf %5, %6 : vector<8x256xf32>
    %c0_6 = arith.constant 0 : index
    %c0_7 = arith.constant 0 : index
    %8 = vector.load %arg4[%c0_6, %c0_7] : memref<256x1024xf32, #tpu.memory_space<vmem>>, vector<256x1024xf32>
    %cst_8 = arith.constant dense<0.000000e+00> : vector<8x1024xf32>
    %9 = tpu.matmul %7, %8, %cst_8 {dimension_numbers = #tpu.dot_dimension_numbers<[1], [0], [0], [1], [0, 0, 1, 1], [], []>} : vector<8x256xf32>, vector<256x1024xf32>, vector<8x1024xf32> -> vector<8x1024xf32>
    %c0_9 = arith.constant 0 : index
    %c0_10 = arith.constant 0 : index
    %10 = vector.load %arg5[%c0_9, %c0_10] : memref<1x1024xf32, #tpu.memory_space<vmem>>, vector<1x1024xf32>
    %11 = vector.broadcast %10 : vector<1x1024xf32> to vector<8x1024xf32>
    %12 = arith.addf %9, %11 : vector<8x1024xf32>
    %cst_11 = arith.constant 0.000000e+00 : f32
    %13 = vector.broadcast %cst_11 : f32 to vector<8x1024xf32>
    %14 = arith.maximumf %12, %13 : vector<8x1024xf32>
    %c0_12 = arith.constant 0 : index
    %c0_13 = arith.constant 0 : index
    %15 = vector.load %arg6[%c0_12, %c0_13] : memref<1x1024xf32, #tpu.memory_space<vmem>>, vector<1x1024xf32>
    %16 = vector.broadcast %15 : vector<1x1024xf32> to vector<8x1024xf32>
    %17 = arith.mulf %14, %16 : vector<8x1024xf32>
    %cst_14 = arith.constant dense<0.000000e+00> : vector<8xf32>
    %18 = vector.multi_reduction <add>, %17, %cst_14 [1] : vector<8x1024xf32> to vector<8xf32>
    %19 = vector.shape_cast %18 : vector<8xf32> to vector<8x1xf32>
    %c0_15 = arith.constant 0 : index
    %c0_16 = arith.constant 0 : index
    %20 = vector.load %arg7[%c0_15, %c0_16] : memref<1x1xf32, #tpu.memory_space<vmem>>, vector<1x1xf32>
    %21 = vector.broadcast %20 : vector<1x1xf32> to vector<8x1xf32>
    %22 = arith.addf %19, %21 : vector<8x1xf32>
    %c0_17 = arith.constant 0 : index
    %c0_18 = arith.constant 0 : index
    %23 = vector.load %arg10[%c0_17, %c0_18] : memref<8x1xf32, #tpu.memory_space<vmem>>, vector<8x1xf32>
    tpu.vector_store %arg10[%c0_17, %c0_18], %22 {strides = array<i32>} : memref<8x1xf32, #tpu.memory_space<vmem>>, vector<8x1xf32>,
    %c0_19 = arith.constant 0 : index
    %c0_20 = arith.constant 0 : index
    %24 = vector.load %arg8[%c0_19, %c0_20] : memref<1x1024xf32, #tpu.memory_space<vmem>>, vector<1x1024xf32>
    %25 = vector.broadcast %24 : vector<1x1024xf32> to vector<8x1024xf32>
    %26 = arith.mulf %14, %25 : vector<8x1024xf32>
    %cst_21 = arith.constant dense<0.000000e+00> : vector<8xf32>
    %27 = vector.multi_reduction <add>, %26, %cst_21 [1] : vector<8x1024xf32> to vector<8xf32>
    %28 = vector.shape_cast %27 : vector<8xf32> to vector<8x1xf32>
    %c0_22 = arith.constant 0 : index
    %c0_23 = arith.constant 0 : index
    %29 = vector.load %arg9[%c0_22, %c0_23] : memref<1x1xf32, #tpu.memory_space<vmem>>, vector<1x1xf32>
    %30 = vector.broadcast %29 : vector<1x1xf32> to vector<8x1xf32>
    %31 = arith.addf %28, %30 : vector<8x1xf32>
    %c0_24 = arith.constant 0 : index
    %c0_25 = arith.constant 0 : index
    %32 = vector.load %arg11[%c0_24, %c0_25] : memref<8x1xf32, #tpu.memory_space<vmem>>, vector<8x1xf32>
    tpu.vector_store %arg11[%c0_24, %c0_25], %31 {strides = array<i32>} : memref<8x1xf32, #tpu.memory_space<vmem>>, vector<8x1xf32>,
    return
  }
  func.func @transform_0(%arg0: i32) -> (i32, i32) {
    %c0_i32 = arith.constant 0 : i32
    %c0_i32_0 = arith.constant 0 : i32
    return %arg0, %c0_i32 : i32, i32
  }
  func.func @transform_1(%arg0: i32) -> (i32, i32) {
    %c0_i32 = arith.constant 0 : i32
    %c0_i32_0 = arith.constant 0 : i32
    %c0_i32_1 = arith.constant 0 : i32
    return %c0_i32, %c0_i32_0 : i32, i32
  }
  func.func @transform_2(%arg0: i32) -> (i32, i32) {
    %c0_i32 = arith.constant 0 : i32
    %c0_i32_0 = arith.constant 0 : i32
    %c0_i32_1 = arith.constant 0 : i32
    return %c0_i32, %c0_i32_0 : i32, i32
  }
  func.func @transform_3(%arg0: i32) -> (i32, i32) {
    %c0_i32 = arith.constant 0 : i32
    %c0_i32_0 = arith.constant 0 : i32
    %c0_i32_1 = arith.constant 0 : i32
    return %c0_i32, %c0_i32_0 : i32, i32
  }
  func.func @transform_4(%arg0: i32) -> (i32, i32) {
    %c0_i32 = arith.constant 0 : i32
    %c0_i32_0 = arith.constant 0 : i32
    %c0_i32_1 = arith.constant 0 : i32
    return %c0_i32, %c0_i32_0 : i32, i32
  }
  func.func @transform_5(%arg0: i32) -> (i32, i32) {
    %c0_i32 = arith.constant 0 : i32
    %c0_i32_0 = arith.constant 0 : i32
    %c0_i32_1 = arith.constant 0 : i32
    return %c0_i32, %c0_i32_0 : i32, i32
  }
  func.func @transform_6(%arg0: i32) -> (i32, i32) {
    %c0_i32 = arith.constant 0 : i32
    %c0_i32_0 = arith.constant 0 : i32
    %c0_i32_1 = arith.constant 0 : i32
    return %c0_i32, %c0_i32_0 : i32, i32
  }
  func.func @transform_7(%arg0: i32) -> (i32, i32) {
    %c0_i32 = arith.constant 0 : i32
    %c0_i32_0 = arith.constant 0 : i32
    %c0_i32_1 = arith.constant 0 : i32
    return %c0_i32, %c0_i32_0 : i32, i32
  }
  func.func @transform_8(%arg0: i32) -> (i32, i32) {
    %c0_i32 = arith.constant 0 : i32
    %c0_i32_0 = arith.constant 0 : i32
    %c0_i32_1 = arith.constant 0 : i32
    return %c0_i32, %c0_i32_0 : i32, i32
  }
  func.func @transform_9(%arg0: i32) -> (i32, i32) {
    %c0_i32 = arith.constant 0 : i32
    %c0_i32_0 = arith.constant 0 : i32
    return %arg0, %c0_i32 : i32, i32
  }
  func.func @transform_10(%arg0: i32) -> (i32, i32) {
    %c0_i32 = arith.constant 0 : i32
    %c0_i32_0 = arith.constant 0 : i32
    return %arg0, %c0_i32 : i32, i32
  }
}

module attributes {stable_mosaic.version = 11 : i64} {
  func.func @_decoder_kernel(%arg0: i32, %arg1: memref<8x1xf32, #tpu.memory_space<vmem>>, %arg2: memref<8x1xf32, #tpu.memory_space<vmem>>, %arg3: memref<8x1xf32, #tpu.memory_space<vmem>>, %arg4: memref<1x784xf32, #tpu.memory_space<vmem>>, %arg5: memref<1x784xf32, #tpu.memory_space<vmem>>, %arg6: memref<784x784xbf16, #tpu.memory_space<vmem>>, %arg7: memref<1x784xf32, #tpu.memory_space<vmem>>, %arg8: memref<8x784xf32, #tpu.memory_space<vmem>>) attributes {dimension_semantics = [#tpu.dimension_semantics<parallel>], iteration_bounds = array<i64: 1>, scalar_prefetch = 0 : i64, scratch_operands = 0 : i64, tpu.core_type = #tpu.core_type<tc>, window_params = [{transform_indices = @transform_0, window_bounds = array<i64: 8, 1>}, {transform_indices = @transform_1, window_bounds = array<i64: 8, 1>}, {transform_indices = @transform_2, window_bounds = array<i64: 8, 1>}, {pipeline_mode = #tpu.pipeline_mode<synchronous>, transform_indices = @transform_3, window_bounds = array<i64: 1, 784>}, {pipeline_mode = #tpu.pipeline_mode<synchronous>, transform_indices = @transform_4, window_bounds = array<i64: 1, 784>}, {pipeline_mode = #tpu.pipeline_mode<synchronous>, transform_indices = @transform_5, window_bounds = array<i64: 784, 784>}, {pipeline_mode = #tpu.pipeline_mode<synchronous>, transform_indices = @transform_6, window_bounds = array<i64: 1, 784>}, {transform_indices = @transform_7, window_bounds = array<i64: 8, 784>}]} {
    %c0 = arith.constant 0 : index
    %c0_0 = arith.constant 0 : index
    %0 = vector.load %arg1[%c0, %c0_0] : memref<8x1xf32, #tpu.memory_space<vmem>>, vector<8x1xf32>
    %c0_1 = arith.constant 0 : index
    %c0_2 = arith.constant 0 : index
    %1 = vector.load %arg3[%c0_1, %c0_2] : memref<8x1xf32, #tpu.memory_space<vmem>>, vector<8x1xf32>
    %c0_3 = arith.constant 0 : index
    %c0_4 = arith.constant 0 : index
    %2 = vector.load %arg2[%c0_3, %c0_4] : memref<8x1xf32, #tpu.memory_space<vmem>>, vector<8x1xf32>
    %3 = math.exp %2 : vector<8x1xf32>
    %4 = arith.mulf %1, %3 : vector<8x1xf32>
    %5 = arith.addf %0, %4 : vector<8x1xf32>
    %c0_5 = arith.constant 0 : index
    %c0_6 = arith.constant 0 : index
    %6 = vector.load %arg4[%c0_5, %c0_6] : memref<1x784xf32, #tpu.memory_space<vmem>>, vector<1x784xf32>
    %7 = vector.broadcast %5 : vector<8x1xf32> to vector<8x784xf32>
    %8 = vector.broadcast %6 : vector<1x784xf32> to vector<8x784xf32>
    %9 = arith.mulf %7, %8 : vector<8x784xf32>
    %c0_7 = arith.constant 0 : index
    %c0_8 = arith.constant 0 : index
    %10 = vector.load %arg5[%c0_7, %c0_8] : memref<1x784xf32, #tpu.memory_space<vmem>>, vector<1x784xf32>
    %11 = vector.broadcast %10 : vector<1x784xf32> to vector<8x784xf32>
    %12 = arith.addf %9, %11 : vector<8x784xf32>
    %cst = arith.constant 0.000000e+00 : f32
    %13 = vector.broadcast %cst : f32 to vector<8x784xf32>
    %14 = arith.maximumf %12, %13 : vector<8x784xf32>
    %15 = arith.truncf %14 : vector<8x784xf32> to vector<8x784xbf16>
    %c0_9 = arith.constant 0 : index
    %c0_10 = arith.constant 0 : index
    %16 = vector.load %arg6[%c0_9, %c0_10] : memref<784x784xbf16, #tpu.memory_space<vmem>>, vector<784x784xbf16>
    %cst_11 = arith.constant dense<0.000000e+00> : vector<8x784xf32>
    %17 = tpu.matmul %15, %16, %cst_11 {dimension_numbers = #tpu.dot_dimension_numbers<[1], [0], [0], [1], [0, 0, 1, 1], [], []>} : vector<8x784xbf16>, vector<784x784xbf16>, vector<8x784xf32> -> vector<8x784xf32>
    %c0_12 = arith.constant 0 : index
    %c0_13 = arith.constant 0 : index
    %18 = vector.load %arg7[%c0_12, %c0_13] : memref<1x784xf32, #tpu.memory_space<vmem>>, vector<1x784xf32>
    %19 = vector.broadcast %18 : vector<1x784xf32> to vector<8x784xf32>
    %20 = arith.addf %17, %19 : vector<8x784xf32>
    %cst_14 = arith.constant 0.000000e+00 : f32
    %21 = vector.broadcast %cst_14 : f32 to vector<8x784xf32>
    %22 = arith.subf %21, %20 : vector<8x784xf32>
    %23 = math.exp %22 : vector<8x784xf32>
    %cst_15 = arith.constant 1.000000e+00 : f32
    %24 = vector.broadcast %cst_15 : f32 to vector<8x784xf32>
    %25 = arith.addf %24, %23 : vector<8x784xf32>
    %26 = tpu.reciprocal %25 {approx = true} : vector<8x784xf32> -> vector<8x784xf32>
    %c0_16 = arith.constant 0 : index
    %c0_17 = arith.constant 0 : index
    %27 = vector.load %arg8[%c0_16, %c0_17] : memref<8x784xf32, #tpu.memory_space<vmem>>, vector<8x784xf32>
    tpu.vector_store %arg8[%c0_16, %c0_17], %26 {strides = array<i32>} : memref<8x784xf32, #tpu.memory_space<vmem>>, vector<8x784xf32>,
    return
  }
  func.func @transform_0(%arg0: i32) -> (i32, i32) {
    %c0_i32 = arith.constant 0 : i32
    %c0_i32_0 = arith.constant 0 : i32
    return %arg0, %c0_i32 : i32, i32
  }
  func.func @transform_1(%arg0: i32) -> (i32, i32) {
    %c0_i32 = arith.constant 0 : i32
    %c0_i32_0 = arith.constant 0 : i32
    return %arg0, %c0_i32 : i32, i32
  }
  func.func @transform_2(%arg0: i32) -> (i32, i32) {
    %c0_i32 = arith.constant 0 : i32
    %c0_i32_0 = arith.constant 0 : i32
    return %arg0, %c0_i32 : i32, i32
  }
  func.func @transform_3(%arg0: i32) -> (i32, i32) {
    %c0_i32 = arith.constant 0 : i32
    %c0_i32_0 = arith.constant 0 : i32
    %c0_i32_1 = arith.constant 0 : i32
    return %c0_i32, %c0_i32_0 : i32, i32
  }
  func.func @transform_4(%arg0: i32) -> (i32, i32) {
    %c0_i32 = arith.constant 0 : i32
    %c0_i32_0 = arith.constant 0 : i32
    %c0_i32_1 = arith.constant 0 : i32
    return %c0_i32, %c0_i32_0 : i32, i32
  }
  func.func @transform_5(%arg0: i32) -> (i32, i32) {
    %c0_i32 = arith.constant 0 : i32
    %c0_i32_0 = arith.constant 0 : i32
    %c0_i32_1 = arith.constant 0 : i32
    return %c0_i32, %c0_i32_0 : i32, i32
  }
  func.func @transform_6(%arg0: i32) -> (i32, i32) {
    %c0_i32 = arith.constant 0 : i32
    %c0_i32_0 = arith.constant 0 : i32
    %c0_i32_1 = arith.constant 0 : i32
    return %c0_i32, %c0_i32_0 : i32, i32
  }
  func.func @transform_7(%arg0: i32) -> (i32, i32) {
    %c0_i32 = arith.constant 0 : i32
    %c0_i32_0 = arith.constant 0 : i32
    return %arg0, %c0_i32 : i32, i32
  }
}

</mosaic_0001>

<bundles_post_ra>
// kernel: vae_forward.2
= control target key start
LH: loop header
LB: loop body
LE: loop exit
PB: predicated region body
PF: predicated region fallthrough
CT: control target
= control target key end

     0   :  { %s2205_s0 = inlined_call_operand.vmem [shape: f32[8,784], index: 0, kind: input, shape index: {}]   ;;  %s2206_s1 = inlined_call_operand.hbm [shape: f32[784,256], index: 1, kind: input, shape index: {}]   ;;  %s2207_s2 = inlined_call_operand.hbm [shape: f32[1,256], index: 2, kind: input, shape index: {}]   ;;  %s2208_s3 = inlined_call_operand.hbm [shape: f32[256,1024], index: 3, kind: input, shape index: {}]   ;;  %s2209_s4 = inlined_call_operand.hbm [shape: f32[1,1024], index: 4, kind: input, shape index: {}]   ;;  %s2210_s5 = inlined_call_operand.hbm [shape: f32[1,1024], index: 5, kind: input, shape index: {}]   ;;  %s2211_s6 = inlined_call_operand.<no memory space> [shape: f32[1,1], index: 6, kind: input, shape index: {}]   ;;  %s2212_s7 = inlined_call_operand.hbm [shape: f32[1,1024], index: 7, kind: input, shape index: {}]   ;;  %s2213_s9 = inlined_call_operand.vmem [shape: f32[8,1], index: 9, kind: output, shape index: {0}]   ;;  %s2214_s10 = inlined_call_operand.vmem [shape: f32[8,1], index: 10, kind: output, shape index: {1}]   ;;  %s2215_s8 = inlined_call_operand.<no memory space> [shape: f32[1,1], index: 8, kind: input, shape index: {}]  }
   0x1   :  { %v16_v0 = vstv %s2211_s6  ;;  %v18_v1 = vstv %s2215_s8 }
   0x2   :  { %17 = vst [vmem:[#allocation2] sm:$0x1] %v16_v0  ;;  %19 = vst [vmem:[#allocation3] sm:$0x1] %v18_v1 }
   0x3   :  { %20 = vsyncpa [#allocation5], 0 }
   0x4   :  { %21 = vsyncpa [#allocation7], 0 }
   0x5   :  { %22 = vsyncpa [#allocation10], 0 }
   0x6   :  { %23 = vsyncpa [#allocation13], 0  ;;  %s1970_s17 = smov [#allocation6]   ;;  %s1971_s19 = smov [#allocation9]  }
   0x7   :  { %s44_s18 = sshll.u32 %s1970_s17, 4  ;;  %s66_s20 = sshll.u32 %s1971_s19, 4  ;;  %s45_s18 = int_to_ptr.vmem [resolvable:$true] %s44_s18  ;;  %s67_s20 = int_to_ptr.vmem [resolvable:$true] %s66_s20 }
   0x8   :  { %s1830_s6 = scalar_lea.hbm %s2207_s2, 32 }
   0x9   :  { %p1831_p0 = scmp.ne.s32.totalorder %s2207_s2, %s1830_s6  ;;  %p1834_p1 = scmp.lt.u32.totalorder %s1830_s6, %s2207_s2 }
   0xb   :  { %p1836_p2 = pnand %p1834_p1, %p1831_p0 }
   0xd   :  { %1839 = shalt.err (!%p1836_p2)
}
   0xe   :  { %s1840_s26 = scalar_lea.vmem %s45_s18, 32  ;;  %p1845_p4 = scmp.lt.s32.totalorder %s45_s18, %s45_s18 }
   0xf   :  { %p1841_p3 = scmp.ne.s32.totalorder %s45_s18, %s1840_s26  ;;  %p1846_p5 = scmp.lt.s32.totalorder %s1840_s26, %s1840_s26 }
  0x11   :  { %p1847_p6 = por %p1846_p5, %p1845_p4 }
  0x13   :  { %p1848_p7 = pnand %p1847_p6, %p1841_p3 }
  0x15   :  { %1851 = shalt.err (!%p1848_p7)
}
  0x16   :  { %47 = dma.hbm_to_vmem [thread:$0]  %s2207_s2, 32, %s45_s18, [#allocation7]  }
  0x17   :  { %s1852_s11 = scalar_lea.hbm %s2209_s4, 128 }
  0x18   :  { %p1853_p8 = scmp.ne.s32.totalorder %s2209_s4, %s1852_s11  ;;  %p1856_p9 = scmp.lt.u32.totalorder %s1852_s11, %s2209_s4 }
  0x1a   :  { %p1858_p10 = pnand %p1856_p9, %p1853_p8 }
  0x1c   :  { %1861 = shalt.err (!%p1858_p10)
}
  0x1d   :  { %s1862_s16 = scalar_lea.vmem %s67_s20, 128  ;;  %p1867_p12 = scmp.lt.s32.totalorder %s67_s20, %s67_s20 }
  0x1e   :  { %p1863_p11 = scmp.ne.s32.totalorder %s67_s20, %s1862_s16  ;;  %p1868_p13 = scmp.lt.s32.totalorder %s1862_s16, %s1862_s16 }
  0x20   :  { %p1869_p0 = por %p1868_p13, %p1867_p12 }
  0x22   :  { %p1870_p1 = pnand %p1869_p0, %p1863_p11 }
  0x24   :  { %1873 = shalt.err (!%p1870_p1)
}
  0x25   :  { %69 = dma.hbm_to_vmem [thread:$0]  %s2209_s4, 128, %s67_s20, [#allocation10]  }
  0x26   :  { %s1972_s18 = smov [#allocation4]   ;;  %s1874_s6 = scalar_lea.hbm %s2206_s1, 25088 }
  0x27   :  { %s31_s19 = sshll.u32 %s1972_s18, 4  ;;  %p1875_p2 = scmp.ne.s32.totalorder %s2206_s1, %s1874_s6  ;;  %s32_s19 = int_to_ptr.vmem [resolvable:$true] %s31_s19 }
  0x28   :  { %p1878_p3 = scmp.lt.u32.totalorder %s1874_s6, %s2206_s1 }
  0x2a   :  { %p1880_p4 = pnand %p1878_p3, %p1875_p2 }
  0x2c   :  { %1883 = shalt.err (!%p1880_p4)
}
  0x2d   :  { %s1884_s26 = scalar_lea.vmem %s32_s19, 25088  ;;  %p1889_p6 = scmp.lt.s32.totalorder %s32_s19, %s32_s19 }
  0x2e   :  { %p1885_p5 = scmp.ne.s32.totalorder %s32_s19, %s1884_s26  ;;  %p1890_p7 = scmp.lt.s32.totalorder %s1884_s26, %s1884_s26 }
  0x30   :  { %p1891_p8 = por %p1890_p7, %p1889_p6 }
  0x32   :  { %p1892_p9 = pnand %p1891_p8, %p1885_p5 }
  0x34   :  { %1895 = shalt.err (!%p1892_p9)
}
  0x35   :  { %s1973_s4 = smov 256   ;;  %s1974_s20 = smov 16  }
  0x36   :  { %37 = dma.hbm_to_vmem [thread:$0]  %s2206_s1, 25088, %s32_s19, [#allocation5], %s1973_s4, %s1973_s4, %s1974_s20  }
  0x37   :  { %s1975_s29 = smov [#allocation8]   ;;  %s1896_s13 = scalar_lea.hbm %s2208_s3, 32768 }
  0x38   :  { %s53_s30 = sshll.u32 %s1975_s29, 4  ;;  %p1897_p10 = scmp.ne.s32.totalorder %s2208_s3, %s1896_s13  ;;  %s54_s30 = int_to_ptr.vmem [resolvable:$true] %s53_s30 }
  0x39   :  { %p1900_p11 = scmp.lt.u32.totalorder %s1896_s13, %s2208_s3 }
  0x3b   :  { %p1902_p12 = pnand %p1900_p11, %p1897_p10 }
  0x3d   :  { %1905 = shalt.err (!%p1902_p12)
}
  0x3e   :  { %s1906_s17 = scalar_lea.vmem %s54_s30, 32768  ;;  %p1911_p0 = scmp.lt.s32.totalorder %s54_s30, %s54_s30 }
  0x3f   :  { %p1907_p13 = scmp.ne.s32.totalorder %s54_s30, %s1906_s17  ;;  %p1912_p1 = scmp.lt.s32.totalorder %s1906_s17, %s1906_s17 }
  0x41   :  { %p1913_p2 = por %p1912_p1, %p1911_p0 }
  0x43   :  { %p1914_p3 = pnand %p1913_p2, %p1907_p13 }
  0x45   :  { %1917 = shalt.err (!%p1914_p3)
}
  0x46   :  { %s1976_s1 = smov 1024   ;;  %s1977_s18 = smov 64  }
  0x47   :  { %59 = dma.hbm_to_vmem [thread:$0]  %s2208_s3, 32768, %s54_s30, [#allocation7], %s1976_s1, %s1976_s1, %s1977_s18  }
  0x48   :  { %s1978_s22 = smov [#allocation11]   ;;  %s1979_s23 = smov [#allocation12]  }
  0x49   :  { %s76_s6 = sshll.u32 %s1978_s22, 4  ;;  %s88_s24 = sshll.u32 %s1979_s23, 4  ;;  %s77_s6 = int_to_ptr.vmem [resolvable:$true] %s76_s6  ;;  %s89_s24 = int_to_ptr.vmem [resolvable:$true] %s88_s24 }
  0x4a   :  { %s1918_s26 = scalar_lea.hbm %s2210_s5, 128 }
  0x4b   :  { %p1919_p4 = scmp.ne.s32.totalorder %s2210_s5, %s1918_s26  ;;  %p1922_p5 = scmp.lt.u32.totalorder %s1918_s26, %s2210_s5 }
  0x4d   :  { %p1924_p6 = pnand %p1922_p5, %p1919_p4 }
  0x4f   :  { %1927 = shalt.err (!%p1924_p6)
}
  0x50   :  { %s1928_s3 = scalar_lea.vmem %s77_s6, 128  ;;  %p1933_p8 = scmp.lt.s32.totalorder %s77_s6, %s77_s6 }
  0x51   :  { %p1929_p7 = scmp.ne.s32.totalorder %s77_s6, %s1928_s3  ;;  %p1934_p9 = scmp.lt.s32.totalorder %s1928_s3, %s1928_s3 }
  0x53   :  { %p1935_p10 = por %p1934_p9, %p1933_p8 }
  0x55   :  { %p1936_p11 = pnand %p1935_p10, %p1929_p7 }
  0x57   :  { %1939 = shalt.err (!%p1936_p11)
}
  0x58   :  { %79 = dma.hbm_to_vmem [thread:$0]  %s2210_s5, 128, %s77_s6, [#allocation10]  }
  0x59   :  { %s1940_s13 = scalar_lea.hbm %s2212_s7, 128 }
  0x5a   :  { %p1941_p12 = scmp.ne.s32.totalorder %s2212_s7, %s1940_s13  ;;  %p1944_p13 = scmp.lt.u32.totalorder %s1940_s13, %s2212_s7 }
  0x5c   :  { %p1946_p0 = pnand %p1944_p13, %p1941_p12 }
  0x5e   :  { %1949 = shalt.err (!%p1946_p0)
}
  0x5f   :  { %s1950_s17 = scalar_lea.vmem %s89_s24, 128  ;;  %p1955_p2 = scmp.lt.s32.totalorder %s89_s24, %s89_s24 }
  0x60   :  { %p1951_p1 = scmp.ne.s32.totalorder %s89_s24, %s1950_s17  ;;  %p1956_p3 = scmp.lt.s32.totalorder %s1950_s17, %s1950_s17 }
  0x62   :  { %p1957_p4 = por %p1956_p3, %p1955_p2 }
  0x64   :  { %p1958_p5 = pnand %p1957_p4, %p1951_p1 }
  0x66   :  { %1961 = shalt.err (!%p1958_p5)
}
  0x67   :  { %91 = dma.hbm_to_vmem [thread:$0]  %s2212_s7, 128, %s89_s24, [#allocation13]  }
  0x68   :  { %1962 = dma.done.wait [#allocation5], 25088  }
  0x69   :  { %1963 = vsyncadd [#allocation5], 4294942208 }
  0x6a   :  { %1964 = dma.done.wait [#allocation7], 32800  }
  0x6b   :  { %1965 = vsyncadd [#allocation7], 4294934496 }
  0x6c   :  { %1966 = dma.done.wait [#allocation10], 256  }
  0x6d   :  { %1967 = vsyncadd [#allocation10], 4294967040 }
  0x6e   :  { %1968 = dma.done.wait [#allocation13], 128  }
  0x6f   :  { %1969 = vsyncadd [#allocation13], 4294967168  ;;  %v120_v2 = vld [vmem:[#allocation4 + $0x8] sm:$0xff]  ;;  %v122_v3 = vld [vmem:[#allocation4 + $0x18] sm:$0xff]  ;;  %vm327_vm0 = vcmask 130048   ;;  %vm1274_vm1 = vcmask 7168  }
  0x70   :  { %v119_v4 = vld [vmem:[#allocation4] sm:$0xff]  ;;  %v1359_v5 = vpack.c.bf16 %v122_v3, %v120_v2  ;;  %v121_v6 = vld [vmem:[#allocation4 + $0x10] sm:$0xff]  ;;  %v124_v7 = vld [vmem:[#allocation4 + $0x28] sm:$0xff] }
  0x71   :  { %v126_v8 = vld [vmem:[#allocation4 + $0x38] sm:$0xff]  ;;  %v1361_v9 = vpack.c.bf16 %v121_v6, %v119_v4  ;;  %v123_v11 = vld [vmem:[#allocation4 + $0x20] sm:$0xff]  ;;  %v125_v12 = vld [vmem:[#allocation4 + $0x30] sm:$0xff] }
  0x72   :  { %v1363_v10 = vpack.c.bf16 %v126_v8, %v124_v7  ;;  %v128_v13 = vld [vmem:[#allocation4 + $0x48] sm:$0xff]  ;;  %1360 = vmatprep.subr.bf16.mxu0 %v1359_v5  ;;  %v130_v14 = vld [vmem:[#allocation4 + $0x58] sm:$0xff]  ;;  %v1365_v15 = vpack.c.bf16 %v125_v12, %v123_v11  ;;  %v127_v17 = vld [vmem:[#allocation4 + $0x40] sm:$0xff] }
  0x73   :  { %1362 = vmatpush1.bf16.msra.mxu0 %v1361_v9  ;;  %v1367_v16 = vpack.c.bf16 %v130_v14, %v128_v13  ;;  %v129_v18 = vld [vmem:[#allocation4 + $0x50] sm:$0xff]  ;;  %v132_v19 = vld [vmem:[#allocation4 + $0x68] sm:$0xff]  ;;  %v134_v20 = vld [vmem:[#allocation4 + $0x78] sm:$0xff] }
  0x74   :  { %1364 = vmatprep.subr.bf16.mxu0 %v1363_v10  ;;  %v1369_v21 = vpack.c.bf16 %v129_v18, %v127_v17  ;;  %v1371_v22 = vpack.c.bf16 %v134_v20, %v132_v19  ;;  %v131_v23 = vld [vmem:[#allocation4 + $0x60] sm:$0xff]  ;;  %v133_v24 = vld [vmem:[#allocation4 + $0x70] sm:$0xff]  ;;  %v136_v25 = vld [vmem:[#allocation4 + $0x88] sm:$0xff] }
  0x75   :  { %v138_v26 = vld [vmem:[#allocation4 + $0x98] sm:$0xff]  ;;  %v1373_v27 = vpack.c.bf16 %v133_v24, %v131_v23  ;;  %v135_v29 = vld [vmem:[#allocation4 + $0x80] sm:$0xff]  ;;  %v137_v30 = vld [vmem:[#allocation4 + $0x90] sm:$0xff] }
  0x76   :  { %v1375_v28 = vpack.c.bf16 %v138_v26, %v136_v25  ;;  %v140_v31 = vld [vmem:[#allocation4 + $0xa8] sm:$0xff]  ;;  %v142_v32 = vld [vmem:[#allocation4 + $0xb8] sm:$0xff]  ;;  %v1377_v33 = vpack.c.bf16 %v137_v30, %v135_v29  ;;  %v139_v35 = vld [vmem:[#allocation4 + $0xa0] sm:$0xff] }
  0x77   :  { %1366 = vmatpush1.bf16.msra.mxu0 %v1365_v15  ;;  %v1379_v34 = vpack.c.bf16 %v142_v32, %v140_v31  ;;  %v141_v36 = vld [vmem:[#allocation4 + $0xb0] sm:$0xff]  ;;  %v144_v37 = vld [vmem:[#allocation4 + $0xc8] sm:$0xff]  ;;  %v146_v38 = vld [vmem:[#allocation4 + $0xd8] sm:$0xff] }
  0x78   :  { %1368 = vmatprep.subr.bf16.mxu0 %v1367_v16  ;;  %v1381_v39 = vpack.c.bf16 %v141_v36, %v139_v35  ;;  %v1383_v40 = vpack.c.bf16 %v146_v38, %v144_v37  ;;  %v143_v41 = vld [vmem:[#allocation4 + $0xc0] sm:$0xff]  ;;  %v145_v42 = vld [vmem:[#allocation4 + $0xd0] sm:$0xff]  ;;  %v148_v44 = vld [vmem:[#allocation4 + $0xe8] sm:$0xff] }
  0x79   :  { %v113_v43 = vld [vmem:[%s2205_s0 + $0x8] sm:$0xff]  ;;  %v150_v45 = vld [vmem:[#allocation4 + $0xf8] sm:$0xff]  ;;  %v1385_v46 = vpack.c.bf16 %v145_v42, %v143_v41  ;;  %v149_v49 = vld [vmem:[#allocation4 + $0xf0] sm:$0xff] }
  0x7a   :  { %395 = vmatprep.mubr.f32.mxu0 %v113_v43  ;;  %v1387_v47 = vpack.c.bf16 %v150_v45, %v148_v44  ;;  %v147_v48 = vld [vmem:[#allocation4 + $0xe0] sm:$0xff]  ;;  %v152_v50 = vld [vmem:[#allocation4 + $0x108] sm:$0xff]  ;;  %v154_v51 = vld [vmem:[#allocation4 + $0x118] sm:$0xff] }
  0x7b   :  { %1370 = vmatpush1.bf16.msra.mxu0 %v1369_v21  ;;  %v1389_v52 = vpack.c.bf16 %v149_v49, %v147_v48  ;;  %v1391_v53 = vpack.c.bf16 %v154_v51, %v152_v50  ;;  %v151_v54 = vld [vmem:[#allocation4 + $0x100] sm:$0xff]  ;;  %v153_v55 = vld [vmem:[#allocation4 + $0x110] sm:$0xff]  ;;  %v156_v56 = vld [vmem:[#allocation4 + $0x128] sm:$0xff] }
  0x7c   :  { %1372 = vmatprep.subr.bf16.mxu0 %v1371_v22  ;;  %v158_v57 = vld [vmem:[#allocation4 + $0x138] sm:$0xff]  ;;  %v1393_v58 = vpack.c.bf16 %v153_v55, %v151_v54  ;;  %v155_v60 = vld [vmem:[#allocation4 + $0x120] sm:$0xff]  ;;  %v157_v61 = vld [vmem:[#allocation4 + $0x130] sm:$0xff] }
  0x7d   :  { %v1395_v59 = vpack.c.bf16 %v158_v57, %v156_v56  ;;  %v160_v62 = vld [vmem:[#allocation4 + $0x148] sm:$0xff]  ;;  %v162_v63 = vld [vmem:[#allocation4 + $0x158] sm:$0xff]  ;;  %v1397_v0 = vpack.c.bf16 %v157_v61, %v155_v60  ;;  %v159_v2 = vld [vmem:[#allocation4 + $0x140] sm:$0xff] }
  0x7e   :  { %v1399_v1 = vpack.c.bf16 %v162_v63, %v160_v62  ;;  %v161_v3 = vld [vmem:[#allocation4 + $0x150] sm:$0xff]  ;;  %v164_v4 = vld [vmem:[#allocation4 + $0x168] sm:$0xff]  ;;  %v166_v5 = vld [vmem:[#allocation4 + $0x178] sm:$0xff] }
  0x7f   :  { %1374 = vmatpush1.bf16.msra.mxu0 %v1373_v27  ;;  %v1401_v6 = vpack.c.bf16 %v161_v3, %v159_v2  ;;  %v1403_v7 = vpack.c.bf16 %v166_v5, %v164_v4  ;;  %v163_v8 = vld [vmem:[#allocation4 + $0x160] sm:$0xff]  ;;  %v165_v9 = vld [vmem:[#allocation4 + $0x170] sm:$0xff]  ;;  %v168_v10 = vld [vmem:[#allocation4 + $0x188] sm:$0xff] }
  0x80   :  { %1376 = vmatprep.subr.bf16.mxu0 %v1375_v28  ;;  %v170_v11 = vld [vmem:[#allocation4 + $0x198] sm:$0xff]  ;;  %v1405_v12 = vpack.c.bf16 %v165_v9, %v163_v8  ;;  %v167_v14 = vld [vmem:[#allocation4 + $0x180] sm:$0xff]  ;;  %v169_v15 = vld [vmem:[#allocation4 + $0x190] sm:$0xff] }
  0x81   :  { %v1407_v13 = vpack.c.bf16 %v170_v11, %v168_v10  ;;  %v172_v16 = vld [vmem:[#allocation4 + $0x1a8] sm:$0xff]  ;;  %v174_v17 = vld [vmem:[#allocation4 + $0x1b8] sm:$0xff]  ;;  %v1409_v18 = vpack.c.bf16 %v169_v15, %v167_v14  ;;  %v171_v20 = vld [vmem:[#allocation4 + $0x1a0] sm:$0xff] }
  0x82   :  { %v1411_v19 = vpack.c.bf16 %v174_v17, %v172_v16  ;;  %v173_v21 = vld [vmem:[#allocation4 + $0x1b0] sm:$0xff]  ;;  %v176_v22 = vld [vmem:[#allocation4 + $0x1c8] sm:$0xff]  ;;  %v178_v23 = vld [vmem:[#allocation4 + $0x1d8] sm:$0xff] }
  0x83   :  { %1378 = vmatpush1.bf16.msra.mxu0 %v1377_v33  ;;  %v1413_v24 = vpack.c.bf16 %v173_v21, %v171_v20  ;;  %v1415_v25 = vpack.c.bf16 %v178_v23, %v176_v22  ;;  %v175_v26 = vld [vmem:[#allocation4 + $0x1c0] sm:$0xff]  ;;  %v177_v27 = vld [vmem:[#allocation4 + $0x1d0] sm:$0xff]  ;;  %v180_v28 = vld [vmem:[#allocation4 + $0x1e8] sm:$0xff] }
  0x84   :  { %1380 = vmatprep.subr.bf16.mxu0 %v1379_v34  ;;  %v182_v29 = vld [vmem:[#allocation4 + $0x1f8] sm:$0xff]  ;;  %v1417_v30 = vpack.c.bf16 %v177_v27, %v175_v26  ;;  %v179_v32 = vld [vmem:[#allocation4 + $0x1e0] sm:$0xff]  ;;  %v181_v33 = vld [vmem:[#allocation4 + $0x1f0] sm:$0xff] }
  0x85   :  { %v1419_v31 = vpack.c.bf16 %v182_v29, %v180_v28  ;;  %v184_v34 = vld [vmem:[#allocation4 + $0x208] sm:$0xff]  ;;  %v186_v35 = vld [vmem:[#allocation4 + $0x218] sm:$0xff]  ;;  %v1421_v36 = vpack.c.bf16 %v181_v33, %v179_v32  ;;  %v183_v38 = vld [vmem:[#allocation4 + $0x200] sm:$0xff] }
  0x86   :  { %v1423_v37 = vpack.c.bf16 %v186_v35, %v184_v34  ;;  %v190_v41 = vld [vmem:[#allocation4 + $0x238] sm:$0xff]  ;;  %v187_v45 = vld [vmem:[#allocation4 + $0x220] sm:$0xff]  ;;  %v192_v48 = vld [vmem:[#allocation4 + $0x248] sm:$0xff] }
  0x87   :  { %1382 = vmatpush1.bf16.msra.mxu0 %v1381_v39  ;;  %v185_v39 = vld [vmem:[#allocation4 + $0x210] sm:$0xff]  ;;  %v112_v42 = vld [vmem:[%s2205_s0] sm:$0xff]  ;;  %v196_v54 = vld [vmem:[#allocation4 + $0x268] sm:$0xff] }
  0x88   :  { %1384 = vmatprep.subr.bf16.mxu0 %v1383_v40  ;;  %v188_v40 = vld [vmem:[#allocation4 + $0x228] sm:$0xff]  ;;  %v1425_v43 = vpack.c.bf16 %v185_v39, %v183_v38  ;;  %v194_v49 = vld [vmem:[#allocation4 + $0x258] sm:$0xff]  ;;  %v199_v62 = vld [vmem:[#allocation4 + $0x280] sm:$0xff] }
  0x89   :  { %v1427_v44 = vpack.c.bf16 %v190_v41, %v188_v40  ;;  %v1431_v51 = vpack.c.bf16 %v194_v49, %v192_v48  ;;  %v198_v55 = vld [vmem:[#allocation4 + $0x278] sm:$0xff]  ;;  %v200_v60 = vld [vmem:[#allocation4 + $0x288] sm:$0xff]  ;;  %v201_v63 = vld [vmem:[#allocation4 + $0x290] sm:$0xff] }
  0x8a   :  { %v1435_v57 = vpack.c.bf16 %v198_v55, %v196_v54  ;;  %v202_v61 = vld [vmem:[#allocation4 + $0x298] sm:$0xff]  ;;  %v617_v2 = vld [vmem:[#allocation8] sm:$0xff]  ;;  %v658_v16 = vld [vmem:[#allocation8 + $0x148] sm:$0xff] }
  0x8b   :  { %1386 = vmatpush1.bf16.msra.mxu0 %v1385_v46  ;;  %v189_v46 = vld [vmem:[#allocation4 + $0x230] sm:$0xff]  ;;  %v625_v5 = vld [vmem:[#allocation8 + $0x40] sm:$0xff]  ;;  %v1439_v8 = vpack.c.bf16 %v202_v61, %v200_v60  ;;  %v206_v15 = vld [vmem:[#allocation4 + $0x2b8] sm:$0xff] }
  0x8c   :  { %1388 = vmatprep.subr.bf16.mxu0 %v1387_v47  ;;  %v115_v47 = vld [vmem:[%s2205_s0 + $0x18] sm:$0xff]  ;;  %v1429_v50 = vpack.c.bf16 %v189_v46, %v187_v45  ;;  %v1557_v9 = vpack.c.bf16 %v625_v5, %v617_v2  ;;  %v633_v11 = vld [vmem:[#allocation8 + $0x80] sm:$0xff]  ;;  %v674_v26 = vld [vmem:[#allocation8 + $0x1c8] sm:$0xff] }
  0x8d   :  { %v204_v14 = vld [vmem:[#allocation4 + $0x2a8] sm:$0xff]  ;;  %v210_v28 = vld [vmem:[#allocation4 + $0x2d8] sm:$0xff]  ;;  %v213_v48 = vld [vmem:[#allocation4 + $0x2f0] sm:$0xff] }
  0x8e   :  { %v649_v21 = vld [vmem:[#allocation8 + $0x100] sm:$0xff]  ;;  %v1443_v23 = vpack.c.bf16 %v206_v15, %v204_v14  ;;  %v690_v38 = vld [vmem:[#allocation8 + $0x248] sm:$0xff]  ;;  %v214_v40 = vld [vmem:[#allocation4 + $0x2f8] sm:$0xff] }
  0x8f   :  { %1390 = vmatpush1.bf16.msra.mxu0 %v1389_v52  ;;  %v191_v52 = vld [vmem:[#allocation4 + $0x240] sm:$0xff]  ;;  %v208_v27 = vld [vmem:[#allocation4 + $0x2c8] sm:$0xff]  ;;  %v217_v60 = vld [vmem:[#allocation4 + $0x310] sm:$0xff] }
  0x90   :  { %1392 = vmatprep.subr.bf16.mxu0 %v1391_v53  ;;  %v193_v53 = vld [vmem:[#allocation4 + $0x250] sm:$0xff]  ;;  %v657_v22 = vld [vmem:[#allocation8 + $0x140] sm:$0xff]  ;;  %v1447_v35 = vpack.c.bf16 %v210_v28, %v208_v27 }
  0x91   :  { %v1433_v56 = vpack.c.bf16 %v193_v53, %v191_v52  ;;  %v1565_v29 = vpack.c.bf16 %v657_v22, %v649_v21  ;;  %v665_v33 = vld [vmem:[#allocation8 + $0x180] sm:$0xff]  ;;  %v698_v49 = vld [vmem:[#allocation8 + $0x288] sm:$0xff]  ;;  %v218_v52 = vld [vmem:[#allocation4 + $0x318] sm:$0xff] }
  0x92   :  { %v673_v34 = vld [vmem:[#allocation8 + $0x1c0] sm:$0xff]  ;;  %v714_v61 = vld [vmem:[#allocation8 + $0x308] sm:$0xff] }
  0x93   :  { %1394 = vmatpush1.bf16.msra.mxu0 %v1393_v58  ;;  %v195_v58 = vld [vmem:[#allocation4 + $0x260] sm:$0xff]  ;;  %v212_v39 = vld [vmem:[#allocation4 + $0x2e8] sm:$0xff]  ;;  %v1569_v41 = vpack.c.bf16 %v673_v34, %v665_v33 }
  0x94   :  { %1396 = vmatprep.subr.bf16.mxu0 %v1395_v59  ;;  %v197_v59 = vld [vmem:[#allocation4 + $0x270] sm:$0xff]  ;;  %v681_v45 = vld [vmem:[#allocation8 + $0x200] sm:$0xff] }
  0x95   :  { %v1437_v3 = vpack.c.bf16 %v197_v59, %v195_v58  ;;  %v689_v46 = vld [vmem:[#allocation8 + $0x240] sm:$0xff]  ;;  %v746_v21 = vld [vmem:[#allocation8 + $0x408] sm:$0xff] }
  0x96   :  { %v1573_v53 = vpack.c.bf16 %v689_v46, %v681_v45  ;;  %v215_v55 = vld [vmem:[#allocation4 + $0x300] sm:$0xff]  ;;  %v754_v22 = vld [vmem:[#allocation8 + $0x448] sm:$0xff] }
  0x97   :  { %1398 = vmatpush1.bf16.msra.mxu0 %v1397_v0  ;;  %v618_v0 = vld [vmem:[#allocation8 + $0x8] sm:$0xff]  ;;  %v705_v58 = vld [vmem:[#allocation8 + $0x2c0] sm:$0xff]  ;;  %v1457_v2 = vpack.c.bf16 %v217_v60, %v215_v55  ;;  %v1587_v28 = vpack.c.bf16 %v754_v22, %v746_v21  ;;  %v242_v60 = vld [vmem:[#allocation4 + $0x3d8] sm:$0xff] }
  0x98   :  { %1400 = vmatprep.subr.bf16.mxu0 %v1399_v1  ;;  %v626_v1 = vld [vmem:[#allocation8 + $0x48] sm:$0xff]  ;;  %v713_v5 = vld [vmem:[#allocation8 + $0x300] sm:$0xff] }
  0x99   :  { %v1555_v4 = vpack.c.bf16 %v626_v1, %v618_v0  ;;  %v222_v0 = vld [vmem:[#allocation4 + $0x338] sm:$0xff]  ;;  %v223_v15 = vld [vmem:[#allocation4 + $0x340] sm:$0xff]  ;;  %v762_v33 = vld [vmem:[#allocation8 + $0x488] sm:$0xff] }
  0x9a   :  { %v227_v27 = vld [vmem:[#allocation4 + $0x360] sm:$0xff]  ;;  %v770_v34 = vld [vmem:[#allocation8 + $0x4c8] sm:$0xff] }
  0x9b   :  { %1402 = vmatpush1.bf16.msra.mxu0 %v1401_v6  ;;  %v634_v6 = vld [vmem:[#allocation8 + $0x88] sm:$0xff]  ;;  %1556 = vmatprep.subr.bf16.mxu1 %v1555_v4 }
  0x9c   :  { %1404 = vmatprep.subr.bf16.mxu0 %v1403_v7  ;;  %v642_v7 = vld [vmem:[#allocation8 + $0xc8] sm:$0xff]  ;;  %1558 = vmatpush1.bf16.msra.mxu1 %v1557_v9 }
  0x9d   :  { %v1559_v10 = vpack.c.bf16 %v642_v7, %v634_v6  ;;  %v721_v6 = vld [vmem:[#allocation8 + $0x340] sm:$0xff]  ;;  %v730_v9 = vld [vmem:[#allocation8 + $0x388] sm:$0xff] }
  0x9e   :  { %v778_v45 = vld [vmem:[#allocation8 + $0x508] sm:$0xff] }
  0x9f   :  { %1406 = vmatpush1.bf16.msra.mxu0 %v1405_v12  ;;  %v641_v12 = vld [vmem:[#allocation8 + $0xc0] sm:$0xff]  ;;  %1560 = vmatprep.subr.bf16.mxu1 %v1559_v10  ;;  %v738_v10 = vld [vmem:[#allocation8 + $0x3c8] sm:$0xff] }
  0xa0   :  { %1408 = vmatprep.subr.bf16.mxu0 %v1407_v13  ;;  %v650_v13 = vld [vmem:[#allocation8 + $0x108] sm:$0xff]  ;;  %v1561_v17 = vpack.c.bf16 %v641_v12, %v633_v11  ;;  %v226_v12 = vld [vmem:[#allocation4 + $0x358] sm:$0xff] }
  0xa1   :  { %v1563_v20 = vpack.c.bf16 %v658_v16, %v650_v13  ;;  %v224_v11 = vld [vmem:[#allocation4 + $0x348] sm:$0xff]  ;;  %v1581_v13 = vpack.c.bf16 %v721_v6, %v713_v5  ;;  %v1583_v16 = vpack.c.bf16 %v738_v10, %v730_v9 }
  0xa2   :  { %1562 = vmatpush1.bf16.msra.mxu1 %v1561_v17  ;;  %v729_v17 = vld [vmem:[#allocation8 + $0x380] sm:$0xff]  ;;  %v786_v46 = vld [vmem:[#allocation8 + $0x548] sm:$0xff] }
  0xa3   :  { %1410 = vmatpush1.bf16.msra.mxu0 %v1409_v18  ;;  %v1441_v18 = vpack.c.bf16 %v201_v63, %v199_v62  ;;  %1564 = vmatprep.subr.bf16.mxu1 %v1563_v20  ;;  %v722_v62 = vld [vmem:[#allocation8 + $0x348] sm:$0xff] }
  0xa4   :  { %1412 = vmatprep.subr.bf16.mxu0 %v1411_v19  ;;  %v203_v19 = vld [vmem:[#allocation4 + $0x2a0] sm:$0xff]  ;;  %v220_v63 = vld [vmem:[#allocation4 + $0x328] sm:$0xff]  ;;  %v1579_v4 = vpack.c.bf16 %v722_v62, %v714_v61  ;;  %v225_v20 = vld [vmem:[#allocation4 + $0x350] sm:$0xff] }
  0xa5   :  { %v1459_v7 = vpack.c.bf16 %v222_v0, %v220_v63  ;;  %v239_v63 = vld [vmem:[#allocation4 + $0x3c0] sm:$0xff]  ;;  %v810_v5 = vld [vmem:[#allocation8 + $0x608] sm:$0xff] }
  0xa6   :  { %1566 = vmatpush1.bf16.msra.mxu1 %v1565_v29  ;;  %v745_v29 = vld [vmem:[#allocation8 + $0x400] sm:$0xff]  ;;  %v818_v6 = vld [vmem:[#allocation8 + $0x648] sm:$0xff] }
  0xa7   :  { %1414 = vmatpush1.bf16.msra.mxu0 %v1413_v24  ;;  %v205_v24 = vld [vmem:[#allocation4 + $0x2b0] sm:$0xff] }
  0xa8   :  { %1416 = vmatprep.subr.bf16.mxu0 %v1415_v25  ;;  %v666_v25 = vld [vmem:[#allocation8 + $0x188] sm:$0xff] }
  0xa9   :  { %v1567_v32 = vpack.c.bf16 %v674_v26, %v666_v25  ;;  %v1465_v26 = vpack.c.bf16 %v225_v20, %v223_v15  ;;  %v250_v20 = vld [vmem:[#allocation4 + $0x418] sm:$0xff] }
  0xab   :  { %1418 = vmatpush1.bf16.msra.mxu0 %v1417_v30  ;;  %v1445_v30 = vpack.c.bf16 %v205_v24, %v203_v19  ;;  %1568 = vmatprep.subr.bf16.mxu1 %v1567_v32  ;;  %v1463_v19 = vpack.c.bf16 %v226_v12, %v224_v11  ;;  %v230_v24 = vld [vmem:[#allocation4 + $0x378] sm:$0xff]  ;;  %v229_v32 = vld [vmem:[#allocation4 + $0x370] sm:$0xff]  ;;  %v243_v11 = vld [vmem:[#allocation4 + $0x3e0] sm:$0xff]  ;;  %v1603_v12 = vpack.c.bf16 %v818_v6, %v810_v5 }
  0xac   :  { %1420 = vmatprep.subr.bf16.mxu0 %v1419_v31  ;;  %v207_v31 = vld [vmem:[#allocation4 + $0x2c0] sm:$0xff]  ;;  %1570 = vmatpush1.bf16.msra.mxu1 %v1569_v41  ;;  %v274_v5 = vld [vmem:[#allocation4 + $0x4d8] sm:$0xff] }
  0xad   :  { %v761_v41 = vld [vmem:[#allocation8 + $0x480] sm:$0xff] }
  0xaf   :  { %1422 = vmatpush1.bf16.msra.mxu0 %v1421_v36  ;;  %v209_v36 = vld [vmem:[#allocation4 + $0x2d0] sm:$0xff] }
  0xb0   :  { %1424 = vmatprep.subr.bf16.mxu0 %v1423_v37  ;;  %v682_v37 = vld [vmem:[#allocation8 + $0x208] sm:$0xff] }
  0xb2   :  { %396 = vmatmul.mubr.f32.vlgmr.msra.gmra.mrb[0].mxu0 %v112_v42  ;;  %v1449_v42 = vpack.c.bf16 %v209_v36, %v207_v31  ;;  %v234_v36 = vld [vmem:[#allocation4 + $0x398] sm:$0xff] }
  0xb3   :  { %1426 = vmatpush1.bf16.msra.mxu0 %v1425_v43  ;;  %466 = vmatprep.mubr.f32.mxu0 %v115_v47  ;;  %v211_v43 = vld [vmem:[#allocation4 + $0x2e0] sm:$0xff]  ;;  %v1451_v47 = vpack.c.bf16 %v214_v40, %v212_v39  ;;  %v1591_v40 = vpack.c.bf16 %v770_v34, %v762_v33  ;;  %v114_v34 = vld [vmem:[%s2205_s0 + $0x10] sm:$0xff] }
  0xb4   :  { %1428 = vmatprep.subr.bf16.mxu0 %v1427_v44  ;;  %v1571_v44 = vpack.c.bf16 %v690_v38, %v682_v37  ;;  %v1453_v54 = vpack.c.bf16 %v213_v48, %v211_v43  ;;  %v1469_v38 = vpack.c.bf16 %v229_v32, %v227_v27  ;;  %v231_v39 = vld [vmem:[#allocation4 + $0x380] sm:$0xff]  ;;  %v238_v48 = vld [vmem:[#allocation4 + $0x3b8] sm:$0xff]  ;;  %v850_v32 = vld [vmem:[#allocation8 + $0x748] sm:$0xff] }
  0xb5   :  { %v247_v27 = vld [vmem:[#allocation4 + $0x400] sm:$0xff] }
  0xb6   :  { %1572 = vmatprep.subr.bf16.mxu1 %v1571_v44  ;;  %v233_v44 = vld [vmem:[#allocation4 + $0x390] sm:$0xff] }
  0xb7   :  { %1430 = vmatpush1.bf16.msra.mxu0 %v1429_v50  ;;  %v706_v50 = vld [vmem:[#allocation8 + $0x2c8] sm:$0xff]  ;;  %1574 = vmatpush1.bf16.msra.mxu1 %v1573_v53  ;;  %v777_v53 = vld [vmem:[#allocation8 + $0x500] sm:$0xff] }
  0xb8   :  { %1432 = vmatprep.subr.bf16.mxu0 %v1431_v51  ;;  %v216_v51 = vld [vmem:[#allocation4 + $0x308] sm:$0xff] }
  0xb9   :  { %v1455_v59 = vpack.c.bf16 %v218_v52, %v216_v51  ;;  %v235_v51 = vld [vmem:[#allocation4 + $0x3a0] sm:$0xff]  ;;  %v1595_v52 = vpack.c.bf16 %v786_v46, %v778_v45 }
  0xbb   :  { %1434 = vmatpush1.bf16.msra.mxu0 %v1433_v56  ;;  %v1575_v56 = vpack.c.bf16 %v706_v50, %v698_v49  ;;  %v1473_v50 = vpack.c.bf16 %v233_v44, %v231_v39  ;;  %v251_v39 = vld [vmem:[#allocation4 + $0x420] sm:$0xff]  ;;  %v258_v44 = vld [vmem:[#allocation4 + $0x458] sm:$0xff] }
  0xbc   :  { %1436 = vmatprep.subr.bf16.mxu0 %v1435_v57  ;;  %v697_v57 = vld [vmem:[#allocation8 + $0x280] sm:$0xff] }
  0xbd   :  { %v1577_v1 = vpack.c.bf16 %v705_v58, %v697_v57  ;;  %1576 = vmatprep.subr.bf16.mxu1 %v1575_v56  ;;  %v237_v56 = vld [vmem:[#allocation4 + $0x3b0] sm:$0xff] }
  0xbe   :  { %v794_v57 = vld [vmem:[#allocation8 + $0x588] sm:$0xff]  ;;  %v1477_v62 = vpack.c.bf16 %v237_v56, %v235_v51  ;;  %v262_v51 = vld [vmem:[#allocation4 + $0x478] sm:$0xff] }
  0xbf   :  { %1438 = vmatpush1.bf16.msra.mxu0 %v1437_v3  ;;  %v219_v3 = vld [vmem:[#allocation4 + $0x320] sm:$0xff]  ;;  %1578 = vmatpush1.bf16.msra.mxu1 %v1577_v1  ;;  %v802_v58 = vld [vmem:[#allocation8 + $0x5c8] sm:$0xff] }
  0xc0   :  { %1440 = vmatprep.subr.bf16.mxu0 %v1439_v8  ;;  %v221_v8 = vld [vmem:[#allocation4 + $0x330] sm:$0xff]  ;;  %1580 = vmatprep.subr.bf16.mxu1 %v1579_v4  ;;  %v1599_v0 = vpack.c.bf16 %v802_v58, %v794_v57  ;;  %v793_v1 = vld [vmem:[#allocation8 + $0x580] sm:$0xff]  ;;  %v266_v57 = vld [vmem:[#allocation4 + $0x498] sm:$0xff] }
  0xc1   :  { %v1461_v14 = vpack.c.bf16 %v221_v8, %v219_v3  ;;  %v241_v4 = vld [vmem:[#allocation4 + $0x3d0] sm:$0xff]  ;;  %v246_v8 = vld [vmem:[#allocation4 + $0x3f8] sm:$0xff]  ;;  %v264_v56 = vld [vmem:[#allocation4 + $0x488] sm:$0xff] }
  0xc2   :  { %v1481_v10 = vpack.c.bf16 %v241_v4, %v239_v63  ;;  %v270_v63 = vld [vmem:[#allocation4 + $0x4b8] sm:$0xff]  ;;  %v272_v4 = vld [vmem:[#allocation4 + $0x4c8] sm:$0xff] }
  0xc3   :  { %1442 = vmatpush1.bf16.msra.mxu0 %v1441_v18  ;;  %v737_v18 = vld [vmem:[#allocation8 + $0x3c0] sm:$0xff]  ;;  %1582 = vmatpush1.bf16.msra.mxu1 %v1581_v13 }
  0xc4   :  { %1444 = vmatprep.subr.bf16.mxu0 %v1443_v23  ;;  %v228_v23 = vld [vmem:[#allocation4 + $0x368] sm:$0xff]  ;;  %v1585_v25 = vpack.c.bf16 %v737_v18, %v729_v17  ;;  %1584 = vmatprep.subr.bf16.mxu1 %v1583_v16  ;;  %v245_v16 = vld [vmem:[#allocation4 + $0x3f0] sm:$0xff] }
  0xc5   :  { %v1467_v31 = vpack.c.bf16 %v230_v24, %v228_v23  ;;  %v809_v13 = vld [vmem:[#allocation8 + $0x600] sm:$0xff]  ;;  %v826_v17 = vld [vmem:[#allocation8 + $0x688] sm:$0xff]  ;;  %v1485_v22 = vpack.c.bf16 %v245_v16, %v243_v11  ;;  %v278_v11 = vld [vmem:[#allocation4 + $0x4f8] sm:$0xff] }
  0xc6   :  { %v834_v18 = vld [vmem:[#allocation8 + $0x6c8] sm:$0xff]  ;;  %v825_v24 = vld [vmem:[#allocation8 + $0x680] sm:$0xff] }
  0xc7   :  { %1446 = vmatpush1.bf16.msra.mxu0 %v1445_v30  ;;  %v753_v30 = vld [vmem:[#allocation8 + $0x440] sm:$0xff]  ;;  %1586 = vmatpush1.bf16.msra.mxu1 %v1585_v25  ;;  %v1607_v23 = vpack.c.bf16 %v834_v18, %v826_v17  ;;  %v282_v17 = vld [vmem:[#allocation4 + $0x518] sm:$0xff] }
  0xc8   :  { %1448 = vmatprep.subr.bf16.mxu0 %v1447_v35  ;;  %v232_v35 = vld [vmem:[#allocation4 + $0x388] sm:$0xff]  ;;  %v1589_v37 = vpack.c.bf16 %v753_v30, %v745_v29  ;;  %1588 = vmatprep.subr.bf16.mxu1 %v1587_v28  ;;  %v249_v28 = vld [vmem:[#allocation4 + $0x410] sm:$0xff]  ;;  %v254_v30 = vld [vmem:[#allocation4 + $0x438] sm:$0xff] }
  0xc9   :  { %v1471_v43 = vpack.c.bf16 %v234_v36, %v232_v35  ;;  %v833_v25 = vld [vmem:[#allocation8 + $0x6c0] sm:$0xff]  ;;  %v1489_v35 = vpack.c.bf16 %v249_v28, %v247_v27  ;;  %v285_v27 = vld [vmem:[#allocation4 + $0x530] sm:$0xff] }
  0xca   :  { %v252_v29 = vld [vmem:[#allocation4 + $0x428] sm:$0xff]  ;;  %v1609_v33 = vpack.c.bf16 %v833_v25, %v825_v24 }
  0xcb   :  { %1450 = vmatpush1.bf16.msra.mxu0 %v1449_v42  ;;  %v769_v42 = vld [vmem:[#allocation8 + $0x4c0] sm:$0xff]  ;;  %1590 = vmatpush1.bf16.msra.mxu1 %v1589_v37 }
  0xcc   :  { %1452 = vmatprep.subr.bf16.mxu0 %v1451_v47  ;;  %v236_v47 = vld [vmem:[#allocation4 + $0x3a8] sm:$0xff]  ;;  %v1593_v49 = vpack.c.bf16 %v769_v42, %v761_v41  ;;  %1592 = vmatprep.subr.bf16.mxu1 %v1591_v40  ;;  %v253_v40 = vld [vmem:[#allocation4 + $0x430] sm:$0xff] }
  0xcd   :  { %v1475_v55 = vpack.c.bf16 %v238_v48, %v236_v47  ;;  %v841_v36 = vld [vmem:[#allocation8 + $0x700] sm:$0xff]  ;;  %v1493_v46 = vpack.c.bf16 %v253_v40, %v251_v39  ;;  %v293_v39 = vld [vmem:[#allocation4 + $0x570] sm:$0xff] }
  0xce   :  { %v849_v37 = vld [vmem:[#allocation8 + $0x740] sm:$0xff] }
  0xcf   :  { %1454 = vmatpush1.bf16.msra.mxu0 %v1453_v54  ;;  %v785_v54 = vld [vmem:[#allocation8 + $0x540] sm:$0xff]  ;;  %1594 = vmatpush1.bf16.msra.mxu1 %v1593_v49  ;;  %v1613_v45 = vpack.c.bf16 %v849_v37, %v841_v36  ;;  %v257_v49 = vld [vmem:[#allocation4 + $0x450] sm:$0xff] }
  0xd0   :  { %1456 = vmatprep.subr.bf16.mxu0 %v1455_v59  ;;  %v240_v59 = vld [vmem:[#allocation4 + $0x3c8] sm:$0xff]  ;;  %v1597_v61 = vpack.c.bf16 %v785_v54, %v777_v53  ;;  %1596 = vmatprep.subr.bf16.mxu1 %v1595_v52  ;;  %v255_v48 = vld [vmem:[#allocation4 + $0x440] sm:$0xff] }
  0xd1   :  { %v1479_v3 = vpack.c.bf16 %v242_v60, %v240_v59  ;;  %v117_v41 = vld [vmem:[%s2205_s0 + $0x28] sm:$0xff]  ;;  %v1497_v52 = vpack.c.bf16 %v257_v49, %v255_v48  ;;  %v1503_v59 = vpack.c.bf16 %v266_v57, %v264_v56  ;;  %v305_v57 = vld [vmem:[#allocation4 + $0x5d0] sm:$0xff] }
  0xd2   :  { %v259_v54 = vld [vmem:[#allocation4 + $0x460] sm:$0xff]  ;;  %v280_v16 = vld [vmem:[#allocation4 + $0x508] sm:$0xff] }
  0xd3   :  { %1458 = vmatpush1.bf16.msra.mxu0 %v1457_v2  ;;  %v801_v2 = vld [vmem:[#allocation8 + $0x5c0] sm:$0xff]  ;;  %1598 = vmatpush1.bf16.msra.mxu1 %v1597_v61  ;;  %v265_v61 = vld [vmem:[#allocation4 + $0x490] sm:$0xff] }
  0xd4   :  { %1460 = vmatprep.subr.bf16.mxu0 %v1459_v7  ;;  %v244_v7 = vld [vmem:[#allocation4 + $0x3e8] sm:$0xff]  ;;  %v1601_v9 = vpack.c.bf16 %v801_v2, %v793_v1  ;;  %1600 = vmatprep.subr.bf16.mxu1 %v1599_v0  ;;  %v263_v60 = vld [vmem:[#allocation4 + $0x480] sm:$0xff] }
  0xd5   :  { %v1483_v15 = vpack.c.bf16 %v246_v8, %v244_v7  ;;  %v1505_v0 = vpack.c.bf16 %v265_v61, %v263_v60  ;;  %v267_v2 = vld [vmem:[#allocation4 + $0x4a0] sm:$0xff]  ;;  %v1511_v7 = vpack.c.bf16 %v274_v5, %v272_v4  ;;  %v288_v28 = vld [vmem:[#allocation4 + $0x548] sm:$0xff]  ;;  %v313_v5 = vld [vmem:[#allocation4 + $0x610] sm:$0xff] }
  0xd6   :  { %v271_v8 = vld [vmem:[#allocation4 + $0x4c0] sm:$0xff]  ;;  %v296_v40 = vld [vmem:[#allocation4 + $0x588] sm:$0xff] }
  0xd7   :  { %1462 = vmatpush1.bf16.msra.mxu0 %v1461_v14  ;;  %v817_v14 = vld [vmem:[#allocation8 + $0x640] sm:$0xff]  ;;  %1602 = vmatpush1.bf16.msra.mxu1 %v1601_v9  ;;  %v273_v9 = vld [vmem:[#allocation4 + $0x4d0] sm:$0xff] }
  0xd8   :  { %1464 = vmatprep.subr.bf16.mxu0 %v1463_v19  ;;  %v248_v19 = vld [vmem:[#allocation4 + $0x408] sm:$0xff]  ;;  %v1605_v21 = vpack.c.bf16 %v817_v14, %v809_v13  ;;  %1604 = vmatprep.subr.bf16.mxu1 %v1603_v12  ;;  %v1513_v12 = vpack.c.bf16 %v273_v9, %v271_v8  ;;  %v275_v14 = vld [vmem:[#allocation4 + $0x4e0] sm:$0xff]  ;;  %v1980_v8 = vmov 0.0  }
  0xd9   :  { %v303_v56 = vld [vmem:[#allocation4 + $0x5c0] sm:$0xff]  ;;  %v118_v9 = vld [vmem:[%s2205_s0 + $0x30] sm:$0xff] }
  0xda   :  { %v1545_v60 = vpack.c.bf16 %v305_v57, %v303_v56  ;;  %v311_v4 = vld [vmem:[#allocation4 + $0x600] sm:$0xff]  ;;  %v683_v56 = vld [vmem:[#allocation8 + $0x210] sm:$0xff] }
  0xdb   :  { %1466 = vmatpush1.bf16.msra.mxu0 %v1465_v26  ;;  %v1487_v26 = vpack.c.bf16 %v250_v20, %v248_v19  ;;  %1606 = vmatpush1.bf16.msra.mxu1 %v1605_v21  ;;  %v1519_v19 = vpack.c.bf16 %v282_v17, %v280_v16  ;;  %v279_v20 = vld [vmem:[#allocation4 + $0x500] sm:$0xff]  ;;  %v281_v21 = vld [vmem:[#allocation4 + $0x510] sm:$0xff] }
  0xdc   :  { %1468 = vmatprep.subr.bf16.mxu0 %v1467_v31  ;;  %v842_v31 = vld [vmem:[#allocation8 + $0x708] sm:$0xff]  ;;  %1608 = vmatprep.subr.bf16.mxu1 %v1607_v23  ;;  %v286_v23 = vld [vmem:[#allocation4 + $0x538] sm:$0xff]  ;;  %v1521_v24 = vpack.c.bf16 %v281_v21, %v279_v20 }
  0xdd   :  { %v1611_v42 = vpack.c.bf16 %v850_v32, %v842_v31  ;;  %v287_v32 = vld [vmem:[#allocation4 + $0x540] sm:$0xff]  ;;  %v691_v57 = vld [vmem:[#allocation8 + $0x250] sm:$0xff] }
  0xde   :  { %v620_v16 = vld [vmem:[#allocation8 + $0x18] sm:$0xff] }
  0xdf   :  { %1470 = vmatpush1.bf16.msra.mxu0 %v1469_v38  ;;  %v1491_v38 = vpack.c.bf16 %v254_v30, %v252_v29  ;;  %1610 = vmatpush1.bf16.msra.mxu1 %v1609_v33  ;;  %v290_v29 = vld [vmem:[#allocation4 + $0x558] sm:$0xff]  ;;  %v289_v33 = vld [vmem:[#allocation4 + $0x550] sm:$0xff] }
  0xe0   :  { %1472 = vmatprep.subr.bf16.mxu0 %v1471_v43  ;;  %v256_v43 = vld [vmem:[#allocation4 + $0x448] sm:$0xff]  ;;  %1612 = vmatprep.subr.bf16.mxu1 %v1611_v42  ;;  %v1527_v31 = vpack.c.bf16 %v290_v29, %v288_v28  ;;  %v1529_v36 = vpack.c.bf16 %v289_v33, %v287_v32  ;;  %v628_v17 = vld [vmem:[#allocation8 + $0x58] sm:$0xff]  ;;  %v619_v29 = vld [vmem:[#allocation8 + $0x10] sm:$0xff] }
  0xe1   :  { %v1495_v47 = vpack.c.bf16 %v258_v44, %v256_v43  ;;  %v295_v44 = vld [vmem:[#allocation4 + $0x580] sm:$0xff] }
  0xe2   :  { %v636_v32 = vld [vmem:[#allocation8 + $0x98] sm:$0xff] }
  0xe3   :  { %1474 = vmatpush1.bf16.msra.mxu0 %v1473_v50  ;;  %v260_v50 = vld [vmem:[#allocation4 + $0x468] sm:$0xff]  ;;  %1614 = vmatpush1.bf16.msra.mxu1 %v1613_v45  ;;  %v297_v45 = vld [vmem:[#allocation4 + $0x590] sm:$0xff]  ;;  %v644_v33 = vld [vmem:[#allocation8 + $0xd8] sm:$0xff] }
  0xe4   :  { %1476 = vmatprep.subr.bf16.mxu0 %v1475_v55  ;;  %v1499_v53 = vpack.c.bf16 %v262_v51, %v260_v50  ;;  %v261_v55 = vld [vmem:[#allocation4 + $0x470] sm:$0xff]  ;;  %v1537_v48 = vpack.c.bf16 %v297_v45, %v295_v44  ;;  %v299_v50 = vld [vmem:[#allocation4 + $0x5a0] sm:$0xff] }
  0xe5   :  { %v1501_v58 = vpack.c.bf16 %v261_v55, %v259_v54  ;;  %v301_v51 = vld [vmem:[#allocation4 + $0x5b0] sm:$0xff] }
  0xe6   :  { %v1541_v54 = vpack.c.bf16 %v301_v51, %v299_v50  ;;  %v651_v44 = vld [vmem:[#allocation8 + $0x110] sm:$0xff] }
  0xe7   :  { %1478 = vmatpush1.bf16.msra.mxu0 %v1477_v62  ;;  %v268_v62 = vld [vmem:[#allocation4 + $0x4a8] sm:$0xff]  ;;  %v659_v45 = vld [vmem:[#allocation8 + $0x150] sm:$0xff] }
  0xe8   :  { %1480 = vmatprep.subr.bf16.mxu0 %v1479_v3  ;;  %v1507_v1 = vpack.c.bf16 %v270_v63, %v268_v62  ;;  %v269_v3 = vld [vmem:[#allocation4 + $0x4b0] sm:$0xff]  ;;  %v307_v62 = vld [vmem:[#allocation4 + $0x5e0] sm:$0xff] }
  0xe9   :  { %v1509_v6 = vpack.c.bf16 %v269_v3, %v267_v2  ;;  %v309_v63 = vld [vmem:[#allocation4 + $0x5f0] sm:$0xff] }
  0xea   :  { %v1549_v2 = vpack.c.bf16 %v309_v63, %v307_v62  ;;  %v667_v50 = vld [vmem:[#allocation8 + $0x190] sm:$0xff] }
  0xeb   :  { %1482 = vmatpush1.bf16.msra.mxu0 %v1481_v10  ;;  %v276_v10 = vld [vmem:[#allocation4 + $0x4e8] sm:$0xff]  ;;  %v675_v51 = vld [vmem:[#allocation8 + $0x1d0] sm:$0xff] }
  0xec   :  { %1484 = vmatprep.subr.bf16.mxu0 %v1483_v15  ;;  %v1515_v13 = vpack.c.bf16 %v278_v11, %v276_v10  ;;  %v277_v15 = vld [vmem:[#allocation4 + $0x4f0] sm:$0xff] }
  0xed   :  { %v1517_v18 = vpack.c.bf16 %v277_v15, %v275_v14  ;;  %v858_v10 = vld [vmem:[#allocation8 + $0x788] sm:$0xff]  ;;  %v865_v14 = vld [vmem:[#allocation8 + $0x7c0] sm:$0xff]  ;;  %v699_v62 = vld [vmem:[#allocation8 + $0x290] sm:$0xff] }
  0xee   :  { %v866_v11 = vld [vmem:[#allocation8 + $0x7c8] sm:$0xff]  ;;  %v707_v63 = vld [vmem:[#allocation8 + $0x2d0] sm:$0xff] }
  0xef   :  { %1486 = vmatpush1.bf16.msra.mxu0 %v1485_v22  ;;  %v284_v22 = vld [vmem:[#allocation4 + $0x528] sm:$0xff] }
  0xf0   :  { %1488 = vmatprep.subr.bf16.mxu0 %v1487_v26  ;;  %v1523_v25 = vpack.c.bf16 %v286_v23, %v284_v22  ;;  %v283_v26 = vld [vmem:[#allocation4 + $0x520] sm:$0xff] }
  0xf1   :  { %v1525_v30 = vpack.c.bf16 %v285_v27, %v283_v26  ;;  %v315_v22 = vld [vmem:[#allocation6] sm:$0x3] }
  0xf2   :  { %467 = vmatmul.mubr.f32.vlgmr.msra.gmra.mrb[0].mxu0 %v114_v34  ;;  %v292_v34 = vld [vmem:[#allocation4 + $0x568] sm:$0xff] }
  0xf3   :  { %1490 = vmatpush1.bf16.msra.mxu0 %v1489_v35  ;;  %537 = vmatprep.mubr.f32.mxu0 %v117_v41  ;;  %v294_v35 = vld [vmem:[#allocation4 + $0x578] sm:$0xff] }
  0xf4   :  { %1492 = vmatprep.subr.bf16.mxu0 %v1491_v38  ;;  %v1531_v37 = vpack.c.bf16 %v294_v35, %v292_v34  ;;  %v291_v38 = vld [vmem:[#allocation4 + $0x560] sm:$0xff]  ;;  %v298_v41 = vld [vmem:[#allocation4 + $0x598] sm:$0xff] }
  0xf5   :  { %v1533_v42 = vpack.c.bf16 %v293_v39, %v291_v38  ;;  %v1535_v43 = vpack.c.bf16 %v298_v41, %v296_v40  ;;  %v635_v38 = vld [vmem:[#allocation8 + $0x90] sm:$0xff]  ;;  %v652_v40 = vld [vmem:[#allocation8 + $0x118] sm:$0xff] }
  0xf6   :  { %v643_v39 = vld [vmem:[#allocation8 + $0xd0] sm:$0xff]  ;;  %v660_v41 = vld [vmem:[#allocation8 + $0x158] sm:$0xff] }
  0xf7   :  { %1494 = vmatpush1.bf16.msra.mxu0 %v1493_v46  ;;  %v300_v46 = vld [vmem:[#allocation4 + $0x5a8] sm:$0xff] }
  0xf8   :  { %1496 = vmatprep.subr.bf16.mxu0 %v1495_v47  ;;  %v302_v47 = vld [vmem:[#allocation4 + $0x5b8] sm:$0xff] }
  0xf9   :  { %v1539_v49 = vpack.c.bf16 %v302_v47, %v300_v46  ;;  %v668_v46 = vld [vmem:[#allocation8 + $0x198] sm:$0xff] }
  0xfa   :  { %v676_v47 = vld [vmem:[#allocation8 + $0x1d8] sm:$0xff] }
  0xfb   :  { %1498 = vmatpush1.bf16.msra.mxu0 %v1497_v52  ;;  %v304_v52 = vld [vmem:[#allocation4 + $0x5c8] sm:$0xff] }
  0xfc   :  { %1500 = vmatprep.subr.bf16.mxu0 %v1499_v53  ;;  %v306_v53 = vld [vmem:[#allocation4 + $0x5d8] sm:$0xff] }
  0xfd   :  { %v1543_v55 = vpack.c.bf16 %v306_v53, %v304_v52  ;;  %v684_v52 = vld [vmem:[#allocation8 + $0x218] sm:$0xff] }
  0xfe   :  { %v692_v53 = vld [vmem:[#allocation8 + $0x258] sm:$0xff] }
  0xff   :  { %1502 = vmatpush1.bf16.msra.mxu0 %v1501_v58  ;;  %v308_v58 = vld [vmem:[#allocation4 + $0x5e8] sm:$0xff] }
 0x100   :  { %1504 = vmatprep.subr.bf16.mxu0 %v1503_v59  ;;  %v310_v59 = vld [vmem:[#allocation4 + $0x5f8] sm:$0xff] }
 0x101   :  { %v1547_v61 = vpack.c.bf16 %v310_v59, %v308_v58  ;;  %v700_v58 = vld [vmem:[#allocation8 + $0x298] sm:$0xff] }
 0x102   :  { %v708_v59 = vld [vmem:[#allocation8 + $0x2d8] sm:$0xff] }
 0x103   :  { %1506 = vmatpush1.bf16.msra.mxu0 %v1505_v0  ;;  %v312_v0 = vld [vmem:[#allocation4 + $0x608] sm:$0xff] }
 0x104   :  { %1508 = vmatprep.subr.bf16.mxu0 %v1507_v1  ;;  %v314_v1 = vld [vmem:[#allocation4 + $0x618] sm:$0xff] }
 0x105   :  { %v1551_v3 = vpack.c.bf16 %v314_v1, %v312_v0  ;;  %v716_v0 = vld [vmem:[#allocation8 + $0x318] sm:$0xff] }
 0x106   :  { %v724_v1 = vld [vmem:[#allocation8 + $0x358] sm:$0xff] }
 0x107   :  { %1510 = vmatpush1.bf16.msra.mxu0 %v1509_v6  ;;  %v116_v6 = vld [vmem:[%s2205_s0 + $0x20] sm:$0xff] }
 0x108   :  { %1512 = vmatprep.subr.bf16.mxu0 %v1511_v7  ;;  %v1553_v7 = vpack.c.bf16 %v313_v5, %v311_v4  ;;  %v715_v4 = vld [vmem:[#allocation8 + $0x310] sm:$0xff] }
 0x109   :  { %v723_v5 = vld [vmem:[#allocation8 + $0x350] sm:$0xff] }
 0x10b   :  { %1514 = vmatpush1.bf16.msra.mxu0 %v1513_v12  ;;  %v1615_v12 = vpack.c.bf16 %v866_v11, %v858_v10  ;;  %v731_v10 = vld [vmem:[#allocation8 + $0x390] sm:$0xff] }
 0x10c   :  { %1516 = vmatprep.subr.bf16.mxu0 %v1515_v13  ;;  %v857_v13 = vld [vmem:[#allocation8 + $0x780] sm:$0xff]  ;;  %v739_v11 = vld [vmem:[#allocation8 + $0x3d0] sm:$0xff] }
 0x10d   :  { %v1617_v15 = vpack.c.bf16 %v865_v14, %v857_v13  ;;  %1616 = vmatprep.subr.bf16.mxu1 %v1615_v12  ;;  %v748_v12 = vld [vmem:[#allocation8 + $0x418] sm:$0xff]  ;;  %v1649_v14 = vpack.c.bf16 %v739_v11, %v731_v10  ;;  %v637_v11 = vld [vmem:[#allocation8 + $0xa0] sm:$0xff] }
 0x10e   :  { %v756_v13 = vld [vmem:[#allocation8 + $0x458] sm:$0xff] }
 0x10f   :  { %1518 = vmatpush1.bf16.msra.mxu0 %v1517_v18  ;;  %1618 = vmatpush1.bf16.msra.mxu1 %v1617_v15  ;;  %v1619_v18 = vpack.c.bf16 %v628_v17, %v620_v16  ;;  %v1651_v15 = vpack.c.bf16 %v756_v13, %v748_v12  ;;  %v747_v16 = vld [vmem:[#allocation8 + $0x410] sm:$0xff]  ;;  %v645_v12 = vld [vmem:[#allocation8 + $0xe0] sm:$0xff]  ;;  %v654_v13 = vld [vmem:[#allocation8 + $0x128] sm:$0xff] }
 0x110   :  { %1520 = vmatprep.subr.bf16.mxu0 %v1519_v19  ;;  %v317_v19 = vlaneseq  ;;  %v755_v17 = vld [vmem:[#allocation8 + $0x450] sm:$0xff] }
 0x111   :  { %1620 = vmatprep.subr.bf16.mxu1 %v1619_v18  ;;  %v764_v18 = vld [vmem:[#allocation8 + $0x498] sm:$0xff] }
 0x112   :  { %v2135_v20 = vshrl.u32 %v317_v19, 7  ;;  %v772_v19 = vld [vmem:[#allocation8 + $0x4d8] sm:$0xff] }
 0x113   :  { %1522 = vmatpush1.bf16.msra.mxu0 %v1521_v24 }
 0x114   :  { %1524 = vmatprep.subr.bf16.mxu0 %v1523_v25  ;;  %v2138_v21 = vsub.s32 0, %v2135_v20  ;;  %v2141_v23 = vsub.s32 1, %v2135_v20 }
 0x116   :  { %v320_v24 = vrot.slane %v315_v22, %v2138_v21  ;;  %v324_v25 = vrot.slane %v315_v22, %v2141_v23  ;;  %v1653_v22 = vpack.c.bf16 %v755_v17, %v747_v16  ;;  %v653_v17 = vld [vmem:[#allocation8 + $0x120] sm:$0xff] }
 0x117   :  { %1526 = vmatpush1.bf16.msra.mxu0 %v1525_v30  ;;  %v627_v30 = vld [vmem:[#allocation8 + $0x50] sm:$0xff] }
 0x118   :  { %1528 = vmatprep.subr.bf16.mxu0 %v1527_v31  ;;  %v1621_v35 = vpack.c.bf16 %v627_v30, %v619_v29 }
 0x11b   :  { %1530 = vmatpush1.bf16.msra.mxu0 %v1529_v36 }
 0x11c   :  { %1532 = vmatprep.subr.bf16.mxu0 %v1531_v37  ;;  %v1623_v37 = vpack.c.bf16 %v644_v33, %v636_v32  ;;  %v787_v32 = vld [vmem:[#allocation8 + $0x550] sm:$0xff]  ;;  %v796_v33 = vld [vmem:[#allocation8 + $0x598] sm:$0xff] }
 0x11f   :  { %1534 = vmatpush1.bf16.msra.mxu0 %v1533_v42  ;;  %v1625_v42 = vpack.c.bf16 %v643_v39, %v635_v38  ;;  %v795_v39 = vld [vmem:[#allocation8 + $0x590] sm:$0xff] }
 0x120   :  { %1536 = vmatprep.subr.bf16.mxu0 %v1535_v43  ;;  %v1627_v43 = vpack.c.bf16 %v660_v41, %v652_v40  ;;  %v803_v40 = vld [vmem:[#allocation8 + $0x5d0] sm:$0xff]  ;;  %v812_v41 = vld [vmem:[#allocation8 + $0x618] sm:$0xff] }
 0x123   :  { %1538 = vmatpush1.bf16.msra.mxu0 %v1537_v48  ;;  %v1629_v48 = vpack.c.bf16 %v659_v45, %v651_v44  ;;  %v811_v45 = vld [vmem:[#allocation8 + $0x610] sm:$0xff] }
 0x124   :  { %1540 = vmatprep.subr.bf16.mxu0 %v1539_v49  ;;  %v1631_v49 = vpack.c.bf16 %v676_v47, %v668_v46  ;;  %v819_v46 = vld [vmem:[#allocation8 + $0x650] sm:$0xff]  ;;  %v828_v47 = vld [vmem:[#allocation8 + $0x698] sm:$0xff] }
 0x127   :  { %1542 = vmatpush1.bf16.msra.mxu0 %v1541_v54  ;;  %v1633_v54 = vpack.c.bf16 %v675_v51, %v667_v50  ;;  %v827_v51 = vld [vmem:[#allocation8 + $0x690] sm:$0xff] }
 0x128   :  { %1544 = vmatprep.subr.bf16.mxu0 %v1543_v55  ;;  %v1635_v55 = vpack.c.bf16 %v692_v53, %v684_v52  ;;  %v835_v52 = vld [vmem:[#allocation8 + $0x6d0] sm:$0xff]  ;;  %v844_v53 = vld [vmem:[#allocation8 + $0x718] sm:$0xff] }
 0x12b   :  { %1546 = vmatpush1.bf16.msra.mxu0 %v1545_v60  ;;  %v1637_v60 = vpack.c.bf16 %v691_v57, %v683_v56  ;;  %v843_v57 = vld [vmem:[#allocation8 + $0x710] sm:$0xff] }
 0x12c   :  { %1548 = vmatprep.subr.bf16.mxu0 %v1547_v61  ;;  %v1639_v61 = vpack.c.bf16 %v708_v59, %v700_v58  ;;  %v851_v58 = vld [vmem:[#allocation8 + $0x750] sm:$0xff]  ;;  %v860_v59 = vld [vmem:[#allocation8 + $0x798] sm:$0xff] }
 0x12f   :  { %1550 = vmatpush1.bf16.msra.mxu0 %v1549_v2  ;;  %v1641_v2 = vpack.c.bf16 %v707_v63, %v699_v62  ;;  %v859_v63 = vld [vmem:[#allocation8 + $0x790] sm:$0xff] }
 0x130   :  { %1552 = vmatprep.subr.bf16.mxu0 %v1551_v3  ;;  %v1643_v3 = vpack.c.bf16 %v724_v1, %v716_v0  ;;  %v867_v0 = vld [vmem:[#allocation8 + $0x7d0] sm:$0xff]  ;;  %v622_v1 = vld [vmem:[#allocation8 + $0x28] sm:$0xff] }
 0x132   :  { %538 = vmatmul.mubr.f32.vlgmr.msra.gmra.mrb[0].mxu0 %v116_v6  ;;  %v732_v6 = vld [vmem:[#allocation8 + $0x398] sm:$0xff] }
 0x133   :  { %1554 = vmatpush1.bf16.msra.mxu0 %v1553_v7  ;;  %608 = vmatprep.mubr.f32.mxu0 %v1980_v8  ;;  %v740_v7 = vld [vmem:[#allocation8 + $0x3d8] sm:$0xff]  ;;  %v1645_v8 = vpack.c.bf16 %v723_v5, %v715_v4  ;;  %v621_v5 = vld [vmem:[#allocation8 + $0x20] sm:$0xff] }
 0x13a   :  { %1356 = vmatmul.mubr.msk.f32.vlgmr.msra.gmra.mrb[0].mxu0 %vm327_vm0, %v118_v9  ;;  %v1647_v9 = vpack.c.bf16 %v740_v7, %v732_v6  ;;  %v629_v6 = vld [vmem:[#allocation8 + $0x60] sm:$0xff]  ;;  %v638_v7 = vld [vmem:[#allocation8 + $0xa8] sm:$0xff] }
 0x20d   :  { %v610_v26 = vpop.f32.mrb[0].mxu0 }
 0x20e   :  { %v1811_v27 = vadd.f32 %v610_v26, %v320_v24  ;;  %v612_v28 = vpop.f32.mrb[1].mxu0  ;;  %v1655_v24 = vpack.c.bf16 %v772_v19, %v764_v18  ;;  %v771_v26 = vld [vmem:[#allocation8 + $0x4d0] sm:$0xff]  ;;  %v661_v18 = vld [vmem:[#allocation8 + $0x160] sm:$0xff]  ;;  %v670_v19 = vld [vmem:[#allocation8 + $0x1a8] sm:$0xff] }
 0x20f   :  { %v1812_v31 = vadd.f32 %v612_v28, %v324_v25  ;;  %v763_v25 = vld [vmem:[#allocation8 + $0x490] sm:$0xff]  ;;  %v788_v28 = vld [vmem:[#allocation8 + $0x558] sm:$0xff] }
 0x210   :  { %v2147_v36 = vmax.f32 %v1811_v27, 0.0  ;;  %v780_v27 = vld [vmem:[#allocation8 + $0x518] sm:$0xff]  ;;  %v1657_v29 = vpack.c.bf16 %v771_v26, %v763_v25  ;;  %v669_v26 = vld [vmem:[#allocation8 + $0x1a0] sm:$0xff] }
 0x211   :  { %v2145_v34 = vmax.f32 %v1812_v31, 0.0  ;;  %v1659_v30 = vpack.c.bf16 %v788_v28, %v780_v27  ;;  %v779_v31 = vld [vmem:[#allocation8 + $0x510] sm:$0xff]  ;;  %v677_v27 = vld [vmem:[#allocation8 + $0x1e0] sm:$0xff]  ;;  %v686_v28 = vld [vmem:[#allocation8 + $0x228] sm:$0xff] }
 0x213   :  { %979 = vmatprep.mubr.f32.mxu1 %v2145_v34 }
 0x214   :  { %980 = vmatmul.mubr.f32.vlgmr.msra.gmra.mrb[0].mxu1 %v2147_v36 }
 0x215   :  { %1622 = vmatpush1.bf16.msra.mxu1 %v1621_v35  ;;  %1050 = vmatprep.mubr.f32.mxu1 %v2145_v34  ;;  %v804_v35 = vld [vmem:[#allocation8 + $0x5d8] sm:$0xff] }
 0x216   :  { %1624 = vmatprep.subr.bf16.mxu1 %v1623_v37  ;;  %v1661_v37 = vpack.c.bf16 %v787_v32, %v779_v31  ;;  %v1663_v38 = vpack.c.bf16 %v804_v35, %v796_v33  ;;  %v685_v32 = vld [vmem:[#allocation8 + $0x220] sm:$0xff]  ;;  %v702_v35 = vld [vmem:[#allocation8 + $0x2a8] sm:$0xff] }
 0x217   :  { %v693_v33 = vld [vmem:[#allocation8 + $0x260] sm:$0xff] }
 0x219   :  { %1626 = vmatpush1.bf16.msra.mxu1 %v1625_v42  ;;  %v820_v42 = vld [vmem:[#allocation8 + $0x658] sm:$0xff] }
 0x21a   :  { %1628 = vmatprep.subr.bf16.mxu1 %v1627_v43  ;;  %v1665_v43 = vpack.c.bf16 %v803_v40, %v795_v39  ;;  %v1667_v44 = vpack.c.bf16 %v820_v42, %v812_v41  ;;  %v701_v40 = vld [vmem:[#allocation8 + $0x2a0] sm:$0xff]  ;;  %v718_v42 = vld [vmem:[#allocation8 + $0x328] sm:$0xff] }
 0x21b   :  { %v709_v41 = vld [vmem:[#allocation8 + $0x2e0] sm:$0xff] }
 0x21d   :  { %1630 = vmatpush1.bf16.msra.mxu1 %v1629_v48  ;;  %v836_v48 = vld [vmem:[#allocation8 + $0x6d8] sm:$0xff] }
 0x21e   :  { %1632 = vmatprep.subr.bf16.mxu1 %v1631_v49  ;;  %v1669_v49 = vpack.c.bf16 %v819_v46, %v811_v45  ;;  %v1671_v50 = vpack.c.bf16 %v836_v48, %v828_v47  ;;  %v717_v46 = vld [vmem:[#allocation8 + $0x320] sm:$0xff]  ;;  %v734_v48 = vld [vmem:[#allocation8 + $0x3a8] sm:$0xff] }
 0x21f   :  { %v725_v47 = vld [vmem:[#allocation8 + $0x360] sm:$0xff] }
 0x221   :  { %1634 = vmatpush1.bf16.msra.mxu1 %v1633_v54  ;;  %v852_v54 = vld [vmem:[#allocation8 + $0x758] sm:$0xff] }
 0x222   :  { %1636 = vmatprep.subr.bf16.mxu1 %v1635_v55  ;;  %v1673_v55 = vpack.c.bf16 %v835_v52, %v827_v51  ;;  %v1675_v56 = vpack.c.bf16 %v852_v54, %v844_v53  ;;  %v733_v52 = vld [vmem:[#allocation8 + $0x3a0] sm:$0xff]  ;;  %v750_v54 = vld [vmem:[#allocation8 + $0x428] sm:$0xff] }
 0x223   :  { %v741_v53 = vld [vmem:[#allocation8 + $0x3e0] sm:$0xff] }
 0x225   :  { %1638 = vmatpush1.bf16.msra.mxu1 %v1637_v60  ;;  %v868_v60 = vld [vmem:[#allocation8 + $0x7d8] sm:$0xff] }
 0x226   :  { %1640 = vmatprep.subr.bf16.mxu1 %v1639_v61  ;;  %v1677_v61 = vpack.c.bf16 %v851_v58, %v843_v57  ;;  %v1679_v62 = vpack.c.bf16 %v868_v60, %v860_v59  ;;  %v749_v58 = vld [vmem:[#allocation8 + $0x420] sm:$0xff]  ;;  %v766_v60 = vld [vmem:[#allocation8 + $0x4a8] sm:$0xff] }
 0x227   :  { %v757_v59 = vld [vmem:[#allocation8 + $0x460] sm:$0xff] }
 0x229   :  { %1642 = vmatpush1.bf16.msra.mxu1 %v1641_v2  ;;  %v630_v2 = vld [vmem:[#allocation8 + $0x68] sm:$0xff] }
 0x22a   :  { %1644 = vmatprep.subr.bf16.mxu1 %v1643_v3  ;;  %v1681_v3 = vpack.c.bf16 %v867_v0, %v859_v63  ;;  %v1683_v4 = vpack.c.bf16 %v630_v2, %v622_v1  ;;  %v765_v0 = vld [vmem:[#allocation8 + $0x4a0] sm:$0xff]  ;;  %v782_v2 = vld [vmem:[#allocation8 + $0x528] sm:$0xff] }
 0x22b   :  { %v773_v1 = vld [vmem:[#allocation8 + $0x4e0] sm:$0xff] }
 0x22d   :  { %1646 = vmatpush1.bf16.msra.mxu1 %v1645_v8  ;;  %v646_v8 = vld [vmem:[#allocation8 + $0xe8] sm:$0xff] }
 0x22e   :  { %1648 = vmatprep.subr.bf16.mxu1 %v1647_v9  ;;  %v1685_v9 = vpack.c.bf16 %v629_v6, %v621_v5  ;;  %v1687_v10 = vpack.c.bf16 %v646_v8, %v638_v7  ;;  %v781_v6 = vld [vmem:[#allocation8 + $0x520] sm:$0xff]  ;;  %v798_v8 = vld [vmem:[#allocation8 + $0x5a8] sm:$0xff] }
 0x22f   :  { %v789_v7 = vld [vmem:[#allocation8 + $0x560] sm:$0xff] }
 0x231   :  { %1650 = vmatpush1.bf16.msra.mxu1 %v1649_v14  ;;  %v662_v14 = vld [vmem:[#allocation8 + $0x168] sm:$0xff] }
 0x232   :  { %1652 = vmatprep.subr.bf16.mxu1 %v1651_v15  ;;  %v1689_v15 = vpack.c.bf16 %v645_v12, %v637_v11  ;;  %v1691_v16 = vpack.c.bf16 %v662_v14, %v654_v13  ;;  %v797_v12 = vld [vmem:[#allocation8 + $0x5a0] sm:$0xff]  ;;  %v814_v14 = vld [vmem:[#allocation8 + $0x628] sm:$0xff] }
 0x233   :  { %v805_v13 = vld [vmem:[#allocation8 + $0x5e0] sm:$0xff] }
 0x235   :  { %1654 = vmatpush1.bf16.msra.mxu1 %v1653_v22  ;;  %v678_v22 = vld [vmem:[#allocation8 + $0x1e8] sm:$0xff] }
 0x236   :  { %1656 = vmatprep.subr.bf16.mxu1 %v1655_v24  ;;  %v1693_v24 = vpack.c.bf16 %v661_v18, %v653_v17  ;;  %v1695_v25 = vpack.c.bf16 %v678_v22, %v670_v19  ;;  %v813_v18 = vld [vmem:[#allocation8 + $0x620] sm:$0xff]  ;;  %v830_v22 = vld [vmem:[#allocation8 + $0x6a8] sm:$0xff] }
 0x237   :  { %v821_v19 = vld [vmem:[#allocation8 + $0x660] sm:$0xff] }
 0x239   :  { %1658 = vmatpush1.bf16.msra.mxu1 %v1657_v29  ;;  %v694_v29 = vld [vmem:[#allocation8 + $0x268] sm:$0xff] }
 0x23a   :  { %1660 = vmatprep.subr.bf16.mxu1 %v1659_v30  ;;  %v1697_v30 = vpack.c.bf16 %v677_v27, %v669_v26  ;;  %v1699_v31 = vpack.c.bf16 %v694_v29, %v686_v28  ;;  %v829_v27 = vld [vmem:[#allocation8 + $0x6a0] sm:$0xff]  ;;  %v846_v29 = vld [vmem:[#allocation8 + $0x728] sm:$0xff] }
 0x23b   :  { %v837_v28 = vld [vmem:[#allocation8 + $0x6e0] sm:$0xff] }
 0x23d   :  { %1662 = vmatpush1.bf16.msra.mxu1 %v1661_v37  ;;  %v710_v37 = vld [vmem:[#allocation8 + $0x2e8] sm:$0xff] }
 0x23e   :  { %1664 = vmatprep.subr.bf16.mxu1 %v1663_v38  ;;  %v1701_v38 = vpack.c.bf16 %v693_v33, %v685_v32  ;;  %v1703_v39 = vpack.c.bf16 %v710_v37, %v702_v35  ;;  %v845_v33 = vld [vmem:[#allocation8 + $0x720] sm:$0xff]  ;;  %v862_v37 = vld [vmem:[#allocation8 + $0x7a8] sm:$0xff] }
 0x23f   :  { %v853_v35 = vld [vmem:[#allocation8 + $0x760] sm:$0xff] }
 0x241   :  { %1666 = vmatpush1.bf16.msra.mxu1 %v1665_v43  ;;  %v726_v43 = vld [vmem:[#allocation8 + $0x368] sm:$0xff] }
 0x242   :  { %1668 = vmatprep.subr.bf16.mxu1 %v1667_v44  ;;  %v1705_v44 = vpack.c.bf16 %v709_v41, %v701_v40  ;;  %v1707_v45 = vpack.c.bf16 %v726_v43, %v718_v42  ;;  %v861_v41 = vld [vmem:[#allocation8 + $0x7a0] sm:$0xff]  ;;  %v624_v43 = vld [vmem:[#allocation8 + $0x38] sm:$0xff] }
 0x243   :  { %v869_v42 = vld [vmem:[#allocation8 + $0x7e0] sm:$0xff] }
 0x245   :  { %1670 = vmatpush1.bf16.msra.mxu1 %v1669_v49  ;;  %v742_v49 = vld [vmem:[#allocation8 + $0x3e8] sm:$0xff] }
 0x246   :  { %1672 = vmatprep.subr.bf16.mxu1 %v1671_v50  ;;  %v1709_v50 = vpack.c.bf16 %v725_v47, %v717_v46  ;;  %v1711_v51 = vpack.c.bf16 %v742_v49, %v734_v48  ;;  %v623_v47 = vld [vmem:[#allocation8 + $0x30] sm:$0xff]  ;;  %v640_v49 = vld [vmem:[#allocation8 + $0xb8] sm:$0xff] }
 0x247   :  { %v631_v48 = vld [vmem:[#allocation8 + $0x70] sm:$0xff] }
 0x249   :  { %1674 = vmatpush1.bf16.msra.mxu1 %v1673_v55  ;;  %v758_v55 = vld [vmem:[#allocation8 + $0x468] sm:$0xff] }
 0x24a   :  { %1676 = vmatprep.subr.bf16.mxu1 %v1675_v56  ;;  %v1713_v56 = vpack.c.bf16 %v741_v53, %v733_v52  ;;  %v1715_v57 = vpack.c.bf16 %v758_v55, %v750_v54  ;;  %v639_v53 = vld [vmem:[#allocation8 + $0xb0] sm:$0xff]  ;;  %v656_v55 = vld [vmem:[#allocation8 + $0x138] sm:$0xff] }
 0x24b   :  { %v647_v54 = vld [vmem:[#allocation8 + $0xf0] sm:$0xff] }
 0x24d   :  { %1678 = vmatpush1.bf16.msra.mxu1 %v1677_v61  ;;  %v774_v61 = vld [vmem:[#allocation8 + $0x4e8] sm:$0xff] }
 0x24e   :  { %1680 = vmatprep.subr.bf16.mxu1 %v1679_v62  ;;  %v1717_v62 = vpack.c.bf16 %v757_v59, %v749_v58  ;;  %v1719_v63 = vpack.c.bf16 %v774_v61, %v766_v60  ;;  %v655_v59 = vld [vmem:[#allocation8 + $0x130] sm:$0xff]  ;;  %v672_v61 = vld [vmem:[#allocation8 + $0x1b8] sm:$0xff] }
 0x24f   :  { %v663_v60 = vld [vmem:[#allocation8 + $0x170] sm:$0xff] }
 0x251   :  { %1682 = vmatpush1.bf16.msra.mxu1 %v1681_v3  ;;  %v790_v3 = vld [vmem:[#allocation8 + $0x568] sm:$0xff] }
 0x252   :  { %1684 = vmatprep.subr.bf16.mxu1 %v1683_v4  ;;  %v1721_v4 = vpack.c.bf16 %v773_v1, %v765_v0  ;;  %v1723_v5 = vpack.c.bf16 %v790_v3, %v782_v2  ;;  %v671_v1 = vld [vmem:[#allocation8 + $0x1b0] sm:$0xff]  ;;  %v688_v3 = vld [vmem:[#allocation8 + $0x238] sm:$0xff] }
 0x253   :  { %v679_v2 = vld [vmem:[#allocation8 + $0x1f0] sm:$0xff] }
 0x254   :  { %1051 = vmatmul.mubr.f32.vlgmr.msra.gmra.mrb[2].mxu1 %v2147_v36 }
 0x255   :  { %1686 = vmatpush1.bf16.msra.mxu1 %v1685_v9  ;;  %1121 = vmatprep.mubr.f32.mxu1 %v2145_v34  ;;  %v806_v9 = vld [vmem:[#allocation8 + $0x5e8] sm:$0xff] }
 0x256   :  { %1688 = vmatprep.subr.bf16.mxu1 %v1687_v10  ;;  %v1725_v10 = vpack.c.bf16 %v789_v7, %v781_v6  ;;  %v1727_v11 = vpack.c.bf16 %v806_v9, %v798_v8  ;;  %v695_v7 = vld [vmem:[#allocation8 + $0x270] sm:$0xff]  ;;  %v704_v8 = vld [vmem:[#allocation8 + $0x2b8] sm:$0xff] }
 0x257   :  { %v712_v9 = vld [vmem:[#allocation8 + $0x2f8] sm:$0xff] }
 0x259   :  { %1690 = vmatpush1.bf16.msra.mxu1 %v1689_v15  ;;  %v822_v15 = vld [vmem:[#allocation8 + $0x668] sm:$0xff] }
 0x25a   :  { %1692 = vmatprep.subr.bf16.mxu1 %v1691_v16  ;;  %v1729_v16 = vpack.c.bf16 %v805_v13, %v797_v12  ;;  %v1731_v17 = vpack.c.bf16 %v822_v15, %v814_v14  ;;  %v703_v12 = vld [vmem:[#allocation8 + $0x2b0] sm:$0xff]  ;;  %v720_v14 = vld [vmem:[#allocation8 + $0x338] sm:$0xff] }
 0x25b   :  { %v711_v13 = vld [vmem:[#allocation8 + $0x2f0] sm:$0xff]  ;;  %v728_v15 = vld [vmem:[#allocation8 + $0x378] sm:$0xff] }
 0x25d   :  { %1694 = vmatpush1.bf16.msra.mxu1 %v1693_v24  ;;  %v838_v24 = vld [vmem:[#allocation8 + $0x6e8] sm:$0xff] }
 0x25e   :  { %1696 = vmatprep.subr.bf16.mxu1 %v1695_v25  ;;  %v1733_v25 = vpack.c.bf16 %v821_v19, %v813_v18  ;;  %v1735_v26 = vpack.c.bf16 %v838_v24, %v830_v22  ;;  %v719_v18 = vld [vmem:[#allocation8 + $0x330] sm:$0xff]  ;;  %v736_v22 = vld [vmem:[#allocation8 + $0x3b8] sm:$0xff] }
 0x25f   :  { %v727_v19 = vld [vmem:[#allocation8 + $0x370] sm:$0xff]  ;;  %v744_v24 = vld [vmem:[#allocation8 + $0x3f8] sm:$0xff] }
 0x261   :  { %1698 = vmatpush1.bf16.msra.mxu1 %v1697_v30  ;;  %v854_v30 = vld [vmem:[#allocation8 + $0x768] sm:$0xff] }
 0x262   :  { %1700 = vmatprep.subr.bf16.mxu1 %v1699_v31  ;;  %v1737_v31 = vpack.c.bf16 %v837_v28, %v829_v27  ;;  %v1739_v32 = vpack.c.bf16 %v854_v30, %v846_v29  ;;  %v735_v27 = vld [vmem:[#allocation8 + $0x3b0] sm:$0xff]  ;;  %v752_v29 = vld [vmem:[#allocation8 + $0x438] sm:$0xff] }
 0x263   :  { %v743_v28 = vld [vmem:[#allocation8 + $0x3f0] sm:$0xff]  ;;  %v760_v30 = vld [vmem:[#allocation8 + $0x478] sm:$0xff] }
 0x265   :  { %1702 = vmatpush1.bf16.msra.mxu1 %v1701_v38  ;;  %v870_v38 = vld [vmem:[#allocation8 + $0x7e8] sm:$0xff] }
 0x266   :  { %1704 = vmatprep.subr.bf16.mxu1 %v1703_v39  ;;  %v1741_v39 = vpack.c.bf16 %v853_v35, %v845_v33  ;;  %v1743_v40 = vpack.c.bf16 %v870_v38, %v862_v37  ;;  %v751_v33 = vld [vmem:[#allocation8 + $0x430] sm:$0xff]  ;;  %v768_v37 = vld [vmem:[#allocation8 + $0x4b8] sm:$0xff] }
 0x267   :  { %v759_v35 = vld [vmem:[#allocation8 + $0x470] sm:$0xff]  ;;  %v776_v38 = vld [vmem:[#allocation8 + $0x4f8] sm:$0xff] }
 0x269   :  { %1706 = vmatpush1.bf16.msra.mxu1 %v1705_v44  ;;  %v632_v44 = vld [vmem:[#allocation8 + $0x78] sm:$0xff] }
 0x26a   :  { %1708 = vmatprep.subr.bf16.mxu1 %v1707_v45  ;;  %v1745_v45 = vpack.c.bf16 %v869_v42, %v861_v41  ;;  %v1747_v46 = vpack.c.bf16 %v632_v44, %v624_v43  ;;  %v767_v41 = vld [vmem:[#allocation8 + $0x4b0] sm:$0xff]  ;;  %v784_v43 = vld [vmem:[#allocation8 + $0x538] sm:$0xff] }
 0x26b   :  { %v775_v42 = vld [vmem:[#allocation8 + $0x4f0] sm:$0xff]  ;;  %v792_v44 = vld [vmem:[#allocation8 + $0x578] sm:$0xff] }
 0x26d   :  { %1710 = vmatpush1.bf16.msra.mxu1 %v1709_v50  ;;  %v648_v50 = vld [vmem:[#allocation8 + $0xf8] sm:$0xff] }
 0x26e   :  { %1712 = vmatprep.subr.bf16.mxu1 %v1711_v51  ;;  %v1749_v51 = vpack.c.bf16 %v631_v48, %v623_v47  ;;  %v1751_v52 = vpack.c.bf16 %v648_v50, %v640_v49  ;;  %v783_v47 = vld [vmem:[#allocation8 + $0x530] sm:$0xff]  ;;  %v800_v49 = vld [vmem:[#allocation8 + $0x5b8] sm:$0xff] }
 0x26f   :  { %v791_v48 = vld [vmem:[#allocation8 + $0x570] sm:$0xff]  ;;  %v808_v50 = vld [vmem:[#allocation8 + $0x5f8] sm:$0xff] }
 0x271   :  { %1714 = vmatpush1.bf16.msra.mxu1 %v1713_v56  ;;  %v664_v56 = vld [vmem:[#allocation8 + $0x178] sm:$0xff] }
 0x272   :  { %1716 = vmatprep.subr.bf16.mxu1 %v1715_v57  ;;  %v1753_v57 = vpack.c.bf16 %v647_v54, %v639_v53  ;;  %v1755_v58 = vpack.c.bf16 %v664_v56, %v656_v55  ;;  %v799_v53 = vld [vmem:[#allocation8 + $0x5b0] sm:$0xff]  ;;  %v816_v55 = vld [vmem:[#allocation8 + $0x638] sm:$0xff] }
 0x273   :  { %v807_v54 = vld [vmem:[#allocation8 + $0x5f0] sm:$0xff]  ;;  %v824_v56 = vld [vmem:[#allocation8 + $0x678] sm:$0xff] }
 0x275   :  { %1718 = vmatpush1.bf16.msra.mxu1 %v1717_v62  ;;  %v680_v62 = vld [vmem:[#allocation8 + $0x1f8] sm:$0xff] }
 0x276   :  { %1720 = vmatprep.subr.bf16.mxu1 %v1719_v63  ;;  %v1757_v63 = vpack.c.bf16 %v663_v60, %v655_v59  ;;  %v1759_v0 = vpack.c.bf16 %v680_v62, %v672_v61  ;;  %v815_v59 = vld [vmem:[#allocation8 + $0x630] sm:$0xff]  ;;  %v832_v61 = vld [vmem:[#allocation8 + $0x6b8] sm:$0xff] }
 0x277   :  { %v823_v60 = vld [vmem:[#allocation8 + $0x670] sm:$0xff]  ;;  %v840_v62 = vld [vmem:[#allocation8 + $0x6f8] sm:$0xff] }
 0x279   :  { %1722 = vmatpush1.bf16.msra.mxu1 %v1721_v4  ;;  %v696_v4 = vld [vmem:[#allocation8 + $0x278] sm:$0xff] }
 0x27a   :  { %1724 = vmatprep.subr.bf16.mxu1 %v1723_v5  ;;  %v1761_v5 = vpack.c.bf16 %v679_v2, %v671_v1  ;;  %v1763_v6 = vpack.c.bf16 %v696_v4, %v688_v3  ;;  %v831_v1 = vld [vmem:[#allocation8 + $0x6b0] sm:$0xff]  ;;  %v848_v3 = vld [vmem:[#allocation8 + $0x738] sm:$0xff] }
 0x27b   :  { %v839_v2 = vld [vmem:[#allocation8 + $0x6f0] sm:$0xff]  ;;  %v856_v4 = vld [vmem:[#allocation8 + $0x778] sm:$0xff] }
 0x27d   :  { %1726 = vmatpush1.bf16.msra.mxu1 %v1725_v10 }
 0x27e   :  { %1728 = vmatprep.subr.bf16.mxu1 %v1727_v11  ;;  %v1767_v11 = vpack.c.bf16 %v712_v9, %v704_v8  ;;  %v864_v8 = vld [vmem:[#allocation8 + $0x7b8] sm:$0xff] }
 0x27f   :  { %v872_v9 = vld [vmem:[#allocation8 + $0x7f8] sm:$0xff] }
 0x281   :  { %1730 = vmatpush1.bf16.msra.mxu1 %v1729_v16  ;;  %v1769_v16 = vpack.c.bf16 %v711_v13, %v703_v12  ;;  %v863_v12 = vld [vmem:[#allocation8 + $0x7b0] sm:$0xff] }
 0x282   :  { %1732 = vmatprep.subr.bf16.mxu1 %v1731_v17  ;;  %v1771_v17 = vpack.c.bf16 %v728_v15, %v720_v14  ;;  %v871_v13 = vld [vmem:[#allocation8 + $0x7f0] sm:$0xff]  ;;  %v2157_v15 = vld [vmem:[#allocation9] sm:$0xff] }
 0x283   :  { %v1809_v14 = vpack.c.bf16 %v871_v13, %v863_v12 }
 0x285   :  { %1734 = vmatpush1.bf16.msra.mxu1 %v1733_v25  ;;  %v1773_v25 = vpack.c.bf16 %v727_v19, %v719_v18  ;;  %v2163_v18 = vld [vmem:[#allocation12] sm:$0xff]  ;;  %v882_v19 = vrot.slane %v2157_v15, %v2141_v23 }
 0x286   :  { %1736 = vmatprep.subr.bf16.mxu1 %v1735_v26  ;;  %v1775_v26 = vpack.c.bf16 %v744_v24, %v736_v22 }
 0x289   :  { %1738 = vmatpush1.bf16.msra.mxu1 %v1737_v31  ;;  %v1777_v31 = vpack.c.bf16 %v743_v28, %v735_v27 }
 0x28a   :  { %1740 = vmatprep.subr.bf16.mxu1 %v1739_v32  ;;  %v1779_v32 = vpack.c.bf16 %v760_v30, %v752_v29  ;;  %v1285_v29 = vrot.slane %v2163_v18, %v2141_v23 }
 0x28d   :  { %1742 = vmatpush1.bf16.msra.mxu1 %v1741_v39  ;;  %v1781_v39 = vpack.c.bf16 %v759_v35, %v751_v33 }
 0x28e   :  { %1744 = vmatprep.subr.bf16.mxu1 %v1743_v40  ;;  %v1783_v40 = vpack.c.bf16 %v776_v38, %v768_v37 }
 0x291   :  { %1746 = vmatpush1.bf16.msra.mxu1 %v1745_v45  ;;  %v1785_v45 = vpack.c.bf16 %v775_v42, %v767_v41 }
 0x292   :  { %1748 = vmatprep.subr.bf16.mxu1 %v1747_v46  ;;  %v1787_v46 = vpack.c.bf16 %v792_v44, %v784_v43 }
 0x294   :  { %1122 = vmatmul.mubr.f32.vlgmr.msra.gmra.mrb[4].mxu1 %v2147_v36 }
 0x295   :  { %1750 = vmatpush1.bf16.msra.mxu1 %v1749_v51  ;;  %1192 = vmatprep.mubr.f32.mxu1 %v2145_v34  ;;  %v687_v34 = vld [vmem:[#allocation8 + $0x230] sm:$0xff]  ;;  %v1789_v51 = vpack.c.bf16 %v791_v48, %v783_v47 }
 0x296   :  { %1752 = vmatprep.subr.bf16.mxu1 %v1751_v52  ;;  %v1765_v10 = vpack.c.bf16 %v695_v7, %v687_v34  ;;  %v1791_v52 = vpack.c.bf16 %v808_v50, %v800_v49  ;;  %v847_v34 = vld [vmem:[#allocation8 + $0x730] sm:$0xff] }
 0x297   :  { %v855_v7 = vld [vmem:[#allocation8 + $0x770] sm:$0xff] }
 0x299   :  { %1754 = vmatpush1.bf16.msra.mxu1 %v1753_v57  ;;  %v1793_v57 = vpack.c.bf16 %v807_v54, %v799_v53 }
 0x29a   :  { %1756 = vmatprep.subr.bf16.mxu1 %v1755_v58  ;;  %v1795_v58 = vpack.c.bf16 %v824_v56, %v816_v55 }
 0x29d   :  { %1758 = vmatpush1.bf16.msra.mxu1 %v1757_v63  ;;  %v1797_v63 = vpack.c.bf16 %v823_v60, %v815_v59  ;;  %v893_v60 = vsub.s32 4, %v2135_v20 }
 0x29e   :  { %1760 = vmatprep.subr.bf16.mxu1 %v1759_v0  ;;  %v1799_v0 = vpack.c.bf16 %v840_v62, %v832_v61  ;;  %v897_v61 = vsub.s32 5, %v2135_v20 }
 0x29f   :  { %v894_v62 = vrot.slane %v2157_v15, %v893_v60 }
 0x2a1   :  { %1762 = vmatpush1.bf16.msra.mxu1 %v1761_v5  ;;  %v1801_v5 = vpack.c.bf16 %v839_v2, %v831_v1 }
 0x2a2   :  { %1764 = vmatprep.subr.bf16.mxu1 %v1763_v6  ;;  %v1803_v6 = vpack.c.bf16 %v856_v4, %v848_v3  ;;  %v1297_v3 = vrot.slane %v2163_v18, %v893_v60 }
 0x2a5   :  { %1766 = vmatpush1.bf16.msra.mxu1 %v1765_v10  ;;  %v1805_v10 = vpack.c.bf16 %v855_v7, %v847_v34  ;;  %v1301_v34 = vrot.slane %v2163_v18, %v897_v61 }
 0x2a6   :  { %1768 = vmatprep.subr.bf16.mxu1 %v1767_v11  ;;  %v1807_v11 = vpack.c.bf16 %v872_v9, %v864_v8 }
 0x2a9   :  { %1770 = vmatpush1.bf16.msra.mxu1 %v1769_v16  ;;  %v878_v16 = vrot.slane %v2157_v15, %v2138_v21 }
 0x2aa   :  { %1772 = vmatprep.subr.bf16.mxu1 %v1771_v17  ;;  %v2161_v17 = vld [vmem:[#allocation11] sm:$0xff] }
 0x2ab   :  { %v1216_v28 = vrot.slane %v2161_v17, %v2141_v23  ;;  %v1228_v2 = vrot.slane %v2161_v17, %v893_v60 }
 0x2ad   :  { %1774 = vmatpush1.bf16.msra.mxu1 %v1773_v25  ;;  %v1212_v25 = vrot.slane %v2161_v17, %v2138_v21 }
 0x2ae   :  { %1776 = vmatprep.subr.bf16.mxu1 %v1775_v26 }
 0x2b1   :  { %1778 = vmatpush1.bf16.msra.mxu1 %v1777_v31 }
 0x2b2   :  { %1780 = vmatprep.subr.bf16.mxu1 %v1779_v32 }
 0x2b5   :  { %1782 = vmatpush1.bf16.msra.mxu1 %v1781_v39 }
 0x2b6   :  { %1784 = vmatprep.subr.bf16.mxu1 %v1783_v40  ;;  %v885_v40 = vsub.s32 2, %v2135_v20 }
 0x2b8   :  { %v886_v41 = vrot.slane %v2157_v15, %v885_v40  ;;  %v1220_v23 = vrot.slane %v2161_v17, %v885_v40 }
 0x2b9   :  { %1786 = vmatpush1.bf16.msra.mxu1 %v1785_v45  ;;  %v1289_v45 = vrot.slane %v2163_v18, %v885_v40 }
 0x2ba   :  { %1788 = vmatprep.subr.bf16.mxu1 %v1787_v46 }
 0x2bd   :  { %1790 = vmatpush1.bf16.msra.mxu1 %v1789_v51 }
 0x2be   :  { %1792 = vmatprep.subr.bf16.mxu1 %v1791_v52 }
 0x2c1   :  { %1794 = vmatpush1.bf16.msra.mxu1 %v1793_v57 }
 0x2c2   :  { %1796 = vmatprep.subr.bf16.mxu1 %v1795_v58 }
 0x2c5   :  { %1798 = vmatpush1.bf16.msra.mxu1 %v1797_v63  ;;  %v898_v63 = vrot.slane %v2157_v15, %v897_v61 }
 0x2c6   :  { %1800 = vmatprep.subr.bf16.mxu1 %v1799_v0 }
 0x2c9   :  { %1802 = vmatpush1.bf16.msra.mxu1 %v1801_v5 }
 0x2ca   :  { %1804 = vmatprep.subr.bf16.mxu1 %v1803_v6  ;;  %v1232_v6 = vrot.slane %v2161_v17, %v897_v61 }
 0x2cd   :  { %1806 = vmatpush1.bf16.msra.mxu1 %v1805_v10 }
 0x2ce   :  { %1808 = vmatprep.subr.bf16.mxu1 %v1807_v11 }
 0x2d1   :  { %1810 = vmatpush1.bf16.msra.mxu1 %v1809_v14 }
 0x2d4   :  { %1193 = vmatmul.mubr.f32.vlgmr.msra.gmra.mrb[6].mxu1 %v2147_v36  ;;  %v1281_v36 = vrot.slane %v2163_v18, %v2138_v21  ;;  %v889_v21 = vsub.s32 3, %v2135_v20 }
 0x2d6   :  { %v890_v42 = vrot.slane %v2157_v15, %v889_v21  ;;  %v1224_v48 = vrot.slane %v2161_v17, %v889_v21  ;;  %v1293_v49 = vrot.slane %v2163_v18, %v889_v21 }
 0x2e7   :  { %v981_v22 = vpop.f32.mrb[0].mxu1 }
 0x2e8   :  { %v982_v24 = vadd.f32 %v981_v22, %v878_v16  ;;  %v983_v26 = vpop.f32.mrb[1].mxu1  ;;  %v901_v22 = vsub.s32 6, %v2135_v20 }
 0x2e9   :  { %v984_v27 = vadd.f32 %v983_v26, %v882_v19 }
 0x2ea   :  { %v1199_v30 = vmax.f32 %v982_v24, 0.0  ;;  %v905_v24 = vsub.s32 7, %v2135_v20 }
 0x2eb   :  { %v1200_v31 = vmax.f32 %v984_v27, 0.0 }
 0x2ec   :  { %v1249_v32 = vmul.f32 %v1212_v25, %v1199_v30  ;;  %v1318_v33 = vmul.f32 %v1281_v36, %v1199_v30  ;;  %v902_v25 = vrot.slane %v2157_v15, %v901_v22  ;;  %v906_v36 = vrot.slane %v2157_v15, %v905_v24 }
 0x2ed   :  { %v1250_v35 = vmul.f32 %v1216_v28, %v1200_v31  ;;  %v1319_v37 = vmul.f32 %v1285_v29, %v1200_v31  ;;  %v1236_v28 = vrot.slane %v2161_v17, %v901_v22  ;;  %v1305_v29 = vrot.slane %v2163_v18, %v901_v22 }
 0x2ef   :  { %v1257_v38 = vadd.f32 %v1250_v35, %v1249_v32  ;;  %v1326_v39 = vadd.f32 %v1319_v37, %v1318_v33  ;;  %v1309_v32 = vrot.slane %v2163_v18, %v905_v24  ;;  %v1240_v33 = vrot.slane %v2161_v17, %v905_v24 }
 0x327   :  { %v1052_v43 = vpop.f32.mrb[2].mxu1 }
 0x328   :  { %v1053_v44 = vadd.f32 %v1052_v43, %v886_v41  ;;  %v1054_v46 = vpop.f32.mrb[3].mxu1  ;;  %v1357_v43 = vld [vmem:[#allocation2] ss:$0 sm:$0xff] }
 0x329   :  { %v1055_v47 = vadd.f32 %v1054_v46, %v890_v42 }
 0x32a   :  { %v1201_v50 = vmax.f32 %v1053_v44, 0.0 }
 0x32b   :  { %v1202_v51 = vmax.f32 %v1055_v47, 0.0 }
 0x32c   :  { %v1251_v52 = vmul.f32 %v1220_v23, %v1201_v50  ;;  %v1320_v53 = vmul.f32 %v1289_v45, %v1201_v50  ;;  %v1358_v45 = vld [vmem:[#allocation3] ss:$0 sm:$0xff] }
 0x32d   :  { %v1252_v54 = vmul.f32 %v1224_v48, %v1202_v51  ;;  %v1321_v55 = vmul.f32 %v1293_v49, %v1202_v51 }
 0x32e   :  { %v1258_v56 = vadd.f32 %v1257_v38, %v1251_v52  ;;  %v1327_v57 = vadd.f32 %v1326_v39, %v1320_v53 }
 0x330   :  { %v1259_v58 = vadd.f32 %v1258_v56, %v1252_v54  ;;  %v1328_v59 = vadd.f32 %v1327_v57, %v1321_v55 }
 0x367   :  { %v1123_v0 = vpop.f32.mrb[4].mxu1 }
 0x368   :  { %v1124_v1 = vadd.f32 %v1123_v0, %v894_v62  ;;  %v1125_v4 = vpop.f32.mrb[5].mxu1 }
 0x369   :  { %v1126_v5 = vadd.f32 %v1125_v4, %v898_v63 }
 0x36a   :  { %v1203_v7 = vmax.f32 %v1124_v1, 0.0 }
 0x36b   :  { %v1204_v8 = vmax.f32 %v1126_v5, 0.0 }
 0x36c   :  { %v1253_v9 = vmul.f32 %v1228_v2, %v1203_v7  ;;  %v1322_v10 = vmul.f32 %v1297_v3, %v1203_v7 }
 0x36d   :  { %v1254_v11 = vmul.f32 %v1232_v6, %v1204_v8  ;;  %v1323_v12 = vmul.f32 %v1301_v34, %v1204_v8 }
 0x36e   :  { %v1260_v13 = vadd.f32 %v1259_v58, %v1253_v9  ;;  %v1329_v14 = vadd.f32 %v1328_v59, %v1322_v10 }
 0x370   :  { %v1330_v16 = vadd.f32 %v1329_v14, %v1323_v12  ;;  %v1261_v19 = vadd.f32 %v1260_v13, %v1254_v11 }
 0x3a7   :  { %v1194_v26 = vpop.f32.mrb[6].mxu1 }
 0x3a8   :  { %v1195_v27 = vadd.f32 %v1194_v26, %v902_v25  ;;  %v1196_v30 = vpop.f32.mrb[7].mxu1 }
 0x3a9   :  { %v1197_v31 = vadd.f32 %v1196_v30, %v906_v36 }
 0x3aa   :  { %v1205_v35 = vmax.f32 %v1195_v27, 0.0 }
 0x3ab   :  { %v1206_v37 = vmax.f32 %v1197_v31, 0.0 }
 0x3ac   :  { %v1255_v38 = vmul.f32 %v1236_v28, %v1205_v35  ;;  %v1324_v20 = vmul.f32 %v1305_v29, %v1205_v35 }
 0x3ad   :  { %v1325_v39 = vmul.f32 %v1309_v32, %v1206_v37  ;;  %v1256_v40 = vmul.f32 %v1240_v33, %v1206_v37 }
 0x3ae   :  { %v1262_v21 = vadd.f32 %v1261_v19, %v1255_v38  ;;  %v1331_v15 = vadd.f32 %v1330_v16, %v1324_v20 }
 0x3b0   :  { %v1263_v41 = vadd.f32 %v1262_v21, %v1256_v40  ;;  %v1332_v42 = vadd.f32 %v1331_v15, %v1325_v39 }
 0x3b2   :  { %1264 = vadd.xlane.f32.xlu0 %v1263_v41 }
 0x3b6   :  { %1333 = vadd.xlane.f32.xlu0 %v1332_v42 }
 0x43f   :  { %v1265_v44 = vpop.xlane.xlu0 %1264 }
 0x440   :  { %v1273_v23 = vadd.f32 %v1357_v43, %v1265_v44 }
 0x442   :  { %1275 = vst.msk [vmem:[%s2213_s9] sm:$0xff] %vm1274_vm1, %v1273_v23 }
 0x443   :  { %v1334_v17 = vpop.xlane.xlu0 %1333 }
 0x444   :  { %v1342_v18 = vadd.f32 %v1358_v45, %v1334_v17 }
 0x446   :  { %1343 = vst.msk [vmem:[%s2214_s10] sm:$0xff] %vm1274_vm1, %v1342_v18 }
 0x447   :  { %1352 = vsyncpa [#allocation5], 1 }
 0x448   :  { %1353 = vsyncpa [#allocation7], 1 }
 0x449   :  { %1354 = vsyncpa [#allocation10], 1 }
 0x44a   :  { %1355 = vsyncpa [#allocation13], 1 }

// kernel: vae_forward.3
= control target key start
LH: loop header
LB: loop body
LE: loop exit
PB: predicated region body
PF: predicated region fallthrough
CT: control target
= control target key end

     0   :  { %v4019_v0 = vmov 0   ;;  %vm2334_vm0 = vcmask 130048   ;;  %vm4021_vm1 = vmmov 0   ;;  %s5237_s1 = inlined_call_operand.vmem [shape: f32[8,1], index: 1, kind: input, shape index: {}]   ;;  %s5238_s5 = inlined_call_operand.vmem [shape: bf16[784,784], index: 5, kind: input, shape index: {}]   ;;  %s5239_s2 = inlined_call_operand.vmem [shape: f32[8,1], index: 2, kind: input, shape index: {}]   ;;  %s5240_s0 = inlined_call_operand.vmem [shape: f32[8,1], index: 0, kind: input, shape index: {}]   ;;  %s5241_s3 = inlined_call_operand.vmem [shape: f32[1,784], index: 3, kind: input, shape index: {}]   ;;  %s5242_s4 = inlined_call_operand.vmem [shape: f32[1,784], index: 4, kind: input, shape index: {}]   ;;  %s5243_s6 = inlined_call_operand.vmem [shape: f32[1,784], index: 6, kind: input, shape index: {}]   ;;  %s5244_s7 = inlined_call_operand.vmem [shape: f32[8,784], index: 7, kind: output, shape index: {}]  }
   0x1   :  { %3498 = vset.pattern.permute.xlu0 %v4019_v0  ;;  %v29_v1 = vld [vmem:[%s5237_s1] sm:$0xff]  ;;  %v3505_v7 = vld [vmem:[%s5238_s5 + $0x3c] ss:$28 sps:$4 sm:$0xff]   ;;  %v3511_v11 = vld [vmem:[%s5238_s5 + $0x74] ss:$28 sps:$4 sm:$0xff]  }
   0x2   :  { %v30_v2 = vmul.f32 1.442695, %v29_v1  ;;  %v3499_v3 = vld [vmem:[%s5238_s5 + $0x4] ss:$28 sps:$4 sm:$0xff]   ;;  %v3507_v8 = vld [vmem:[%s5238_s5 + $0x3bc] ss:$28 sps:$4 sm:$0xff]  }
   0x3   :  { %v3501_v4 = vld [vmem:[%s5238_s5 + $0x384] ss:$28 sps:$4 sm:$0xff]   ;;  %2338 = vmatprep.subr.bf16.mxu1 %v3499_v3  ;;  %v3509_v9 = vld [vmem:[%s5238_s5 + $0x38] ss:$28 sps:$4 sm:$0xff]   ;;  %v3515_v13 = vld [vmem:[%s5238_s5 + $0x70] ss:$28 sps:$4 sm:$0xff]  }
   0x4   :  { %3989 = vpow2.f32 %v30_v2  ;;  %v3503_v5 = vld [vmem:[%s5238_s5] ss:$28 sps:$4 sm:$0xff]   ;;  %2379 = vmatprep.subr.bf16.mxu0 %v3501_v4  ;;  %v3510_v10 = vld [vmem:[%s5238_s5 + $0x3b8] ss:$28 sps:$4 sm:$0xff]   ;;  %v3516_v14 = vld [vmem:[%s5238_s5 + $0x3f0] ss:$28 sps:$4 sm:$0xff]  }
   0x5   :  { %v3504_v6 = vld [vmem:[%s5238_s5 + $0x380] ss:$28 sps:$4 sm:$0xff]   ;;  %2339 = vmatpush1.bf16.msra.mxu1 %v3503_v5  ;;  %v3513_v12 = vld [vmem:[%s5238_s5 + $0x3f4] ss:$28 sps:$4 sm:$0xff]   ;;  %v3517_v15 = vld [vmem:[%s5238_s5 + $0xac] ss:$28 sps:$4 sm:$0xff]  }
   0x6   :  { %2380 = vmatpush1.bf16.msra.mxu0 %v3504_v6  ;;  %2340 = vmatprep.subr.bf16.mxu1 %v3505_v7  ;;  %v3519_v16 = vld [vmem:[%s5238_s5 + $0x42c] ss:$28 sps:$4 sm:$0xff]   ;;  %v28_v17 = vld [vmem:[%s5239_s2] sm:$0xff]  ;;  %v3529_v28 = vld [vmem:[%s5238_s5 + $0x11c] ss:$28 sps:$4 sm:$0xff]  }
   0x7   :  { %2381 = vmatprep.subr.bf16.mxu0 %v3507_v8  ;;  %v27_v18 = vld [vmem:[%s5240_s0] sm:$0xff]  ;;  %v3531_v29 = vld [vmem:[%s5238_s5 + $0x49c] ss:$28 sps:$4 sm:$0xff]   ;;  %v3535_v32 = vld [vmem:[%s5238_s5 + $0x154] ss:$28 sps:$4 sm:$0xff]  }
   0x8   :  { %v3521_v20 = vld [vmem:[%s5238_s5 + $0xa8] ss:$28 sps:$4 sm:$0xff]   ;;  %v3527_v26 = vld [vmem:[%s5238_s5 + $0xe0] ss:$28 sps:$4 sm:$0xff]   ;;  %v3533_v30 = vld [vmem:[%s5238_s5 + $0x118] ss:$28 sps:$4 sm:$0xff]  }
   0x9   :  { %2341 = vmatpush1.bf16.msra.mxu1 %v3509_v9  ;;  %v3522_v21 = vld [vmem:[%s5238_s5 + $0x428] ss:$28 sps:$4 sm:$0xff]   ;;  %v3528_v27 = vld [vmem:[%s5238_s5 + $0x460] ss:$28 sps:$4 sm:$0xff]   ;;  %v3534_v31 = vld [vmem:[%s5238_s5 + $0x498] ss:$28 sps:$4 sm:$0xff]  }
   0xa   :  { %2382 = vmatpush1.bf16.msra.mxu0 %v3510_v10  ;;  %2342 = vmatprep.subr.bf16.mxu1 %v3511_v11  ;;  %v3523_v23 = vld [vmem:[%s5238_s5 + $0xe4] ss:$28 sps:$4 sm:$0xff]   ;;  %v3537_v33 = vld [vmem:[%s5238_s5 + $0x4d4] ss:$28 sps:$4 sm:$0xff]   ;;  %v3541_v36 = vld [vmem:[%s5238_s5 + $0x18c] ss:$28 sps:$4 sm:$0xff]   ;;  %v41_v11 = vlaneseq }
   0xb   :  { %2383 = vmatprep.subr.bf16.mxu0 %v3513_v12  ;;  %v3525_v24 = vld [vmem:[%s5238_s5 + $0x464] ss:$28 sps:$4 sm:$0xff]   ;;  %v3539_v34 = vld [vmem:[%s5238_s5 + $0x150] ss:$28 sps:$4 sm:$0xff]   ;;  %v3553_v44 = vld [vmem:[%s5238_s5 + $0x1fc] ss:$28 sps:$4 sm:$0xff]  }
   0xc   :  { %v3540_v35 = vld [vmem:[%s5238_s5 + $0x4d0] ss:$28 sps:$4 sm:$0xff]   ;;  %v3545_v38 = vld [vmem:[%s5238_s5 + $0x188] ss:$28 sps:$4 sm:$0xff]   ;;  %v3551_v42 = vld [vmem:[%s5238_s5 + $0x1c0] ss:$28 sps:$4 sm:$0xff]  }
   0xd   :  { %2343 = vmatpush1.bf16.msra.mxu1 %v3515_v13  ;;  %v3543_v37 = vld [vmem:[%s5238_s5 + $0x50c] ss:$28 sps:$4 sm:$0xff]   ;;  %v3547_v40 = vld [vmem:[%s5238_s5 + $0x1c4] ss:$28 sps:$4 sm:$0xff]   ;;  %v3555_v45 = vld [vmem:[%s5238_s5 + $0x57c] ss:$28 sps:$4 sm:$0xff]  }
   0xe   :  { %v3990_v19 = vpop.eup %3989  ;;  %2384 = vmatpush1.bf16.msra.mxu0 %v3516_v14  ;;  %2344 = vmatprep.subr.bf16.mxu1 %v3517_v15  ;;  %v3546_v39 = vld [vmem:[%s5238_s5 + $0x508] ss:$28 sps:$4 sm:$0xff]   ;;  %v3552_v43 = vld [vmem:[%s5238_s5 + $0x540] ss:$28 sps:$4 sm:$0xff]   ;;  %v3557_v46 = vld [vmem:[%s5238_s5 + $0x1f8] ss:$28 sps:$4 sm:$0xff]  }
   0xf   :  { %v32_v22 = vmul.f32 %v3990_v19, %v28_v17  ;;  %2385 = vmatprep.subr.bf16.mxu0 %v3519_v16  ;;  %v3549_v41 = vld [vmem:[%s5238_s5 + $0x544] ss:$28 sps:$4 sm:$0xff]   ;;  %v3558_v47 = vld [vmem:[%s5238_s5 + $0x578] ss:$28 sps:$4 sm:$0xff]   ;;  %v3563_v50 = vld [vmem:[%s5238_s5 + $0x230] ss:$28 sps:$4 sm:$0xff]  }
  0x10   :  { %v3559_v48 = vld [vmem:[%s5238_s5 + $0x234] ss:$28 sps:$4 sm:$0xff]   ;;  %v3565_v52 = vld [vmem:[%s5238_s5 + $0x26c] ss:$28 sps:$4 sm:$0xff]   ;;  %v3571_v56 = vld [vmem:[%s5238_s5 + $0x2a4] ss:$28 sps:$4 sm:$0xff]  }
  0x11   :  { %v33_v25 = vadd.f32 %v32_v22, %v27_v18  ;;  %2345 = vmatpush1.bf16.msra.mxu1 %v3521_v20  ;;  %v3561_v49 = vld [vmem:[%s5238_s5 + $0x5b4] ss:$28 sps:$4 sm:$0xff]   ;;  %v3567_v53 = vld [vmem:[%s5238_s5 + $0x5ec] ss:$28 sps:$4 sm:$0xff]   ;;  %v3573_v57 = vld [vmem:[%s5238_s5 + $0x624] ss:$28 sps:$4 sm:$0xff]  }
  0x12   :  { %2386 = vmatpush1.bf16.msra.mxu0 %v3522_v21  ;;  %2346 = vmatprep.subr.bf16.mxu1 %v3523_v23  ;;  %v3564_v51 = vld [vmem:[%s5238_s5 + $0x5b0] ss:$28 sps:$4 sm:$0xff]   ;;  %v3569_v54 = vld [vmem:[%s5238_s5 + $0x268] ss:$28 sps:$4 sm:$0xff]   ;;  %v3575_v58 = vld [vmem:[%s5238_s5 + $0x2a0] ss:$28 sps:$4 sm:$0xff]  }
  0x13   :  { %37 = vperm.xlu0 %3498, %v33_v25   ;;  %2387 = vmatprep.subr.bf16.mxu0 %v3525_v24  ;;  %v3570_v55 = vld [vmem:[%s5238_s5 + $0x5e8] ss:$28 sps:$4 sm:$0xff]   ;;  %v3576_v59 = vld [vmem:[%s5238_s5 + $0x620] ss:$28 sps:$4 sm:$0xff]   ;;  %v3581_v62 = vld [vmem:[%s5238_s5 + $0x2d8] ss:$28 sps:$4 sm:$0xff]  }
  0x14   :  { %v3577_v60 = vld [vmem:[%s5238_s5 + $0x2dc] ss:$28 sps:$4 sm:$0xff]   ;;  %v3583_v1 = vld [vmem:[%s5238_s5 + $0x314] ss:$28 sps:$4 sm:$0xff]   ;;  %v3589_v5 = vld [vmem:[%s5238_s5 + $0x34c] ss:$28 sps:$4 sm:$0xff]  }
  0x15   :  { %2347 = vmatpush1.bf16.msra.mxu1 %v3527_v26  ;;  %v3579_v61 = vld [vmem:[%s5238_s5 + $0x65c] ss:$28 sps:$4 sm:$0xff]   ;;  %v3585_v2 = vld [vmem:[%s5238_s5 + $0x694] ss:$28 sps:$4 sm:$0xff]   ;;  %v3591_v6 = vld [vmem:[%s5238_s5 + $0x6cc] ss:$28 sps:$4 sm:$0xff]  }
  0x16   :  { %2388 = vmatpush1.bf16.msra.mxu0 %v3528_v27  ;;  %2348 = vmatprep.subr.bf16.mxu1 %v3529_v28  ;;  %v3582_v63 = vld [vmem:[%s5238_s5 + $0x658] ss:$28 sps:$4 sm:$0xff]   ;;  %v3587_v3 = vld [vmem:[%s5238_s5 + $0x310] ss:$28 sps:$4 sm:$0xff]   ;;  %v3593_v7 = vld [vmem:[%s5238_s5 + $0x348] ss:$28 sps:$4 sm:$0xff]  }
  0x17   :  { %2389 = vmatprep.subr.bf16.mxu0 %v3531_v29  ;;  %v3588_v4 = vld [vmem:[%s5238_s5 + $0x690] ss:$28 sps:$4 sm:$0xff]   ;;  %v3594_v8 = vld [vmem:[%s5238_s5 + $0x6c8] ss:$28 sps:$4 sm:$0xff]   ;;  %v42_v12 = vshrl.u32 %v41_v11, 7 }
  0x18   :  { %v3597_v9 = vld [vmem:[%s5238_s5 + $0x704] ss:$28 sps:$4 sm:$0xff]   ;;  %v3600_v10 = vld [vmem:[%s5238_s5 + $0xc] ss:$28 sps:$4 sm:$0xff]  }
  0x19   :  { %2349 = vmatpush1.bf16.msra.mxu1 %v3533_v30  ;;  %v34_v13 = vld [vmem:[%s5241_s3] sm:$0x7f]  ;;  %v4273_v14 = vsub.s32 6, %v42_v12  ;;  %v4275_v15 = vsub.s32 1, %v42_v12  ;;  %v4277_v16 = vsub.s32 3, %v42_v12  ;;  %v4279_v17 = vsub.s32 0, %v42_v12 }
  0x1a   :  { %2390 = vmatpush1.bf16.msra.mxu0 %v3534_v31  ;;  %2350 = vmatprep.subr.bf16.mxu1 %v3535_v32  ;;  %v4281_v18 = vsub.s32 2, %v42_v12  ;;  %v4283_v19 = vsub.s32 5, %v42_v12  ;;  %v4285_v20 = vsub.s32 4, %v42_v12  ;;  %v83_v21 = vld [vmem:[%s5242_s4] sm:$0x7f] }
  0x1b   :  { %2391 = vmatprep.subr.bf16.mxu0 %v3537_v33  ;;  %v68_v22 = vrot.slane %v34_v13, %v4273_v14  ;;  %v48_v23 = vrot.slane %v34_v13, %v4275_v15  ;;  %v56_v24 = vrot.slane %v34_v13, %v4277_v16  ;;  %v44_v25 = vrot.slane %v34_v13, %v4279_v17  ;;  %v3616_v11 = vld [vmem:[%s5238_s5 + $0xb0] ss:$28 sps:$4 sm:$0xff]   ;;  %v3621_v12 = vld [vmem:[%s5238_s5 + $0x7e4] ss:$28 sps:$4 sm:$0xff]  }
  0x1c   :  { %v52_v26 = vrot.slane %v34_v13, %v4281_v18  ;;  %v64_v27 = vrot.slane %v34_v13, %v4283_v19  ;;  %v60_v28 = vrot.slane %v34_v13, %v4285_v20  ;;  %v92_v29 = vrot.slane %v83_v21, %v4275_v15  ;;  %v3624_v13 = vld [vmem:[%s5238_s5 + $0xec] ss:$28 sps:$4 sm:$0xff]  }
  0x1d   :  { %2351 = vmatpush1.bf16.msra.mxu1 %v3539_v34  ;;  %v100_v30 = vrot.slane %v83_v21, %v4277_v16  ;;  %v88_v31 = vrot.slane %v83_v21, %v4279_v17  ;;  %v112_v32 = vrot.slane %v83_v21, %v4273_v14  ;;  %v96_v34 = vrot.slane %v83_v21, %v4281_v18 }
  0x1e   :  { %2392 = vmatpush1.bf16.msra.mxu0 %v3540_v35  ;;  %2352 = vmatprep.subr.bf16.mxu1 %v3541_v36  ;;  %v108_v35 = vrot.slane %v83_v21, %v4283_v19  ;;  %v104_v36 = vrot.slane %v83_v21, %v4285_v20  ;;  %v3619_v21 = vld [vmem:[%s5238_s5 + $0x7e0] ss:$28 sps:$4 sm:$0xff]  }
  0x1f   :  { %2393 = vmatprep.subr.bf16.mxu0 %v3543_v37 }
  0x21   :  { %2353 = vmatpush1.bf16.msra.mxu1 %v3545_v38 }
  0x22   :  { %2394 = vmatpush1.bf16.msra.mxu0 %v3546_v39  ;;  %2354 = vmatprep.subr.bf16.mxu1 %v3547_v40 }
  0x23   :  { %2395 = vmatprep.subr.bf16.mxu0 %v3549_v41 }
  0x25   :  { %2355 = vmatpush1.bf16.msra.mxu1 %v3551_v42 }
  0x26   :  { %2396 = vmatpush1.bf16.msra.mxu0 %v3552_v43  ;;  %2356 = vmatprep.subr.bf16.mxu1 %v3553_v44 }
  0x27   :  { %2397 = vmatprep.subr.bf16.mxu0 %v3555_v45 }
  0x29   :  { %2357 = vmatpush1.bf16.msra.mxu1 %v3557_v46 }
  0x2a   :  { %2398 = vmatpush1.bf16.msra.mxu0 %v3558_v47  ;;  %2358 = vmatprep.subr.bf16.mxu1 %v3559_v48 }
  0x2b   :  { %2399 = vmatprep.subr.bf16.mxu0 %v3561_v49 }
  0x2d   :  { %2359 = vmatpush1.bf16.msra.mxu1 %v3563_v50 }
  0x2e   :  { %2400 = vmatpush1.bf16.msra.mxu0 %v3564_v51  ;;  %2360 = vmatprep.subr.bf16.mxu1 %v3565_v52 }
  0x2f   :  { %2401 = vmatprep.subr.bf16.mxu0 %v3567_v53  ;;  %v3595_v53 = vld [vmem:[%s5238_s5 + $0x700] ss:$28 sps:$4 sm:$0xff]  }
  0x31   :  { %2361 = vmatpush1.bf16.msra.mxu1 %v3569_v54 }
  0x32   :  { %2402 = vmatpush1.bf16.msra.mxu0 %v3570_v55  ;;  %2362 = vmatprep.subr.bf16.mxu1 %v3571_v56 }
  0x33   :  { %2403 = vmatprep.subr.bf16.mxu0 %v3573_v57 }
  0x35   :  { %2363 = vmatpush1.bf16.msra.mxu1 %v3575_v58 }
  0x36   :  { %2404 = vmatpush1.bf16.msra.mxu0 %v3576_v59  ;;  %2364 = vmatprep.subr.bf16.mxu1 %v3577_v60  ;;  %v3598_v59 = vld [vmem:[%s5238_s5 + $0x8] ss:$28 sps:$4 sm:$0xff]  }
  0x37   :  { %2405 = vmatprep.subr.bf16.mxu0 %v3579_v61  ;;  %v3603_v61 = vld [vmem:[%s5238_s5 + $0x73c] ss:$28 sps:$4 sm:$0xff]  }
  0x39   :  { %2365 = vmatpush1.bf16.msra.mxu1 %v3581_v62 }
  0x3a   :  { %2406 = vmatpush1.bf16.msra.mxu0 %v3582_v63  ;;  %2366 = vmatprep.subr.bf16.mxu1 %v3583_v1  ;;  %v3601_v63 = vld [vmem:[%s5238_s5 + $0x738] ss:$28 sps:$4 sm:$0xff]   ;;  %v3606_v1 = vld [vmem:[%s5238_s5 + $0x44] ss:$28 sps:$4 sm:$0xff]  }
  0x3b   :  { %2407 = vmatprep.subr.bf16.mxu0 %v3585_v2 }
  0x3d   :  { %2367 = vmatpush1.bf16.msra.mxu1 %v3587_v3  ;;  %v3604_v3 = vld [vmem:[%s5238_s5 + $0x40] ss:$28 sps:$4 sm:$0xff]  }
  0x3e   :  { %2408 = vmatpush1.bf16.msra.mxu0 %v3588_v4  ;;  %2368 = vmatprep.subr.bf16.mxu1 %v3589_v5  ;;  %v3609_v4 = vld [vmem:[%s5238_s5 + $0x774] ss:$28 sps:$4 sm:$0xff]   ;;  %v3612_v5 = vld [vmem:[%s5238_s5 + $0x7c] ss:$28 sps:$4 sm:$0xff]  }
  0x3f   :  { %2409 = vmatprep.subr.bf16.mxu0 %v3591_v6  ;;  %v3607_v6 = vld [vmem:[%s5238_s5 + $0x770] ss:$28 sps:$4 sm:$0xff]  }
  0x41   :  { %2369 = vmatpush1.bf16.msra.mxu1 %v3593_v7  ;;  %v3610_v7 = vld [vmem:[%s5238_s5 + $0x78] ss:$28 sps:$4 sm:$0xff]  }
  0x42   :  { %2410 = vmatpush1.bf16.msra.mxu0 %v3594_v8  ;;  %2502 = vmatprep.subr.bf16.mxu1 %v3600_v10  ;;  %v3615_v8 = vld [vmem:[%s5238_s5 + $0x7ac] ss:$28 sps:$4 sm:$0xff]  }
  0x43   :  { %2420 = vmatprep.subr.bf16.mxu0 %v3597_v9  ;;  %v3618_v9 = vld [vmem:[%s5238_s5 + $0xb4] ss:$28 sps:$4 sm:$0xff]   ;;  %v3613_v10 = vld [vmem:[%s5238_s5 + $0x7a8] ss:$28 sps:$4 sm:$0xff]  }
  0x92   :  { %v38_v33 = vpop.permute.xlu0 %37 }
  0x93   :  { %v82_v37 = vmul.f32 %v68_v22, %v38_v33  ;;  %v77_v38 = vmul.f32 %v48_v23, %v38_v33  ;;  %v79_v39 = vmul.f32 %v56_v24, %v38_v33  ;;  %v76_v40 = vmul.f32 %v44_v25, %v38_v33  ;;  %v3622_v22 = vld [vmem:[%s5238_s5 + $0xe8] ss:$28 sps:$4 sm:$0xff]   ;;  %v3627_v23 = vld [vmem:[%s5238_s5 + $0x81c] ss:$28 sps:$4 sm:$0xff]  }
  0x94   :  { %v78_v41 = vmul.f32 %v52_v26, %v38_v33  ;;  %v81_v42 = vmul.f32 %v64_v27, %v38_v33  ;;  %v80_v43 = vmul.f32 %v60_v28, %v38_v33  ;;  %v3630_v24 = vld [vmem:[%s5238_s5 + $0x124] ss:$28 sps:$4 sm:$0xff]   ;;  %v3625_v25 = vld [vmem:[%s5238_s5 + $0x818] ss:$28 sps:$4 sm:$0xff]  }
  0x95   :  { %v121_v44 = vadd.f32 %v92_v29, %v77_v38  ;;  %v123_v45 = vadd.f32 %v100_v30, %v79_v39  ;;  %v120_v46 = vadd.f32 %v88_v31, %v76_v40  ;;  %v4304_v47 = vadd.f32 %v112_v32, %v82_v37  ;;  %v3628_v26 = vld [vmem:[%s5238_s5 + $0x120] ss:$28 sps:$4 sm:$0xff]   ;;  %v3633_v27 = vld [vmem:[%s5238_s5 + $0x854] ss:$28 sps:$4 sm:$0xff]   ;;  %v3639_v31 = vld [vmem:[%s5238_s5 + $0x88c] ss:$28 sps:$4 sm:$0xff]  }
  0x96   :  { %v122_v48 = vadd.f32 %v96_v34, %v78_v41  ;;  %v125_v49 = vadd.f32 %v108_v35, %v81_v42  ;;  %v4306_v50 = vadd.f32 %v104_v36, %v80_v43  ;;  %v3636_v28 = vld [vmem:[%s5238_s5 + $0x15c] ss:$28 sps:$4 sm:$0xff]   ;;  %v3631_v29 = vld [vmem:[%s5238_s5 + $0x850] ss:$28 sps:$4 sm:$0xff]   ;;  %v3637_v33 = vld [vmem:[%s5238_s5 + $0x888] ss:$28 sps:$4 sm:$0xff]  }
  0x97   :  { %v128_v51 = vmax.f32 %v121_v44, 0.0  ;;  %v130_v52 = vmax.f32 %v123_v45, 0.0  ;;  %v127_v54 = vmax.f32 %v120_v46, 0.0  ;;  %v3634_v30 = vld [vmem:[%s5238_s5 + $0x158] ss:$28 sps:$4 sm:$0xff]  }
  0x98   :  { %v129_v55 = vmax.f32 %v122_v48, 0.0  ;;  %v132_v56 = vmax.f32 %v125_v49, 0.0  ;;  %v3642_v32 = vld [vmem:[%s5238_s5 + $0x194] ss:$28 sps:$4 sm:$0xff]   ;;  %v3645_v35 = vld [vmem:[%s5238_s5 + $0x8c4] ss:$28 sps:$4 sm:$0xff]  }
  0x99   :  { %v4311_v57 = vpack.c.bf16 %v128_v51, %v128_v51  ;;  %v4313_v58 = vpack.c.bf16 %v130_v52, %v130_v52  ;;  %v4318_v60 = vpack.c.bf16 %v127_v54, %v127_v54  ;;  %v3640_v34 = vld [vmem:[%s5238_s5 + $0x190] ss:$28 sps:$4 sm:$0xff]   ;;  %v3643_v37 = vld [vmem:[%s5238_s5 + $0x8c0] ss:$28 sps:$4 sm:$0xff]   ;;  %v3646_v38 = vld [vmem:[%s5238_s5 + $0x1c8] ss:$28 sps:$4 sm:$0xff]  }
  0x9a   :  { %v4323_v62 = vpack.c.bf16 %v129_v55, %v129_v55  ;;  %v4335_v2 = vpack.c.bf16 %v132_v56, %v132_v56  ;;  %v3648_v36 = vld [vmem:[%s5238_s5 + $0x1cc] ss:$28 sps:$4 sm:$0xff]   ;;  %v3651_v39 = vld [vmem:[%s5238_s5 + $0x8fc] ss:$28 sps:$4 sm:$0xff]   ;;  %v3654_v40 = vld [vmem:[%s5238_s5 + $0x204] ss:$28 sps:$4 sm:$0xff]  }
  0x9b   :  { %2370 = vmatprep.mubr.bf16.mxu1 %v4311_v57  ;;  %2411 = vmatprep.mubr.bf16.mxu0 %v4313_v58  ;;  %v3649_v41 = vld [vmem:[%s5238_s5 + $0x8f8] ss:$28 sps:$4 sm:$0xff]   ;;  %v3652_v42 = vld [vmem:[%s5238_s5 + $0x200] ss:$28 sps:$4 sm:$0xff]   ;;  %v3655_v45 = vld [vmem:[%s5238_s5 + $0x930] ss:$28 sps:$4 sm:$0xff]  }
  0x9c   :  { %2371 = vmatmul.mubr.bf16.vlgmr.msra.gmra.mrb[0].mxu1 %v4318_v60  ;;  %2412 = vmatmul.mubr.bf16.vlgmr.msra.gmra.mrb[0].mxu0 %v4323_v62  ;;  %v3657_v43 = vld [vmem:[%s5238_s5 + $0x934] ss:$28 sps:$4 sm:$0xff]   ;;  %v3660_v44 = vld [vmem:[%s5238_s5 + $0x23c] ss:$28 sps:$4 sm:$0xff]   ;;  %v3663_v48 = vld [vmem:[%s5238_s5 + $0x96c] ss:$28 sps:$4 sm:$0xff]  }
  0x9d   :  { %2421 = vmatpush1.bf16.msra.mxu0 %v3595_v53  ;;  %2503 = vmatpush1.bf16.msra.mxu1 %v3598_v59  ;;  %v3658_v46 = vld [vmem:[%s5238_s5 + $0x238] ss:$28 sps:$4 sm:$0xff]   ;;  %v3661_v51 = vld [vmem:[%s5238_s5 + $0x968] ss:$28 sps:$4 sm:$0xff]   ;;  %v3664_v52 = vld [vmem:[%s5238_s5 + $0x270] ss:$28 sps:$4 sm:$0xff]  }
  0x9e   :  { %2452 = vmatprep.mubr.bf16.mxu0 %v4335_v2  ;;  %2534 = vmatprep.mubr.bf16.mxu1 %v4311_v57  ;;  %v3666_v49 = vld [vmem:[%s5238_s5 + $0x274] ss:$28 sps:$4 sm:$0xff]   ;;  %v3669_v53 = vld [vmem:[%s5238_s5 + $0x9a4] ss:$28 sps:$4 sm:$0xff]   ;;  %v3672_v54 = vld [vmem:[%s5238_s5 + $0x2ac] ss:$28 sps:$4 sm:$0xff]  }
  0x9f   :  { %2422 = vmatprep.subr.bf16.mxu0 %v3603_v61  ;;  %2504 = vmatprep.subr.bf16.mxu1 %v3606_v1  ;;  %v3667_v55 = vld [vmem:[%s5238_s5 + $0x9a0] ss:$28 sps:$4 sm:$0xff]   ;;  %v3670_v56 = vld [vmem:[%s5238_s5 + $0x2a8] ss:$28 sps:$4 sm:$0xff]  }
  0xa0   :  { %v3675_v59 = vld [vmem:[%s5238_s5 + $0x9dc] ss:$28 sps:$4 sm:$0xff]   ;;  %v3678_v61 = vld [vmem:[%s5238_s5 + $0x2e4] ss:$28 sps:$4 sm:$0xff]  }
  0xa1   :  { %2423 = vmatpush1.bf16.msra.mxu0 %v3601_v63  ;;  %2505 = vmatpush1.bf16.msra.mxu1 %v3604_v3  ;;  %v3673_v63 = vld [vmem:[%s5238_s5 + $0x9d8] ss:$28 sps:$4 sm:$0xff]   ;;  %v3676_v1 = vld [vmem:[%s5238_s5 + $0x2e0] ss:$28 sps:$4 sm:$0xff]  }
  0xa2   :  { %2424 = vmatprep.subr.bf16.mxu0 %v3609_v4  ;;  %2506 = vmatprep.subr.bf16.mxu1 %v3612_v5  ;;  %v3681_v3 = vld [vmem:[%s5238_s5 + $0xa14] ss:$28 sps:$4 sm:$0xff]   ;;  %v3684_v4 = vld [vmem:[%s5238_s5 + $0x31c] ss:$28 sps:$4 sm:$0xff]  }
  0xa3   :  { %v3679_v5 = vld [vmem:[%s5238_s5 + $0xa10] ss:$28 sps:$4 sm:$0xff]  }
  0xa5   :  { %2425 = vmatpush1.bf16.msra.mxu0 %v3607_v6  ;;  %2507 = vmatpush1.bf16.msra.mxu1 %v3610_v7  ;;  %v3682_v6 = vld [vmem:[%s5238_s5 + $0x318] ss:$28 sps:$4 sm:$0xff]   ;;  %v3687_v7 = vld [vmem:[%s5238_s5 + $0xa4c] ss:$28 sps:$4 sm:$0xff]  }
  0xa6   :  { %2426 = vmatprep.subr.bf16.mxu0 %v3615_v8  ;;  %2508 = vmatprep.subr.bf16.mxu1 %v3618_v9  ;;  %v3690_v8 = vld [vmem:[%s5238_s5 + $0x354] ss:$28 sps:$4 sm:$0xff]   ;;  %v3685_v9 = vld [vmem:[%s5238_s5 + $0xa48] ss:$28 sps:$4 sm:$0xff]  }
  0xa9   :  { %2427 = vmatpush1.bf16.msra.mxu0 %v3613_v10  ;;  %2509 = vmatpush1.bf16.msra.mxu1 %v3616_v11  ;;  %v3688_v10 = vld [vmem:[%s5238_s5 + $0x350] ss:$28 sps:$4 sm:$0xff]   ;;  %v131_v11 = vmax.f32 %v4306_v50, 0.0  ;;  %v3699_v50 = vld [vmem:[%s5238_s5 + $0x3c4] ss:$28 sps:$4 sm:$0xff]  }
  0xaa   :  { %2428 = vmatprep.subr.bf16.mxu0 %v3621_v12  ;;  %2510 = vmatprep.subr.bf16.mxu1 %v3624_v13  ;;  %v3693_v12 = vld [vmem:[%s5238_s5 + $0xa84] ss:$28 sps:$4 sm:$0xff]   ;;  %v3696_v13 = vld [vmem:[%s5238_s5 + $0x38c] ss:$28 sps:$4 sm:$0xff]  }
  0xad   :  { %2429 = vmatpush1.bf16.msra.mxu0 %v3619_v21  ;;  %2511 = vmatpush1.bf16.msra.mxu1 %v3622_v22  ;;  %v3694_v21 = vld [vmem:[%s5238_s5 + $0x388] ss:$28 sps:$4 sm:$0xff]   ;;  %v3691_v22 = vld [vmem:[%s5238_s5 + $0xa80] ss:$28 sps:$4 sm:$0xff]  }
  0xae   :  { %2430 = vmatprep.subr.bf16.mxu0 %v3627_v23  ;;  %2512 = vmatprep.subr.bf16.mxu1 %v3630_v24  ;;  %v4523_v23 = vpack.c.bf16 %v131_v11, %v131_v11  ;;  %v3708_v24 = vld [vmem:[%s5238_s5 + $0xa8c] ss:$28 sps:$4 sm:$0xff]   ;;  %v3765_v11 = vld [vmem:[%s5238_s5 + $0x664] ss:$28 sps:$4 sm:$0xff]  }
  0xb1   :  { %2431 = vmatpush1.bf16.msra.mxu0 %v3625_v25  ;;  %2513 = vmatpush1.bf16.msra.mxu1 %v3628_v26  ;;  %v3697_v25 = vld [vmem:[%s5238_s5 + $0x3c0] ss:$28 sps:$4 sm:$0xff]  }
  0xb2   :  { %2432 = vmatprep.subr.bf16.mxu0 %v3633_v27  ;;  %2514 = vmatprep.subr.bf16.mxu1 %v3636_v28  ;;  %v3702_v26 = vld [vmem:[%s5238_s5 + $0x3fc] ss:$28 sps:$4 sm:$0xff]   ;;  %v133_v28 = vmax.f32 %v4304_v47, 0.0  ;;  %v3711_v47 = vld [vmem:[%s5238_s5 + $0x46c] ss:$28 sps:$4 sm:$0xff]  }
  0xb3   :  { %v3700_v27 = vld [vmem:[%s5238_s5 + $0x3f8] ss:$28 sps:$4 sm:$0xff]  }
  0xb5   :  { %2433 = vmatpush1.bf16.msra.mxu0 %v3631_v29  ;;  %2515 = vmatpush1.bf16.msra.mxu1 %v3634_v30  ;;  %v3705_v29 = vld [vmem:[%s5238_s5 + $0x434] ss:$28 sps:$4 sm:$0xff]  }
  0xb6   :  { %2434 = vmatprep.subr.bf16.mxu0 %v3639_v31  ;;  %2516 = vmatprep.subr.bf16.mxu1 %v3642_v32  ;;  %v3703_v30 = vld [vmem:[%s5238_s5 + $0x430] ss:$28 sps:$4 sm:$0xff]   ;;  %v3706_v31 = vld [vmem:[%s5238_s5 + $0xa88] ss:$28 sps:$4 sm:$0xff]   ;;  %v4554_v32 = vpack.c.bf16 %v133_v28, %v133_v28 }
  0xb7   :  { %v3775_v28 = vld [vmem:[%s5238_s5 + $0x6d0] ss:$28 sps:$4 sm:$0xff]  }
  0xb9   :  { %2435 = vmatpush1.bf16.msra.mxu0 %v3637_v33  ;;  %2517 = vmatpush1.bf16.msra.mxu1 %v3640_v34  ;;  %v3714_v33 = vld [vmem:[%s5238_s5 + $0x14] ss:$28 sps:$4 sm:$0xff]   ;;  %v3709_v34 = vld [vmem:[%s5238_s5 + $0x468] ss:$28 sps:$4 sm:$0xff]  }
  0xba   :  { %2436 = vmatprep.subr.bf16.mxu0 %v3645_v35  ;;  %2518 = vmatprep.subr.bf16.mxu1 %v3648_v36  ;;  %v3717_v35 = vld [vmem:[%s5238_s5 + $0x4a4] ss:$28 sps:$4 sm:$0xff]   ;;  %v3712_v36 = vld [vmem:[%s5238_s5 + $0x10] ss:$28 sps:$4 sm:$0xff]  }
  0xbd   :  { %2437 = vmatpush1.bf16.msra.mxu0 %v3643_v37  ;;  %2519 = vmatpush1.bf16.msra.mxu1 %v3646_v38  ;;  %v3715_v37 = vld [vmem:[%s5238_s5 + $0x4a0] ss:$28 sps:$4 sm:$0xff]   ;;  %v3720_v38 = vld [vmem:[%s5238_s5 + $0x4c] ss:$28 sps:$4 sm:$0xff]  }
  0xbe   :  { %2438 = vmatprep.subr.bf16.mxu0 %v3651_v39  ;;  %2520 = vmatprep.subr.bf16.mxu1 %v3654_v40  ;;  %v3723_v39 = vld [vmem:[%s5238_s5 + $0x4dc] ss:$28 sps:$4 sm:$0xff]   ;;  %v3718_v40 = vld [vmem:[%s5238_s5 + $0x48] ss:$28 sps:$4 sm:$0xff]  }
  0xc1   :  { %2439 = vmatpush1.bf16.msra.mxu0 %v3649_v41  ;;  %2521 = vmatpush1.bf16.msra.mxu1 %v3652_v42  ;;  %v3721_v41 = vld [vmem:[%s5238_s5 + $0x4d8] ss:$28 sps:$4 sm:$0xff]   ;;  %v3726_v42 = vld [vmem:[%s5238_s5 + $0x84] ss:$28 sps:$4 sm:$0xff]  }
  0xc2   :  { %2440 = vmatprep.subr.bf16.mxu0 %v3657_v43  ;;  %2522 = vmatprep.subr.bf16.mxu1 %v3660_v44  ;;  %v3729_v43 = vld [vmem:[%s5238_s5 + $0x514] ss:$28 sps:$4 sm:$0xff]   ;;  %v3724_v44 = vld [vmem:[%s5238_s5 + $0x80] ss:$28 sps:$4 sm:$0xff]  }
  0xc5   :  { %2441 = vmatpush1.bf16.msra.mxu0 %v3655_v45  ;;  %2523 = vmatpush1.bf16.msra.mxu1 %v3658_v46  ;;  %v3727_v45 = vld [vmem:[%s5238_s5 + $0x510] ss:$28 sps:$4 sm:$0xff]   ;;  %v3732_v46 = vld [vmem:[%s5238_s5 + $0xbc] ss:$28 sps:$4 sm:$0xff]  }
  0xc6   :  { %2442 = vmatprep.subr.bf16.mxu0 %v3663_v48  ;;  %2524 = vmatprep.subr.bf16.mxu1 %v3666_v49  ;;  %v3735_v48 = vld [vmem:[%s5238_s5 + $0x54c] ss:$28 sps:$4 sm:$0xff]   ;;  %v3730_v49 = vld [vmem:[%s5238_s5 + $0xb8] ss:$28 sps:$4 sm:$0xff]  }
  0xc9   :  { %2443 = vmatpush1.bf16.msra.mxu0 %v3661_v51  ;;  %2525 = vmatpush1.bf16.msra.mxu1 %v3664_v52  ;;  %v3733_v51 = vld [vmem:[%s5238_s5 + $0x548] ss:$28 sps:$4 sm:$0xff]   ;;  %v3738_v52 = vld [vmem:[%s5238_s5 + $0xf4] ss:$28 sps:$4 sm:$0xff]  }
  0xca   :  { %2444 = vmatprep.subr.bf16.mxu0 %v3669_v53  ;;  %2526 = vmatprep.subr.bf16.mxu1 %v3672_v54  ;;  %v3741_v53 = vld [vmem:[%s5238_s5 + $0x584] ss:$28 sps:$4 sm:$0xff]   ;;  %v3736_v54 = vld [vmem:[%s5238_s5 + $0xf0] ss:$28 sps:$4 sm:$0xff]  }
  0xcd   :  { %2445 = vmatpush1.bf16.msra.mxu0 %v3667_v55  ;;  %2527 = vmatpush1.bf16.msra.mxu1 %v3670_v56  ;;  %v3739_v55 = vld [vmem:[%s5238_s5 + $0x580] ss:$28 sps:$4 sm:$0xff]   ;;  %v3744_v56 = vld [vmem:[%s5238_s5 + $0x12c] ss:$28 sps:$4 sm:$0xff]  }
  0xce   :  { %2446 = vmatprep.subr.bf16.mxu0 %v3675_v59  ;;  %2528 = vmatprep.subr.bf16.mxu1 %v3678_v61  ;;  %v3747_v59 = vld [vmem:[%s5238_s5 + $0x5bc] ss:$28 sps:$4 sm:$0xff]   ;;  %v3742_v61 = vld [vmem:[%s5238_s5 + $0x128] ss:$28 sps:$4 sm:$0xff]  }
  0xd1   :  { %2447 = vmatpush1.bf16.msra.mxu0 %v3673_v63  ;;  %2529 = vmatpush1.bf16.msra.mxu1 %v3676_v1  ;;  %v3745_v63 = vld [vmem:[%s5238_s5 + $0x5b8] ss:$28 sps:$4 sm:$0xff]   ;;  %v3750_v1 = vld [vmem:[%s5238_s5 + $0x164] ss:$28 sps:$4 sm:$0xff]  }
  0xd2   :  { %2448 = vmatprep.subr.bf16.mxu0 %v3681_v3  ;;  %2530 = vmatprep.subr.bf16.mxu1 %v3684_v4  ;;  %v3753_v3 = vld [vmem:[%s5238_s5 + $0x5f4] ss:$28 sps:$4 sm:$0xff]   ;;  %v3748_v4 = vld [vmem:[%s5238_s5 + $0x160] ss:$28 sps:$4 sm:$0xff]  }
  0xd5   :  { %2449 = vmatpush1.bf16.msra.mxu0 %v3679_v5  ;;  %2531 = vmatpush1.bf16.msra.mxu1 %v3682_v6  ;;  %v3751_v5 = vld [vmem:[%s5238_s5 + $0x5f0] ss:$28 sps:$4 sm:$0xff]   ;;  %v3756_v6 = vld [vmem:[%s5238_s5 + $0x19c] ss:$28 sps:$4 sm:$0xff]  }
  0xd6   :  { %2450 = vmatprep.subr.bf16.mxu0 %v3687_v7  ;;  %2532 = vmatprep.subr.bf16.mxu1 %v3690_v8  ;;  %v3759_v7 = vld [vmem:[%s5238_s5 + $0x62c] ss:$28 sps:$4 sm:$0xff]   ;;  %v3754_v8 = vld [vmem:[%s5238_s5 + $0x198] ss:$28 sps:$4 sm:$0xff]  }
  0xd9   :  { %2451 = vmatpush1.bf16.msra.mxu0 %v3685_v9  ;;  %2533 = vmatpush1.bf16.msra.mxu1 %v3688_v10  ;;  %v3757_v9 = vld [vmem:[%s5238_s5 + $0x628] ss:$28 sps:$4 sm:$0xff]   ;;  %v3762_v10 = vld [vmem:[%s5238_s5 + $0x1d4] ss:$28 sps:$4 sm:$0xff]  }
  0xda   :  { %2461 = vmatprep.subr.bf16.mxu0 %v3693_v12  ;;  %2543 = vmatprep.subr.bf16.mxu1 %v3696_v13  ;;  %v3760_v12 = vld [vmem:[%s5238_s5 + $0x1d0] ss:$28 sps:$4 sm:$0xff]   ;;  %v3763_v13 = vld [vmem:[%s5238_s5 + $0x660] ss:$28 sps:$4 sm:$0xff]  }
  0xdc   :  { %2453 = vmatmul.mubr.bf16.vlgmr.msra.gmra.mrb[0].mxu0 %v4523_v23  ;;  %2535 = vmatmul.mubr.bf16.vlgmr.msra.gmra.mrb[4].mxu1 %v4318_v60 }
  0xdd   :  { %2462 = vmatpush1.bf16.msra.mxu0 %v3691_v22  ;;  %2544 = vmatpush1.bf16.msra.mxu1 %v3694_v21  ;;  %v3768_v21 = vld [vmem:[%s5238_s5 + $0x20c] ss:$28 sps:$4 sm:$0xff]   ;;  %v3771_v22 = vld [vmem:[%s5238_s5 + $0x69c] ss:$28 sps:$4 sm:$0xff]  }
  0xde   :  { %2575 = vmatprep.mubr.bf16.mxu1 %v4313_v58  ;;  %2545 = vmatprep.subr.bf16.mxu1 %v3699_v50  ;;  %v3766_v50 = vld [vmem:[%s5238_s5 + $0x208] ss:$28 sps:$4 sm:$0xff]  }
  0xdf   :  { %2493 = vmatprep.mubr.bf16.mxu0 %v4019_v0  ;;  %2625 = vmatprep.subr.bf16.mxu0 %v3708_v24  ;;  %v3769_v24 = vld [vmem:[%s5238_s5 + $0x698] ss:$28 sps:$4 sm:$0xff]  }
  0xe1   :  { %2546 = vmatpush1.bf16.msra.mxu1 %v3697_v25  ;;  %v3774_v25 = vld [vmem:[%s5238_s5 + $0x244] ss:$28 sps:$4 sm:$0xff]  }
  0xe2   :  { %2547 = vmatprep.subr.bf16.mxu1 %v3702_v26  ;;  %v3777_v26 = vld [vmem:[%s5238_s5 + $0x6d4] ss:$28 sps:$4 sm:$0xff]  }
  0xe5   :  { %2548 = vmatpush1.bf16.msra.mxu1 %v3700_v27  ;;  %v3772_v27 = vld [vmem:[%s5238_s5 + $0x240] ss:$28 sps:$4 sm:$0xff]  }
  0xe6   :  { %2549 = vmatprep.subr.bf16.mxu1 %v3705_v29  ;;  %v3780_v29 = vld [vmem:[%s5238_s5 + $0x27c] ss:$28 sps:$4 sm:$0xff]  }
  0xe8   :  { %3379 = vmatmul.mubr.msk.bf16.vlgmr.msra.gmra.mrb[0].mxu0 %vm2334_vm0, %v4554_v32 }
  0xe9   :  { %2550 = vmatpush1.bf16.msra.mxu1 %v3703_v30  ;;  %2626 = vmatpush1.bf16.msra.mxu0 %v3706_v31  ;;  %v3783_v30 = vld [vmem:[%s5238_s5 + $0x70c] ss:$28 sps:$4 sm:$0xff]   ;;  %v3778_v31 = vld [vmem:[%s5238_s5 + $0x278] ss:$28 sps:$4 sm:$0xff]  }
  0xea   :  { %2551 = vmatprep.subr.bf16.mxu1 %v3711_v47  ;;  %2657 = vmatprep.mubr.bf16.mxu0 %v4019_v0  ;;  %v3781_v47 = vld [vmem:[%s5238_s5 + $0x708] ss:$28 sps:$4 sm:$0xff]  }
  0xeb   :  { %2666 = vmatprep.subr.bf16.mxu0 %v3714_v33  ;;  %v3786_v33 = vld [vmem:[%s5238_s5 + $0x2b4] ss:$28 sps:$4 sm:$0xff]  }
  0xed   :  { %2552 = vmatpush1.bf16.msra.mxu1 %v3709_v34  ;;  %v3789_v34 = vld [vmem:[%s5238_s5 + $0x744] ss:$28 sps:$4 sm:$0xff]  }
  0xee   :  { %2553 = vmatprep.subr.bf16.mxu1 %v3717_v35  ;;  %v3784_v35 = vld [vmem:[%s5238_s5 + $0x2b0] ss:$28 sps:$4 sm:$0xff]  }
  0xf0   :  { %3380 = vmatmul.mubr.msk.bf16.vlgmr.msra.gmra.mrb[4].mxu0 %vm2334_vm0, %v4554_v32 }
  0xf1   :  { %2667 = vmatpush1.bf16.msra.mxu0 %v3712_v36  ;;  %2554 = vmatpush1.bf16.msra.mxu1 %v3715_v37  ;;  %v3787_v36 = vld [vmem:[%s5238_s5 + $0x740] ss:$28 sps:$4 sm:$0xff]   ;;  %v3792_v37 = vld [vmem:[%s5238_s5 + $0x2ec] ss:$28 sps:$4 sm:$0xff]  }
  0xf2   :  { %2698 = vmatprep.mubr.bf16.mxu0 %v4311_v57  ;;  %2668 = vmatprep.subr.bf16.mxu0 %v3720_v38  ;;  %v3795_v38 = vld [vmem:[%s5238_s5 + $0x77c] ss:$28 sps:$4 sm:$0xff]  }
  0xf3   :  { %2555 = vmatprep.subr.bf16.mxu1 %v3723_v39  ;;  %v3790_v39 = vld [vmem:[%s5238_s5 + $0x2e8] ss:$28 sps:$4 sm:$0xff]  }
  0xf5   :  { %2669 = vmatpush1.bf16.msra.mxu0 %v3718_v40  ;;  %2556 = vmatpush1.bf16.msra.mxu1 %v3721_v41  ;;  %v3793_v40 = vld [vmem:[%s5238_s5 + $0x778] ss:$28 sps:$4 sm:$0xff]   ;;  %v3798_v41 = vld [vmem:[%s5238_s5 + $0x324] ss:$28 sps:$4 sm:$0xff]  }
  0xf6   :  { %2670 = vmatprep.subr.bf16.mxu0 %v3726_v42  ;;  %2557 = vmatprep.subr.bf16.mxu1 %v3729_v43  ;;  %v3801_v42 = vld [vmem:[%s5238_s5 + $0x7b4] ss:$28 sps:$4 sm:$0xff]   ;;  %v3796_v43 = vld [vmem:[%s5238_s5 + $0x320] ss:$28 sps:$4 sm:$0xff]  }
  0xf9   :  { %2671 = vmatpush1.bf16.msra.mxu0 %v3724_v44  ;;  %2558 = vmatpush1.bf16.msra.mxu1 %v3727_v45  ;;  %v3799_v44 = vld [vmem:[%s5238_s5 + $0x7b0] ss:$28 sps:$4 sm:$0xff]   ;;  %v3804_v45 = vld [vmem:[%s5238_s5 + $0x35c] ss:$28 sps:$4 sm:$0xff]  }
  0xfa   :  { %2672 = vmatprep.subr.bf16.mxu0 %v3732_v46  ;;  %2559 = vmatprep.subr.bf16.mxu1 %v3735_v48  ;;  %v3807_v46 = vld [vmem:[%s5238_s5 + $0x7ec] ss:$28 sps:$4 sm:$0xff]   ;;  %v3802_v48 = vld [vmem:[%s5238_s5 + $0x358] ss:$28 sps:$4 sm:$0xff]  }
  0xfd   :  { %2673 = vmatpush1.bf16.msra.mxu0 %v3730_v49  ;;  %2560 = vmatpush1.bf16.msra.mxu1 %v3733_v51  ;;  %v3805_v49 = vld [vmem:[%s5238_s5 + $0x7e8] ss:$28 sps:$4 sm:$0xff]   ;;  %v3810_v51 = vld [vmem:[%s5238_s5 + $0x394] ss:$28 sps:$4 sm:$0xff]  }
  0xfe   :  { %2674 = vmatprep.subr.bf16.mxu0 %v3738_v52  ;;  %2561 = vmatprep.subr.bf16.mxu1 %v3741_v53  ;;  %v3813_v52 = vld [vmem:[%s5238_s5 + $0x824] ss:$28 sps:$4 sm:$0xff]   ;;  %v3808_v53 = vld [vmem:[%s5238_s5 + $0x390] ss:$28 sps:$4 sm:$0xff]  }
 0x101   :  { %2675 = vmatpush1.bf16.msra.mxu0 %v3736_v54  ;;  %2562 = vmatpush1.bf16.msra.mxu1 %v3739_v55  ;;  %v3811_v54 = vld [vmem:[%s5238_s5 + $0x820] ss:$28 sps:$4 sm:$0xff]   ;;  %v3816_v55 = vld [vmem:[%s5238_s5 + $0x3cc] ss:$28 sps:$4 sm:$0xff]  }
 0x102   :  { %2676 = vmatprep.subr.bf16.mxu0 %v3744_v56  ;;  %2563 = vmatprep.subr.bf16.mxu1 %v3747_v59  ;;  %v3819_v56 = vld [vmem:[%s5238_s5 + $0x85c] ss:$28 sps:$4 sm:$0xff]   ;;  %v3814_v59 = vld [vmem:[%s5238_s5 + $0x3c8] ss:$28 sps:$4 sm:$0xff]  }
 0x105   :  { %2677 = vmatpush1.bf16.msra.mxu0 %v3742_v61  ;;  %2564 = vmatpush1.bf16.msra.mxu1 %v3745_v63  ;;  %v3817_v61 = vld [vmem:[%s5238_s5 + $0x858] ss:$28 sps:$4 sm:$0xff]   ;;  %v3822_v63 = vld [vmem:[%s5238_s5 + $0x404] ss:$28 sps:$4 sm:$0xff]  }
 0x106   :  { %2678 = vmatprep.subr.bf16.mxu0 %v3750_v1  ;;  %2565 = vmatprep.subr.bf16.mxu1 %v3753_v3  ;;  %v3825_v1 = vld [vmem:[%s5238_s5 + $0x894] ss:$28 sps:$4 sm:$0xff]   ;;  %v3820_v3 = vld [vmem:[%s5238_s5 + $0x400] ss:$28 sps:$4 sm:$0xff]  }
 0x109   :  { %2679 = vmatpush1.bf16.msra.mxu0 %v3748_v4  ;;  %2566 = vmatpush1.bf16.msra.mxu1 %v3751_v5  ;;  %v3823_v4 = vld [vmem:[%s5238_s5 + $0x890] ss:$28 sps:$4 sm:$0xff]   ;;  %v3828_v5 = vld [vmem:[%s5238_s5 + $0x43c] ss:$28 sps:$4 sm:$0xff]  }
 0x10a   :  { %2680 = vmatprep.subr.bf16.mxu0 %v3756_v6  ;;  %2567 = vmatprep.subr.bf16.mxu1 %v3759_v7  ;;  %v3831_v6 = vld [vmem:[%s5238_s5 + $0x8cc] ss:$28 sps:$4 sm:$0xff]   ;;  %v3826_v7 = vld [vmem:[%s5238_s5 + $0x438] ss:$28 sps:$4 sm:$0xff]  }
 0x10d   :  { %2681 = vmatpush1.bf16.msra.mxu0 %v3754_v8  ;;  %2568 = vmatpush1.bf16.msra.mxu1 %v3757_v9  ;;  %v3829_v8 = vld [vmem:[%s5238_s5 + $0x8c8] ss:$28 sps:$4 sm:$0xff]   ;;  %v3834_v9 = vld [vmem:[%s5238_s5 + $0x474] ss:$28 sps:$4 sm:$0xff]  }
 0x10e   :  { %2682 = vmatprep.subr.bf16.mxu0 %v3762_v10  ;;  %2569 = vmatprep.subr.bf16.mxu1 %v3765_v11  ;;  %v3837_v10 = vld [vmem:[%s5238_s5 + $0x904] ss:$28 sps:$4 sm:$0xff]   ;;  %v3832_v11 = vld [vmem:[%s5238_s5 + $0x470] ss:$28 sps:$4 sm:$0xff]  }
 0x111   :  { %2683 = vmatpush1.bf16.msra.mxu0 %v3760_v12  ;;  %2570 = vmatpush1.bf16.msra.mxu1 %v3763_v13  ;;  %v3835_v12 = vld [vmem:[%s5238_s5 + $0x900] ss:$28 sps:$4 sm:$0xff]   ;;  %v3840_v13 = vld [vmem:[%s5238_s5 + $0x4ac] ss:$28 sps:$4 sm:$0xff]  }
 0x112   :  { %2684 = vmatprep.subr.bf16.mxu0 %v3768_v21  ;;  %2571 = vmatprep.subr.bf16.mxu1 %v3771_v22  ;;  %v3843_v21 = vld [vmem:[%s5238_s5 + $0x93c] ss:$28 sps:$4 sm:$0xff]   ;;  %v3838_v22 = vld [vmem:[%s5238_s5 + $0x4a8] ss:$28 sps:$4 sm:$0xff]  }
 0x115   :  { %2685 = vmatpush1.bf16.msra.mxu0 %v3766_v50  ;;  %2572 = vmatpush1.bf16.msra.mxu1 %v3769_v24  ;;  %v3841_v50 = vld [vmem:[%s5238_s5 + $0x938] ss:$28 sps:$4 sm:$0xff]   ;;  %v3846_v24 = vld [vmem:[%s5238_s5 + $0x4e4] ss:$28 sps:$4 sm:$0xff]  }
 0x116   :  { %2686 = vmatprep.subr.bf16.mxu0 %v3774_v25  ;;  %2573 = vmatprep.subr.bf16.mxu1 %v3777_v26  ;;  %v3849_v25 = vld [vmem:[%s5238_s5 + $0x974] ss:$28 sps:$4 sm:$0xff]   ;;  %v3844_v26 = vld [vmem:[%s5238_s5 + $0x4e0] ss:$28 sps:$4 sm:$0xff]  }
 0x119   :  { %2687 = vmatpush1.bf16.msra.mxu0 %v3772_v27  ;;  %2574 = vmatpush1.bf16.msra.mxu1 %v3775_v28  ;;  %v3847_v27 = vld [vmem:[%s5238_s5 + $0x970] ss:$28 sps:$4 sm:$0xff]   ;;  %v3852_v28 = vld [vmem:[%s5238_s5 + $0x51c] ss:$28 sps:$4 sm:$0xff]  }
 0x11a   :  { %2688 = vmatprep.subr.bf16.mxu0 %v3780_v29  ;;  %2584 = vmatprep.subr.bf16.mxu1 %v3783_v30  ;;  %v3855_v29 = vld [vmem:[%s5238_s5 + $0x9ac] ss:$28 sps:$4 sm:$0xff]   ;;  %v3850_v30 = vld [vmem:[%s5238_s5 + $0x518] ss:$28 sps:$4 sm:$0xff]  }
 0x11c   :  { %2576 = vmatmul.mubr.bf16.vlgmr.msra.gmra.mrb[4].mxu1 %v4323_v62 }
 0x11d   :  { %2689 = vmatpush1.bf16.msra.mxu0 %v3778_v31  ;;  %2585 = vmatpush1.bf16.msra.mxu1 %v3781_v47  ;;  %v3853_v31 = vld [vmem:[%s5238_s5 + $0x9a8] ss:$28 sps:$4 sm:$0xff]   ;;  %v3858_v47 = vld [vmem:[%s5238_s5 + $0x554] ss:$28 sps:$4 sm:$0xff]  }
 0x11e   :  { %2616 = vmatprep.mubr.bf16.mxu1 %v4335_v2  ;;  %2690 = vmatprep.subr.bf16.mxu0 %v3786_v33  ;;  %v3861_v33 = vld [vmem:[%s5238_s5 + $0x9e4] ss:$28 sps:$4 sm:$0xff]  }
 0x11f   :  { %2586 = vmatprep.subr.bf16.mxu1 %v3789_v34  ;;  %v3856_v34 = vld [vmem:[%s5238_s5 + $0x550] ss:$28 sps:$4 sm:$0xff]  }
 0x121   :  { %2691 = vmatpush1.bf16.msra.mxu0 %v3784_v35  ;;  %2587 = vmatpush1.bf16.msra.mxu1 %v3787_v36  ;;  %v3859_v35 = vld [vmem:[%s5238_s5 + $0x9e0] ss:$28 sps:$4 sm:$0xff]   ;;  %v3864_v36 = vld [vmem:[%s5238_s5 + $0x58c] ss:$28 sps:$4 sm:$0xff]  }
 0x122   :  { %2692 = vmatprep.subr.bf16.mxu0 %v3792_v37  ;;  %2588 = vmatprep.subr.bf16.mxu1 %v3795_v38  ;;  %v3867_v37 = vld [vmem:[%s5238_s5 + $0xa1c] ss:$28 sps:$4 sm:$0xff]   ;;  %v3862_v38 = vld [vmem:[%s5238_s5 + $0x588] ss:$28 sps:$4 sm:$0xff]  }
 0x125   :  { %2693 = vmatpush1.bf16.msra.mxu0 %v3790_v39  ;;  %2589 = vmatpush1.bf16.msra.mxu1 %v3793_v40  ;;  %v3865_v39 = vld [vmem:[%s5238_s5 + $0xa18] ss:$28 sps:$4 sm:$0xff]   ;;  %v3870_v40 = vld [vmem:[%s5238_s5 + $0x5c4] ss:$28 sps:$4 sm:$0xff]  }
 0x126   :  { %2694 = vmatprep.subr.bf16.mxu0 %v3798_v41  ;;  %2590 = vmatprep.subr.bf16.mxu1 %v3801_v42  ;;  %v3873_v41 = vld [vmem:[%s5238_s5 + $0xa54] ss:$28 sps:$4 sm:$0xff]   ;;  %v3868_v42 = vld [vmem:[%s5238_s5 + $0x5c0] ss:$28 sps:$4 sm:$0xff]  }
 0x129   :  { %2695 = vmatpush1.bf16.msra.mxu0 %v3796_v43  ;;  %2591 = vmatpush1.bf16.msra.mxu1 %v3799_v44  ;;  %v3871_v43 = vld [vmem:[%s5238_s5 + $0xa50] ss:$28 sps:$4 sm:$0xff]   ;;  %v3876_v44 = vld [vmem:[%s5238_s5 + $0x5fc] ss:$28 sps:$4 sm:$0xff]  }
 0x12a   :  { %2696 = vmatprep.subr.bf16.mxu0 %v3804_v45  ;;  %2592 = vmatprep.subr.bf16.mxu1 %v3807_v46  ;;  %v3877_v45 = vld [vmem:[%s5238_s5 + $0x1d8] ss:$28 sps:$4 sm:$0xff]  }
 0x12b   :  { %v3874_v46 = vld [vmem:[%s5238_s5 + $0x5f8] ss:$28 sps:$4 sm:$0xff]  }
 0x12d   :  { %2697 = vmatpush1.bf16.msra.mxu0 %v3802_v48  ;;  %2593 = vmatpush1.bf16.msra.mxu1 %v3805_v49  ;;  %v3878_v48 = vld [vmem:[%s5238_s5 + $0x18] ss:$28 sps:$4 sm:$0xff]  }
 0x12e   :  { %2707 = vmatprep.subr.bf16.mxu0 %v3810_v51  ;;  %2594 = vmatprep.subr.bf16.mxu1 %v3813_v52  ;;  %v3881_v49 = vld [vmem:[%s5238_s5 + $0x634] ss:$28 sps:$4 sm:$0xff]  }
 0x12f   :  { %v3882_v51 = vld [vmem:[%s5238_s5 + $0x210] ss:$28 sps:$4 sm:$0xff]  }
 0x130   :  { %2699 = vmatmul.mubr.bf16.vlgmr.msra.gmra.mrb[8].mxu0 %v4318_v60  ;;  %v3879_v52 = vld [vmem:[%s5238_s5 + $0x630] ss:$28 sps:$4 sm:$0xff]  }
 0x131   :  { %2708 = vmatpush1.bf16.msra.mxu0 %v3808_v53  ;;  %2739 = vmatprep.mubr.bf16.mxu0 %v4313_v58  ;;  %v3883_v53 = vld [vmem:[%s5238_s5 + $0x50] ss:$28 sps:$4 sm:$0xff]  }
 0x132   :  { %2595 = vmatpush1.bf16.msra.mxu1 %v3811_v54  ;;  %2709 = vmatprep.subr.bf16.mxu0 %v3816_v55  ;;  %v3886_v54 = vld [vmem:[%s5238_s5 + $0x66c] ss:$28 sps:$4 sm:$0xff]  }
 0x133   :  { %2596 = vmatprep.subr.bf16.mxu1 %v3819_v56  ;;  %v3887_v55 = vld [vmem:[%s5238_s5 + $0x248] ss:$28 sps:$4 sm:$0xff]  }
 0x134   :  { %v3884_v56 = vld [vmem:[%s5238_s5 + $0x668] ss:$28 sps:$4 sm:$0xff]  }
 0x135   :  { %2710 = vmatpush1.bf16.msra.mxu0 %v3814_v59  ;;  %v3891_v59 = vld [vmem:[%s5238_s5 + $0x6a4] ss:$28 sps:$4 sm:$0xff]  }
 0x136   :  { %2597 = vmatpush1.bf16.msra.mxu1 %v3817_v61  ;;  %2711 = vmatprep.subr.bf16.mxu0 %v3822_v63  ;;  %v3892_v61 = vld [vmem:[%s5238_s5 + $0x280] ss:$28 sps:$4 sm:$0xff]  }
 0x137   :  { %2598 = vmatprep.subr.bf16.mxu1 %v3825_v1  ;;  %v3889_v63 = vld [vmem:[%s5238_s5 + $0x6a0] ss:$28 sps:$4 sm:$0xff]  }
 0x138   :  { %v3893_v1 = vld [vmem:[%s5238_s5 + $0xc0] ss:$28 sps:$4 sm:$0xff]  }
 0x139   :  { %2712 = vmatpush1.bf16.msra.mxu0 %v3820_v3  ;;  %v3896_v3 = vld [vmem:[%s5238_s5 + $0x6dc] ss:$28 sps:$4 sm:$0xff]  }
 0x13a   :  { %2599 = vmatpush1.bf16.msra.mxu1 %v3823_v4  ;;  %2713 = vmatprep.subr.bf16.mxu0 %v3828_v5  ;;  %v3897_v4 = vld [vmem:[%s5238_s5 + $0x2b8] ss:$28 sps:$4 sm:$0xff]  }
 0x13b   :  { %2600 = vmatprep.subr.bf16.mxu1 %v3831_v6  ;;  %v3894_v5 = vld [vmem:[%s5238_s5 + $0x6d8] ss:$28 sps:$4 sm:$0xff]  }
 0x13c   :  { %v3898_v6 = vld [vmem:[%s5238_s5 + $0xf8] ss:$28 sps:$4 sm:$0xff]  }
 0x13d   :  { %2714 = vmatpush1.bf16.msra.mxu0 %v3826_v7  ;;  %v3901_v7 = vld [vmem:[%s5238_s5 + $0x714] ss:$28 sps:$4 sm:$0xff]  }
 0x13e   :  { %2601 = vmatpush1.bf16.msra.mxu1 %v3829_v8  ;;  %2715 = vmatprep.subr.bf16.mxu0 %v3834_v9  ;;  %v3902_v8 = vld [vmem:[%s5238_s5 + $0x2f0] ss:$28 sps:$4 sm:$0xff]  }
 0x13f   :  { %2602 = vmatprep.subr.bf16.mxu1 %v3837_v10  ;;  %v3899_v9 = vld [vmem:[%s5238_s5 + $0x710] ss:$28 sps:$4 sm:$0xff]  }
 0x140   :  { %v3903_v10 = vld [vmem:[%s5238_s5 + $0x130] ss:$28 sps:$4 sm:$0xff]  }
 0x141   :  { %2716 = vmatpush1.bf16.msra.mxu0 %v3832_v11  ;;  %v3906_v11 = vld [vmem:[%s5238_s5 + $0x74c] ss:$28 sps:$4 sm:$0xff]  }
 0x142   :  { %2603 = vmatpush1.bf16.msra.mxu1 %v3835_v12  ;;  %2717 = vmatprep.subr.bf16.mxu0 %v3840_v13  ;;  %v3907_v13 = vld [vmem:[%s5238_s5 + $0x328] ss:$28 sps:$4 sm:$0xff]  }
 0x143   :  { %2604 = vmatprep.subr.bf16.mxu1 %v3843_v21 }
 0x145   :  { %2718 = vmatpush1.bf16.msra.mxu0 %v3838_v22 }
 0x146   :  { %2605 = vmatpush1.bf16.msra.mxu1 %v3841_v50  ;;  %2719 = vmatprep.subr.bf16.mxu0 %v3846_v24  ;;  %v3904_v50 = vld [vmem:[%s5238_s5 + $0x748] ss:$28 sps:$4 sm:$0xff]  }
 0x147   :  { %2606 = vmatprep.subr.bf16.mxu1 %v3849_v25  ;;  %v3908_v25 = vld [vmem:[%s5238_s5 + $0x168] ss:$28 sps:$4 sm:$0xff]  }
 0x149   :  { %2720 = vmatpush1.bf16.msra.mxu0 %v3844_v26  ;;  %v3911_v26 = vld [vmem:[%s5238_s5 + $0x784] ss:$28 sps:$4 sm:$0xff]  }
 0x14a   :  { %2607 = vmatpush1.bf16.msra.mxu1 %v3847_v27  ;;  %2721 = vmatprep.subr.bf16.mxu0 %v3852_v28  ;;  %v3912_v27 = vld [vmem:[%s5238_s5 + $0x360] ss:$28 sps:$4 sm:$0xff]  }
 0x14b   :  { %2608 = vmatprep.subr.bf16.mxu1 %v3855_v29  ;;  %v3909_v28 = vld [vmem:[%s5238_s5 + $0x780] ss:$28 sps:$4 sm:$0xff]  }
 0x14c   :  { %v3913_v29 = vld [vmem:[%s5238_s5 + $0x1a0] ss:$28 sps:$4 sm:$0xff]  }
 0x14d   :  { %2722 = vmatpush1.bf16.msra.mxu0 %v3850_v30  ;;  %v3916_v30 = vld [vmem:[%s5238_s5 + $0x7bc] ss:$28 sps:$4 sm:$0xff]  }
 0x14e   :  { %2609 = vmatpush1.bf16.msra.mxu1 %v3853_v31  ;;  %2723 = vmatprep.subr.bf16.mxu0 %v3858_v47  ;;  %v3917_v31 = vld [vmem:[%s5238_s5 + $0x558] ss:$28 sps:$4 sm:$0xff]  }
 0x14f   :  { %2610 = vmatprep.subr.bf16.mxu1 %v3861_v33  ;;  %v3914_v47 = vld [vmem:[%s5238_s5 + $0x7b8] ss:$28 sps:$4 sm:$0xff]  }
 0x150   :  { %v3918_v33 = vld [vmem:[%s5238_s5 + $0x398] ss:$28 sps:$4 sm:$0xff]  }
 0x151   :  { %2724 = vmatpush1.bf16.msra.mxu0 %v3856_v34  ;;  %v3921_v34 = vld [vmem:[%s5238_s5 + $0x7f4] ss:$28 sps:$4 sm:$0xff]  }
 0x152   :  { %2611 = vmatpush1.bf16.msra.mxu1 %v3859_v35  ;;  %2725 = vmatprep.subr.bf16.mxu0 %v3864_v36  ;;  %v3922_v35 = vld [vmem:[%s5238_s5 + $0x590] ss:$28 sps:$4 sm:$0xff]  }
 0x153   :  { %2612 = vmatprep.subr.bf16.mxu1 %v3867_v37  ;;  %v3919_v36 = vld [vmem:[%s5238_s5 + $0x7f0] ss:$28 sps:$4 sm:$0xff]  }
 0x154   :  { %v3923_v37 = vld [vmem:[%s5238_s5 + $0x3d0] ss:$28 sps:$4 sm:$0xff]  }
 0x155   :  { %2726 = vmatpush1.bf16.msra.mxu0 %v3862_v38  ;;  %v3926_v38 = vld [vmem:[%s5238_s5 + $0x82c] ss:$28 sps:$4 sm:$0xff]  }
 0x156   :  { %2613 = vmatpush1.bf16.msra.mxu1 %v3865_v39  ;;  %2727 = vmatprep.subr.bf16.mxu0 %v3870_v40  ;;  %v3924_v39 = vld [vmem:[%s5238_s5 + $0x828] ss:$28 sps:$4 sm:$0xff]  }
 0x157   :  { %2614 = vmatprep.subr.bf16.mxu1 %v3873_v41  ;;  %v3931_v40 = vld [vmem:[%s5238_s5 + $0x864] ss:$28 sps:$4 sm:$0xff]  }
 0x158   :  { %v3932_v41 = vld [vmem:[%s5238_s5 + $0x600] ss:$28 sps:$4 sm:$0xff]  }
 0x159   :  { %2728 = vmatpush1.bf16.msra.mxu0 %v3868_v42  ;;  %v3929_v42 = vld [vmem:[%s5238_s5 + $0x860] ss:$28 sps:$4 sm:$0xff]  }
 0x15a   :  { %2615 = vmatpush1.bf16.msra.mxu1 %v3871_v43  ;;  %2729 = vmatprep.subr.bf16.mxu0 %v3876_v44  ;;  %v3933_v43 = vld [vmem:[%s5238_s5 + $0x440] ss:$28 sps:$4 sm:$0xff]  }
 0x15b   :  { %3383 = vmatprep.subr.bf16.mxu1 %v3877_v45  ;;  %v3936_v44 = vld [vmem:[%s5238_s5 + $0x89c] ss:$28 sps:$4 sm:$0xff]  }
 0x15c   :  { %v3937_v45 = vld [vmem:[%s5238_s5 + $0x638] ss:$28 sps:$4 sm:$0xff]  }
 0x15d   :  { %2617 = vmatmul.mubr.bf16.vlgmr.msra.gmra.mrb[4].mxu1 %v4523_v23  ;;  %2730 = vmatpush1.bf16.msra.mxu0 %v3874_v46  ;;  %v3934_v46 = vld [vmem:[%s5238_s5 + $0x898] ss:$28 sps:$4 sm:$0xff]  }
 0x15e   :  { %3384 = vmatpush3.bf16.msra.mxu1 %v3878_v48  ;;  %2862 = vmatprep.mubr.bf16.mxu1 %v4311_v57  ;;  %v3888_v57 = vld [vmem:[%s5238_s5 + $0x88] ss:$28 sps:$4 sm:$0xff]   ;;  %v3938_v48 = vld [vmem:[%s5238_s5 + $0x478] ss:$28 sps:$4 sm:$0xff]  }
 0x15f   :  { %2731 = vmatprep.subr.bf16.mxu0 %v3881_v49  ;;  %3385 = vmatprep.subr.bf16.mxu1 %v3882_v51  ;;  %v3941_v49 = vld [vmem:[%s5238_s5 + $0x8d4] ss:$28 sps:$4 sm:$0xff]  }
 0x160   :  { %v3942_v51 = vld [vmem:[%s5238_s5 + $0x670] ss:$28 sps:$4 sm:$0xff]  }
 0x161   :  { %2732 = vmatpush1.bf16.msra.mxu0 %v3879_v52  ;;  %v3939_v52 = vld [vmem:[%s5238_s5 + $0x8d0] ss:$28 sps:$4 sm:$0xff]  }
 0x162   :  { %3386 = vmatpush3.bf16.msra.mxu1 %v3883_v53  ;;  %2733 = vmatprep.subr.bf16.mxu0 %v3886_v54  ;;  %v3943_v53 = vld [vmem:[%s5238_s5 + $0x4b0] ss:$28 sps:$4 sm:$0xff]  }
 0x163   :  { %3387 = vmatprep.subr.bf16.mxu1 %v3887_v55  ;;  %v3946_v54 = vld [vmem:[%s5238_s5 + $0x90c] ss:$28 sps:$4 sm:$0xff]  }
 0x164   :  { %v3947_v55 = vld [vmem:[%s5238_s5 + $0x6a8] ss:$28 sps:$4 sm:$0xff]  }
 0x165   :  { %2734 = vmatpush1.bf16.msra.mxu0 %v3884_v56  ;;  %v3944_v56 = vld [vmem:[%s5238_s5 + $0x908] ss:$28 sps:$4 sm:$0xff]  }
 0x166   :  { %3388 = vmatpush3.bf16.msra.mxu1 %v3888_v57  ;;  %2735 = vmatprep.subr.bf16.mxu0 %v3891_v59  ;;  %v3948_v57 = vld [vmem:[%s5238_s5 + $0x4e8] ss:$28 sps:$4 sm:$0xff]  }
 0x167   :  { %3389 = vmatprep.subr.bf16.mxu1 %v3892_v61  ;;  %v3951_v59 = vld [vmem:[%s5238_s5 + $0x944] ss:$28 sps:$4 sm:$0xff]  }
 0x168   :  { %v3952_v61 = vld [vmem:[%s5238_s5 + $0x6e0] ss:$28 sps:$4 sm:$0xff]  }
 0x169   :  { %2736 = vmatpush1.bf16.msra.mxu0 %v3889_v63  ;;  %v3949_v63 = vld [vmem:[%s5238_s5 + $0x940] ss:$28 sps:$4 sm:$0xff]  }
 0x16a   :  { %3390 = vmatpush3.bf16.msra.mxu1 %v3893_v1  ;;  %2737 = vmatprep.subr.bf16.mxu0 %v3896_v3  ;;  %v3953_v1 = vld [vmem:[%s5238_s5 + $0x520] ss:$28 sps:$4 sm:$0xff]  }
 0x16b   :  { %3391 = vmatprep.subr.bf16.mxu1 %v3897_v4  ;;  %v3956_v3 = vld [vmem:[%s5238_s5 + $0x97c] ss:$28 sps:$4 sm:$0xff]  }
 0x16c   :  { %v3957_v4 = vld [vmem:[%s5238_s5 + $0x8d8] ss:$28 sps:$4 sm:$0xff]  }
 0x16d   :  { %2738 = vmatpush1.bf16.msra.mxu0 %v3894_v5  ;;  %v3954_v5 = vld [vmem:[%s5238_s5 + $0x978] ss:$28 sps:$4 sm:$0xff]  }
 0x16e   :  { %3392 = vmatpush3.bf16.msra.mxu1 %v3898_v6  ;;  %2748 = vmatprep.subr.bf16.mxu0 %v3901_v7  ;;  %v3958_v6 = vld [vmem:[%s5238_s5 + $0x718] ss:$28 sps:$4 sm:$0xff]  }
 0x16f   :  { %v4973_v12 = vpop.f32.mrb[0].mxu1  ;;  %3393 = vmatprep.subr.bf16.mxu1 %v3902_v8  ;;  %v3961_v7 = vld [vmem:[%s5238_s5 + $0x9b4] ss:$28 sps:$4 sm:$0xff]  }
 0x170   :  { %2740 = vmatmul.mubr.bf16.vlgmr.msra.gmra.mrb[8].mxu0 %v4323_v62  ;;  %v4979_v21 = vpop.f32.mrb[1].mxu1  ;;  %v3962_v8 = vld [vmem:[%s5238_s5 + $0x910] ss:$28 sps:$4 sm:$0xff]  }
 0x171   :  { %2749 = vmatpush1.bf16.msra.mxu0 %v3899_v9  ;;  %2780 = vmatprep.mubr.bf16.mxu0 %v4335_v2  ;;  %v2376_v22 = vpop.f32.mrb[2].mxu1  ;;  %v3959_v9 = vld [vmem:[%s5238_s5 + $0x9b0] ss:$28 sps:$4 sm:$0xff]  }
 0x172   :  { %3394 = vmatpush3.bf16.msra.mxu1 %v3903_v10  ;;  %v2377_v24 = vpop.f32.mrb[3].mxu1  ;;  %2750 = vmatprep.subr.bf16.mxu0 %v3906_v11  ;;  %v3963_v10 = vld [vmem:[%s5238_s5 + $0x750] ss:$28 sps:$4 sm:$0xff]   ;;  %v3971_v22 = vld [vmem:[%s5238_s5 + $0xa24] ss:$28 sps:$4 sm:$0xff]  }
 0x173   :  { %3395 = vmatprep.subr.bf16.mxu1 %v3907_v13  ;;  %v3966_v11 = vld [vmem:[%s5238_s5 + $0x9ec] ss:$28 sps:$4 sm:$0xff]   ;;  %v3969_v24 = vld [vmem:[%s5238_s5 + $0xa20] ss:$28 sps:$4 sm:$0xff]  }
 0x174   :  { %v3964_v13 = vld [vmem:[%s5238_s5 + $0x9e8] ss:$28 sps:$4 sm:$0xff]  }
 0x175   :  { %2751 = vmatpush1.bf16.msra.mxu0 %v3904_v50  ;;  %v3972_v50 = vld [vmem:[%s5238_s5 + $0x980] ss:$28 sps:$4 sm:$0xff]  }
 0x176   :  { %3396 = vmatpush3.bf16.msra.mxu1 %v3908_v25  ;;  %2752 = vmatprep.subr.bf16.mxu0 %v3911_v26  ;;  %v3973_v25 = vld [vmem:[%s5238_s5 + $0x7c0] ss:$28 sps:$4 sm:$0xff]  }
 0x177   :  { %3397 = vmatprep.subr.bf16.mxu1 %v3912_v27  ;;  %v3976_v26 = vld [vmem:[%s5238_s5 + $0xa5c] ss:$28 sps:$4 sm:$0xff]  }
 0x178   :  { %v3977_v27 = vld [vmem:[%s5238_s5 + $0x9b8] ss:$28 sps:$4 sm:$0xff]  }
 0x179   :  { %2753 = vmatpush1.bf16.msra.mxu0 %v3909_v28  ;;  %v3974_v28 = vld [vmem:[%s5238_s5 + $0xa58] ss:$28 sps:$4 sm:$0xff]  }
 0x17a   :  { %3398 = vmatpush3.bf16.msra.mxu1 %v3913_v29  ;;  %2754 = vmatprep.subr.bf16.mxu0 %v3916_v30  ;;  %v3978_v29 = vld [vmem:[%s5238_s5 + $0x7f8] ss:$28 sps:$4 sm:$0xff]  }
 0x17b   :  { %3405 = vmatprep.subr.bf16.mxu1 %v3917_v31  ;;  %v3981_v30 = vld [vmem:[%s5238_s5 + $0xa94] ss:$28 sps:$4 sm:$0xff]  }
 0x17c   :  { %v3982_v31 = vld [vmem:[%s5238_s5 + $0x9f0] ss:$28 sps:$4 sm:$0xff]  }
 0x17d   :  { %2755 = vmatpush1.bf16.msra.mxu0 %v3914_v47  ;;  %2863 = vmatmul.mubr.bf16.vlgmr.msra.gmra.mrb[8].mxu1 %v4318_v60  ;;  %v3927_v60 = vld [vmem:[%s5238_s5 + $0x5c8] ss:$28 sps:$4 sm:$0xff]   ;;  %v3979_v47 = vld [vmem:[%s5238_s5 + $0xa90] ss:$28 sps:$4 sm:$0xff]  }
 0x17e   :  { %3406 = vmatpush3.bf16.msra.mxu1 %v3918_v33  ;;  %2902 = vmatprep.mubr.bf16.mxu1 %v4313_v58  ;;  %v3928_v58 = vld [vmem:[%s5238_s5 + $0x408] ss:$28 sps:$4 sm:$0xff]   ;;  %v3983_v33 = vld [vmem:[%s5238_s5 + $0x830] ss:$28 sps:$4 sm:$0xff]  }
 0x17f   :  { %2756 = vmatprep.subr.bf16.mxu0 %v3921_v34  ;;  %3407 = vmatprep.subr.bf16.mxu1 %v3922_v35  ;;  %v3984_v34 = vld [vmem:[%s5238_s5 + $0xa28] ss:$28 sps:$4 sm:$0xff]  }
 0x180   :  { %v3985_v35 = vld [vmem:[%s5238_s5 + $0x868] ss:$28 sps:$4 sm:$0xff]  }
 0x181   :  { %2757 = vmatpush1.bf16.msra.mxu0 %v3919_v36  ;;  %v4020_v36 = vmov 0.0  }
 0x182   :  { %3408 = vmatpush3.bf16.msra.mxu1 %v3923_v37  ;;  %2758 = vmatprep.subr.bf16.mxu0 %v3926_v38  ;;  %v5183_v37 = vld [vmem:[%s5243_s6] sm:$0x7f] }
 0x183   :  { %3409 = vmatprep.subr.bf16.mxu1 %v3927_v60  ;;  %v3986_v38 = vld [vmem:[%s5238_s5 + $0xa60] ss:$28 sps:$4 sm:$0xff]  }
 0x184   :  { %v3987_v60 = vld [vmem:[%s5238_s5 + $0x8a0] ss:$28 sps:$4 sm:$0xff]  }
 0x185   :  { %2759 = vmatpush1.bf16.msra.mxu0 %v3924_v39  ;;  %v542_v39 = vrot.slane %v5183_v37, %v4275_v15 }
 0x186   :  { %3410 = vmatpush3.bf16.msra.mxu1 %v3928_v58  ;;  %2760 = vmatprep.subr.bf16.mxu0 %v3931_v40  ;;  %v3988_v58 = vld [vmem:[%s5238_s5 + $0xa98] ss:$28 sps:$4 sm:$0xff]  }
 0x187   :  { %3411 = vmatprep.subr.bf16.mxu1 %v3932_v41  ;;  %v2375_v41 = vadd.f32 %v4979_v21, %v542_v39 }
 0x189   :  { %2761 = vmatpush1.bf16.msra.mxu0 %v3929_v42 }
 0x18a   :  { %3412 = vmatpush3.bf16.msra.mxu1 %v3933_v43  ;;  %2762 = vmatprep.subr.bf16.mxu0 %v3936_v44 }
 0x18b   :  { %3413 = vmatprep.subr.bf16.mxu1 %v3937_v45 }
 0x18d   :  { %2763 = vmatpush1.bf16.msra.mxu0 %v3934_v46 }
 0x18e   :  { %3414 = vmatpush3.bf16.msra.mxu1 %v3938_v48  ;;  %2764 = vmatprep.subr.bf16.mxu0 %v3941_v49 }
 0x18f   :  { %3415 = vmatprep.subr.bf16.mxu1 %v3942_v51 }
 0x191   :  { %2765 = vmatpush1.bf16.msra.mxu0 %v3939_v52 }
 0x192   :  { %3416 = vmatpush3.bf16.msra.mxu1 %v3943_v53  ;;  %2766 = vmatprep.subr.bf16.mxu0 %v3946_v54 }
 0x193   :  { %3417 = vmatprep.subr.bf16.mxu1 %v3947_v55 }
 0x195   :  { %2767 = vmatpush1.bf16.msra.mxu0 %v3944_v56 }
 0x196   :  { %3418 = vmatpush3.bf16.msra.mxu1 %v3948_v57  ;;  %2768 = vmatprep.subr.bf16.mxu0 %v3951_v59 }
 0x197   :  { %3419 = vmatprep.subr.bf16.mxu1 %v3952_v61  ;;  %v550_v61 = vrot.slane %v5183_v37, %v4277_v16 }
 0x199   :  { %2769 = vmatpush1.bf16.msra.mxu0 %v3949_v63 }
 0x19a   :  { %3420 = vmatpush3.bf16.msra.mxu1 %v3953_v1  ;;  %2770 = vmatprep.subr.bf16.mxu0 %v3956_v3 }
 0x19b   :  { %3427 = vmatprep.subr.bf16.mxu1 %v3957_v4 }
 0x19d   :  { %2771 = vmatpush1.bf16.msra.mxu0 %v3954_v5  ;;  %2903 = vmatmul.mubr.bf16.vlgmr.msra.gmra.mrb[12].mxu1 %v4323_v62  ;;  %v3967_v62 = vld [vmem:[%s5238_s5 + $0x948] ss:$28 sps:$4 sm:$0xff]  }
 0x19e   :  { %3428 = vmatpush3.bf16.msra.mxu1 %v3958_v6  ;;  %2942 = vmatprep.mubr.bf16.mxu1 %v4335_v2  ;;  %v3968_v2 = vld [vmem:[%s5238_s5 + $0x788] ss:$28 sps:$4 sm:$0xff]  }
 0x19f   :  { %2772 = vmatprep.subr.bf16.mxu0 %v3961_v7  ;;  %3429 = vmatprep.subr.bf16.mxu1 %v3962_v8 }
 0x1a1   :  { %2773 = vmatpush1.bf16.msra.mxu0 %v3959_v9 }
 0x1a2   :  { %3430 = vmatpush3.bf16.msra.mxu1 %v3963_v10  ;;  %2774 = vmatprep.subr.bf16.mxu0 %v3966_v11 }
 0x1a3   :  { %3431 = vmatprep.subr.bf16.mxu1 %v3967_v62 }
 0x1a5   :  { %2775 = vmatpush1.bf16.msra.mxu0 %v3964_v13 }
 0x1a6   :  { %3432 = vmatpush3.bf16.msra.mxu1 %v3968_v2  ;;  %2776 = vmatprep.subr.bf16.mxu0 %v3971_v22 }
 0x1a7   :  { %3433 = vmatprep.subr.bf16.mxu1 %v3972_v50 }
 0x1a9   :  { %2777 = vmatpush1.bf16.msra.mxu0 %v3969_v24 }
 0x1aa   :  { %3434 = vmatpush3.bf16.msra.mxu1 %v3973_v25  ;;  %2778 = vmatprep.subr.bf16.mxu0 %v3976_v26 }
 0x1ab   :  { %3435 = vmatprep.subr.bf16.mxu1 %v3977_v27 }
 0x1ad   :  { %2779 = vmatpush1.bf16.msra.mxu0 %v3974_v28 }
 0x1ae   :  { %3436 = vmatpush3.bf16.msra.mxu1 %v3978_v29  ;;  %2789 = vmatprep.subr.bf16.mxu0 %v3981_v30  ;;  %v562_v29 = vrot.slane %v5183_v37, %v4273_v14 }
 0x1af   :  { %3437 = vmatprep.subr.bf16.mxu1 %v3982_v31 }
 0x1b0   :  { %2781 = vmatmul.mubr.bf16.vlgmr.msra.gmra.mrb[8].mxu0 %v4523_v23 }
 0x1b1   :  { %2790 = vmatpush1.bf16.msra.mxu0 %v3979_v47  ;;  %2821 = vmatprep.mubr.bf16.mxu0 %v4019_v0  ;;  %v538_v0 = vrot.slane %v5183_v37, %v4279_v17 }
 0x1b2   :  { %3438 = vmatpush3.bf16.msra.mxu1 %v3983_v33  ;;  %3451 = vmatprep.subr.bf16.mxu0 %v4020_v36 }
 0x1b3   :  { %3439 = vmatprep.subr.bf16.mxu1 %v3984_v34  ;;  %v2373_v40 = vadd.f32 %v4973_v12, %v538_v0  ;;  %v558_v0 = vrot.slane %v5183_v37, %v4283_v19 }
 0x1b6   :  { %3440 = vmatpush3.bf16.msra.mxu1 %v3985_v35 }
 0x1b7   :  { %3441 = vmatprep.subr.bf16.mxu1 %v3986_v38  ;;  %v554_v38 = vrot.slane %v5183_v37, %v4285_v20 }
 0x1ba   :  { %3442 = vmatpush3.bf16.msra.mxu1 %v3987_v60 }
 0x1bb   :  { %v2495_v42 = vpop.f32.mrb[0].mxu0 }
 0x1bc   :  { %v3458_v17 = vadd.f32 %v2495_v42, %v2373_v40  ;;  %3381 = vmatmul.mubr.msk.bf16.vlgmr.msra.gmra.mrb[8].mxu0 %vm2334_vm0, %v4554_v32  ;;  %v2497_v43 = vpop.f32.mrb[1].mxu0 }
 0x1bd   :  { %v3460_v44 = vadd.f32 %v2497_v43, %v2375_v41  ;;  %2943 = vmatmul.mubr.bf16.vlgmr.msra.gmra.mrb[16].mxu1 %v4523_v23  ;;  %3452 = vmatpush3.bf16.msra.mxu0 %v3988_v58  ;;  %v2499_v15 = vpop.f32.mrb[2].mxu0 }
 0x1be   :  { %v2990_v45 = vsub.f32 0.0, %v3458_v17  ;;  %v2500_v46 = vpop.f32.mrb[3].mxu0  ;;  %3453 = vmatprep.mubr.msk.bf16.mxu0 %vm4021_vm1, %v4020_v36 }
 0x1bf   :  { %v2991_v48 = vsub.f32 0.0, %v3460_v44 }
 0x1c0   :  { %v2997_v12 = vmul.f32 1.442695, %v2990_v45 }
 0x1c1   :  { %v2999_v49 = vmul.f32 1.442695, %v2991_v48 }
 0x1c2   :  { %3991 = vpow2.f32 %v2997_v12 }
 0x1c3   :  { %3993 = vpow2.f32 %v2999_v49  ;;  %v2659_v21 = vpop.f32.mrb[4].mxu0 }
 0x1c4   :  { %3454 = vmatmul.mubr.msk.bf16.vlgmr.msra.gmra.mrb[12].mxu0 %vm2334_vm0, %v4554_v32  ;;  %v2661_v51 = vpop.f32.mrb[5].mxu0  ;;  %v546_v32 = vrot.slane %v5183_v37, %v4281_v18 }
 0x1c5   :  { %v2663_v52 = vpop.f32.mrb[6].mxu0 }
 0x1c6   :  { %v2664_v53 = vpop.f32.mrb[7].mxu0 }
 0x1cc   :  { %v3992_v54 = vpop.eup %3991 }
 0x1cd   :  { %v3994_v23 = vpop.eup %3993  ;;  %v3011_v55 = vadd.f32 1.0, %v3992_v54 }
 0x1ce   :  { %v3012_v56 = vadd.f32 1.0, %v3994_v23 }
 0x1cf   :  { %3995 = vrcp.f32 %v3011_v55 }
 0x1d0   :  { %3997 = vrcp.f32 %v3012_v56 }
 0x1d9   :  { %v3996_v57 = vpop.eup %3995 }
 0x1da   :  { %v3998_v59 = vpop.eup %3997  ;;  %3025 = vst [vmem:[%s5244_s7] sm:$0xff] %v3996_v57 }
 0x1db   :  { %3026 = vst [vmem:[%s5244_s7 + $0x8] sm:$0xff] %v3998_v59 }
 0x230   :  { %v2618_v63 = vpop.f32.mrb[4].mxu1 }
 0x231   :  { %v3461_v1 = vadd.f32 %v2618_v63, %v546_v32  ;;  %v2620_v3 = vpop.f32.mrb[5].mxu1 }
 0x232   :  { %v3463_v4 = vadd.f32 %v2620_v3, %v550_v61  ;;  %v2622_v5 = vpop.f32.mrb[6].mxu1 }
 0x233   :  { %v3462_v6 = vadd.f32 %v3461_v1, %v2659_v21  ;;  %v2623_v7 = vpop.f32.mrb[7].mxu1 }
 0x234   :  { %v3464_v8 = vadd.f32 %v3463_v4, %v2661_v51 }
 0x235   :  { %v2992_v9 = vsub.f32 0.0, %v3462_v6 }
 0x236   :  { %v2993_v10 = vsub.f32 0.0, %v3464_v8 }
 0x237   :  { %v3001_v11 = vmul.f32 1.442695, %v2992_v9 }
 0x238   :  { %v3003_v62 = vmul.f32 1.442695, %v2993_v10 }
 0x239   :  { %3999 = vpow2.f32 %v3001_v11 }
 0x23a   :  { %4001 = vpow2.f32 %v3003_v62 }
 0x243   :  { %v4000_v13 = vpop.eup %3999 }
 0x244   :  { %v4002_v2 = vpop.eup %4001  ;;  %v3013_v18 = vadd.f32 1.0, %v4000_v13 }
 0x245   :  { %v3014_v22 = vadd.f32 1.0, %v4002_v2 }
 0x246   :  { %4003 = vrcp.f32 %v3013_v18 }
 0x247   :  { %4005 = vrcp.f32 %v3014_v22 }
 0x250   :  { %v4004_v16 = vpop.eup %4003  ;;  %v3399_v50 = vpop.f32.mrb[8].mxu1 }
 0x251   :  { %v4006_v24 = vpop.eup %4005  ;;  %3027 = vst [vmem:[%s5244_s7 + $0x10] sm:$0xff] %v4004_v16  ;;  %v3400_v25 = vpop.f32.mrb[9].mxu1 }
 0x252   :  { %3028 = vst [vmem:[%s5244_s7 + $0x18] sm:$0xff] %v4006_v24  ;;  %v3401_v26 = vadd.f32 %v3400_v25, %v3399_v50  ;;  %v3402_v27 = vpop.f32.mrb[10].mxu1 }
 0x253   :  { %v3403_v28 = vpop.f32.mrb[11].mxu1 }
 0x254   :  { %v2865_v47 = vadd.f32 %v3401_v26, %v562_v29 }
 0x270   :  { %v3421_v30 = vpop.f32.mrb[12].mxu1 }
 0x271   :  { %v3422_v31 = vpop.f32.mrb[13].mxu1 }
 0x272   :  { %v3423_v33 = vadd.f32 %v3422_v31, %v3421_v30  ;;  %v3424_v34 = vpop.f32.mrb[14].mxu1 }
 0x273   :  { %v3425_v35 = vpop.f32.mrb[15].mxu1 }
 0x274   :  { %v2905_v36 = vadd.f32 %v3423_v33, %v2865_v47 }
 0x28f   :  { %v2823_v60 = vpop.f32.mrb[8].mxu0 }
 0x290   :  { %v3465_v39 = vadd.f32 %v2823_v60, %v554_v38  ;;  %v2825_v58 = vpop.f32.mrb[9].mxu0  ;;  %v3443_v40 = vpop.f32.mrb[16].mxu1 }
 0x291   :  { %v3466_v41 = vadd.f32 %v2825_v58, %v558_v0  ;;  %v2827_v42 = vpop.f32.mrb[10].mxu0  ;;  %v3444_v14 = vpop.f32.mrb[17].mxu1 }
 0x292   :  { %v2994_v17 = vsub.f32 0.0, %v3465_v39  ;;  %v3445_v43 = vadd.f32 %v3444_v14, %v3443_v40  ;;  %v2828_v44 = vpop.f32.mrb[11].mxu0  ;;  %v3446_v15 = vpop.f32.mrb[18].mxu1 }
 0x293   :  { %v2995_v45 = vsub.f32 0.0, %v3466_v41  ;;  %v3447_v46 = vpop.f32.mrb[19].mxu1 }
 0x294   :  { %v3005_v48 = vmul.f32 1.442695, %v2994_v17  ;;  %v2945_v12 = vadd.f32 %v3445_v43, %v2905_v36 }
 0x295   :  { %v3007_v49 = vmul.f32 1.442695, %v2995_v45 }
 0x296   :  { %4007 = vpow2.f32 %v3005_v48 }
 0x297   :  { %4009 = vpow2.f32 %v3007_v49  ;;  %v2984_v20 = vpop.f32.mrb[12].mxu0 }
 0x298   :  { %v2985_v19 = vadd.f32 %v2984_v20, %v2945_v12  ;;  %v3455_v37 = vpop.f32.mrb[13].mxu0 }
 0x299   :  { %v2987_v21 = vpop.f32.mrb[14].mxu0 }
 0x29a   :  { %v2996_v51 = vsub.f32 0.0, %v2985_v19  ;;  %v3456_v52 = vpop.f32.mrb[15].mxu0 }
 0x29c   :  { %v3009_v53 = vmul.f32 1.442695, %v2996_v51 }
 0x29e   :  { %4011 = vpow2.f32 %v3009_v53 }
 0x2a0   :  { %v4008_v54 = vpop.eup %4007 }
 0x2a1   :  { %v4010_v23 = vpop.eup %4009  ;;  %v3015_v55 = vadd.f32 1.0, %v4008_v54 }
 0x2a2   :  { %v3016_v56 = vadd.f32 1.0, %v4010_v23 }
 0x2a3   :  { %4013 = vrcp.f32 %v3015_v55 }
 0x2a4   :  { %4015 = vrcp.f32 %v3016_v56 }
 0x2a8   :  { %v4012_v57 = vpop.eup %4011 }
 0x2a9   :  { %v3017_v59 = vadd.f32 1.0, %v4012_v57 }
 0x2ab   :  { %4017 = vrcp.f32 %v3017_v59 }
 0x2ad   :  { %v4014_v32 = vpop.eup %4013 }
 0x2ae   :  { %v4016_v61 = vpop.eup %4015  ;;  %3029 = vst [vmem:[%s5244_s7 + $0x20] sm:$0xff] %v4014_v32 }
 0x2af   :  { %3030 = vst [vmem:[%s5244_s7 + $0x28] sm:$0xff] %v4016_v61 }
 0x2b5   :  { %v4018_v63 = vpop.eup %4017 }
 0x2b6   :  { %3031 = vst.msk [vmem:[%s5244_s7 + $0x30] sm:$0xff] %vm2334_vm0, %v4018_v63 }

</bundles_post_ra>
